<compile_context>
chip_gen: v6e
topology: v6e:2x2x1
jax: 0.10.0
libtpu: 0.0.40
codegen_flags: <defaults>
</compile_context>

<pallas_src>
import jax
import jax.numpy as jnp
from jax import lax
from jax.experimental import pallas as pl
from jax.experimental.pallas import tpu as pltpu

# ------------------------------ configuration -------------------------------
BATCH = 2
IN_CH = 32                       # in_channels
MID_CH = 32                      # out_channels
EXPANSION = 4
OUT_CH = MID_CH * EXPANSION      # 128 -> full TPU lane width
IMG_H = 16
IMG_W = 16
HW = IMG_H * IMG_W               # 256 rows on the sublane axis
STRIDE = 1
BN_EPS = 1e-5

# 3x3 conv taps in (dy, dx) order; PAD_ROWS covers the largest |row offset|.
TAPS = [(dy, dx) for dy in (-1, 0, 1) for dx in (-1, 0, 1)]
PAD_ROWS = IMG_W + 1             # 17

# TODO(synk): stride > 1 (strided 3x3 + strided downsample) is not exercised;
# this instance implements the canonical stride=1 projection-downsample block.
# BatchNorm uses running statistics (inference semantics).


# --------------------------------- kernel ------------------------------------
def _bottleneck_kernel(x_ref, w1_ref, b1_ref, w2_ref, b2_ref, w3_ref,
                       wd_ref, b3d_ref, mask_ref, out_ref):
    x = x_ref[0]                                              # (HW, IN_CH)

    # conv1 (1x1) + BN + ReLU (BN scale folded into w1, bias folded into b1)
    y = jnp.dot(x, w1_ref[...], preferred_element_type=jnp.float32) + b1_ref[...]
    y = jnp.maximum(y, 0.0)

    # conv2 (3x3, padding=1, stride=1) + BN + ReLU:
    # zero-pad along the flattened-row axis once, then 9 shifted matmuls.
    zpad = jnp.zeros((PAD_ROWS, MID_CH), jnp.float32)
    ypad = jnp.concatenate([zpad, y, zpad], axis=0)           # (HW + 2*PAD, MID)
    acc = jnp.zeros((HW, MID_CH), jnp.float32)
    for t, (dy, dx) in enumerate(TAPS):
        start = PAD_ROWS + dy * IMG_W + dx                    # static offset
        xt = ypad[start:start + HW, :]
        if dx != 0:
            # Only column shifts can wrap to a wrong (but in-image) neighbor;
            # dy-only shifts read exact zeros from the padding, no mask needed.
            xt = xt * mask_ref[:, t:t + 1]
        acc = acc + jnp.dot(xt, w2_ref[t], preferred_element_type=jnp.float32)
    y = jnp.maximum(acc + b2_ref[...], 0.0)

    # conv3 (1x1) + BN, identity path (conv1x1 + BN projection), residual add,
    # final ReLU — the two folded biases are pre-summed on the host (b3d).
    y3 = jnp.dot(y, w3_ref[...], preferred_element_type=jnp.float32)
    idn = jnp.dot(x, wd_ref[...], preferred_element_type=jnp.float32)
    out_ref[0] = jnp.maximum(y3 + idn + b3d_ref[...], 0.0)


# ------------------------------ pallas wrapper --------------------------------
def _full_spec(a):
    zeros = (0,) * a.ndim
    return pl.BlockSpec(a.shape, lambda i, _z=zeros: _z)


@jax.jit
def bottleneck_forward(x_nchw, p):
    b = x_nchw.shape[0]
    # NCHW -> (b, H*W, C): channels on the lane axis.
    x2d = jnp.transpose(x_nchw, (0, 2, 3, 1)).reshape(b, HW, IN_CH)
    weights = (p["w1"], p["b1"], p["w2"], p["b2"], p["w3"],
               p["wd"], p["b3d"], p["mask"])
    in_specs = [pl.BlockSpec((1, HW, IN_CH), lambda i: (i, 0, 0))]
    in_specs += [_full_spec(w) for w in weights]
    out = pl.pallas_call(
        _bottleneck_kernel,
        out_shape=jax.ShapeDtypeStruct((b, HW, OUT_CH), jnp.float32),
        grid=(b,),
        in_specs=in_specs,
        out_specs=pl.BlockSpec((1, HW, OUT_CH), lambda i: (i, 0, 0)),
        compiler_params=pltpu.CompilerParams(
            dimension_semantics=("parallel",)),
    )(x2d, *weights)
    # (b, H*W, C_out) -> NCHW to match the PyTorch module's output layout.
    return jnp.transpose(out.reshape(b, IMG_H, IMG_W, OUT_CH), (0, 3, 1, 2))


# ----------------------------- params & folding -------------------------------
def init_raw_params(key):
    ks = jax.random.split(key, 11)

    def conv_w(k, co, ci, kh, kw):
        fan_in = ci * kh * kw
        return jax.random.normal(k, (co, ci, kh, kw), jnp.float32) * (fan_in ** -0.5)

    def conv_b(k, co):
        return 0.05 * jax.random.normal(k, (co,), jnp.float32)

    def bn_p(k, c):
        k1, k2, k3, k4 = jax.random.split(k, 4)
        return dict(
            gamma=1.0 + 0.1 * jax.random.normal(k1, (c,), jnp.float32),
            beta=0.1 * jax.random.normal(k2, (c,), jnp.float32),
            mean=0.1 * jax.random.normal(k3, (c,), jnp.float32),
            var=0.5 + jax.random.uniform(k4, (c,), jnp.float32),
        )

    return dict(
        w1=conv_w(ks[0], MID_CH, IN_CH, 1, 1), b1=conv_b(ks[1], MID_CH),
        bn1=bn_p(ks[2], MID_CH),
        w2=conv_w(ks[3], MID_CH, MID_CH, 3, 3), b2=conv_b(ks[4], MID_CH),
        bn2=bn_p(ks[5], MID_CH),
        w3=conv_w(ks[6], OUT_CH, MID_CH, 1, 1), b3=conv_b(ks[7], OUT_CH),
        bn3=bn_p(ks[8], OUT_CH),
        wd=conv_w(ks[9], OUT_CH, IN_CH, 1, 1),      # downsample conv (bias=False)
        bnd=bn_p(ks[10], OUT_CH),
    )


def _fold_bn(bn, conv_bias):
    scale = bn["gamma"] * lax.rsqrt(bn["var"] + BN_EPS)
    bias = bn["beta"] + (conv_bias - bn["mean"]) * scale
    return scale, bias


def convert_params(raw):
    """Fold conv bias + inference BatchNorm into kernel-friendly (in, out) mats."""
    p = {}
    s1, b1 = _fold_bn(raw["bn1"], raw["b1"])
    p["w1"] = (raw["w1"][:, :, 0, 0] * s1[:, None]).T               # (IN, MID)
    p["b1"] = b1.reshape(1, MID_CH)

    s2, b2 = _fold_bn(raw["bn2"], raw["b2"])
    taps = []
    for dy, dx in TAPS:
        taps.append((raw["w2"][:, :, dy + 1, dx + 1] * s2[:, None]).T)  # (in, out)
    p["w2"] = jnp.stack(taps)                                        # (9, MID, MID)
    p["b2"] = b2.reshape(1, MID_CH)

    s3, b3 = _fold_bn(raw["bn3"], raw["b3"])
    p["w3"] = (raw["w3"][:, :, 0, 0] * s3[:, None]).T                # (MID, OUT)

    sd, bd = _fold_bn(raw["bnd"], jnp.zeros((OUT_CH,), jnp.float32))
    p["wd"] = (raw["wd"][:, :, 0, 0] * sd[:, None]).T                # (IN, OUT)
    # conv3-path bias and downsample-path bias are always summed in the end.
    p["b3d"] = (b3 + bd).reshape(1, OUT_CH)

    # Boundary masks for the 9 taps of the 3x3 conv (valid-source indicator),
    # precomputed once on the host, shape (H*W, 9).  Used in-kernel only for
    # the dx != 0 taps (row padding already zeroes the dx == 0 taps).
    pos = jnp.arange(HW)
    hh = pos // IMG_W
    ww = pos % IMG_W
    cols = []
    for dy, dx in TAPS:
        valid = ((hh + dy >= 0) & (hh + dy < IMG_H) &
                 (ww + dx >= 0) & (ww + dx < IMG_W))
        cols.append(valid.astype(jnp.float32))
    p["mask"] = jnp.stack(cols, axis=1)                              # (HW, 9)
    return p


# ------------------------ pure-JAX reference (same raw params) ----------------
def reference_forward(x, raw):
    prec = lax.Precision.HIGHEST

    def conv(inp, w, padding=0, stride=1):
        return lax.conv_general_dilated(
            inp, w, window_strides=(stride, stride),
            padding=[(padding, padding), (padding, padding)],
            dimension_numbers=("NCHW", "OIHW", "NCHW"), precision=prec)

    def bn(inp, bnp):
        sh = (1, -1, 1, 1)
        return ((inp - bnp["mean"].reshape(sh))
                * (bnp["gamma"].reshape(sh) * lax.rsqrt(bnp["var"].reshape(sh) + BN_EPS))
                + bnp["beta"].reshape(sh))

    identity = x
    y = conv(x, raw["w1"]) + raw["b1"].reshape(1, -1, 1, 1)
    y = jax.nn.relu(bn(y, raw["bn1"]))
    y = conv(y, raw["w2"], padding=1, stride=STRIDE) + raw["b2"].reshape(1, -1, 1, 1)
    y = jax.nn.relu(bn(y, raw["bn2"]))
    y = conv(y, raw["w3"]) + raw["b3"].reshape(1, -1, 1, 1)
    y = bn(y, raw["bn3"])
    identity = bn(conv(identity, raw["wd"], stride=STRIDE), raw["bnd"])
    return jax.nn.relu(y + identity)


# ------------------------------------ main ------------------------------------
if __name__ == "__main__":
    key = jax.random.PRNGKey(0)
    kp, kx = jax.random.split(key)
    raw = init_raw_params(kp)
    params = convert_params(raw)
    x = jax.random.normal(kx, (BATCH, IN_CH, IMG_H, IMG_W), jnp.float32)

    out = jax.block_until_ready(bottleneck_forward(x, params))
    ref = jax.block_until_ready(reference_forward(x, raw))

    assert out.shape == (BATCH, OUT_CH, IMG_H, IMG_W), out.shape
    assert bool(jnp.all(jnp.isfinite(out)))
    assert bool(jnp.allclose(out, ref, atol=2e-2, rtol=2e-2)), (
        float(jnp.max(jnp.abs(out - ref))))
    print("KERNEL_OK")
</pallas_src>

<mosaic_0001>
module attributes {stable_mosaic.version = 11 : i64} {
  func.func @_bottleneck_kernel(%arg0: i32, %arg1: memref<1x256x32xf32, #tpu.memory_space<vmem>>, %arg2: memref<32x32xf32, #tpu.memory_space<vmem>>, %arg3: memref<1x32xf32, #tpu.memory_space<vmem>>, %arg4: memref<9x32x32xf32, #tpu.memory_space<vmem>>, %arg5: memref<1x32xf32, #tpu.memory_space<vmem>>, %arg6: memref<32x128xf32, #tpu.memory_space<vmem>>, %arg7: memref<32x128xf32, #tpu.memory_space<vmem>>, %arg8: memref<1x128xf32, #tpu.memory_space<vmem>>, %arg9: memref<256x9xf32, #tpu.memory_space<vmem>>, %arg10: memref<1x256x128xf32, #tpu.memory_space<vmem>>) attributes {dimension_semantics = [#tpu.dimension_semantics<parallel>], iteration_bounds = array<i64: 2>, scalar_prefetch = 0 : i64, scratch_operands = 0 : i64, tpu.core_type = #tpu.core_type<tc>, window_params = [{transform_indices = @transform_0, window_bounds = array<i64: 1, 256, 32>}, {pipeline_mode = #tpu.pipeline_mode<synchronous>, transform_indices = @transform_1, window_bounds = array<i64: 32, 32>}, {pipeline_mode = #tpu.pipeline_mode<synchronous>, transform_indices = @transform_2, window_bounds = array<i64: 1, 32>}, {pipeline_mode = #tpu.pipeline_mode<synchronous>, transform_indices = @transform_3, window_bounds = array<i64: 9, 32, 32>}, {pipeline_mode = #tpu.pipeline_mode<synchronous>, transform_indices = @transform_4, window_bounds = array<i64: 1, 32>}, {pipeline_mode = #tpu.pipeline_mode<synchronous>, transform_indices = @transform_5, window_bounds = array<i64: 32, 128>}, {pipeline_mode = #tpu.pipeline_mode<synchronous>, transform_indices = @transform_6, window_bounds = array<i64: 32, 128>}, {pipeline_mode = #tpu.pipeline_mode<synchronous>, transform_indices = @transform_7, window_bounds = array<i64: 1, 128>}, {pipeline_mode = #tpu.pipeline_mode<synchronous>, transform_indices = @transform_8, window_bounds = array<i64: 256, 9>}, {transform_indices = @transform_9, window_bounds = array<i64: 1, 256, 128>}]} {
    %c0 = arith.constant 0 : index
    %c0_0 = arith.constant 0 : index
    %c0_1 = arith.constant 0 : index
    %0 = vector.load %arg1[%c0, %c0_0, %c0_1] : memref<1x256x32xf32, #tpu.memory_space<vmem>>, vector<1x256x32xf32>
    %1 = vector.shape_cast %0 : vector<1x256x32xf32> to vector<256x32xf32>
    %c0_2 = arith.constant 0 : index
    %c0_3 = arith.constant 0 : index
    %2 = vector.load %arg2[%c0_2, %c0_3] : memref<32x32xf32, #tpu.memory_space<vmem>>, vector<32x32xf32>
    %cst = arith.constant dense<0.000000e+00> : vector<256x32xf32>
    %3 = tpu.matmul %1, %2, %cst {dimension_numbers = #tpu.dot_dimension_numbers<[1], [0], [0], [1], [0, 0, 1, 1], [], []>} : vector<256x32xf32>, vector<32x32xf32>, vector<256x32xf32> -> vector<256x32xf32>
    %c0_4 = arith.constant 0 : index
    %c0_5 = arith.constant 0 : index
    %4 = vector.load %arg3[%c0_4, %c0_5] : memref<1x32xf32, #tpu.memory_space<vmem>>, vector<1x32xf32>
    %5 = vector.broadcast %4 : vector<1x32xf32> to vector<256x32xf32>
    %6 = arith.addf %3, %5 : vector<256x32xf32>
    %cst_6 = arith.constant 0.000000e+00 : f32
    %7 = vector.broadcast %cst_6 : f32 to vector<256x32xf32>
    %8 = arith.maximumf %6, %7 : vector<256x32xf32>
    %cst_7 = arith.constant 0.000000e+00 : f32
    %9 = vector.broadcast %cst_7 : f32 to vector<17x32xf32>
    %10 = tpu.concatenate %9, %8, %9 in 0 : vector<17x32xf32>, vector<256x32xf32>, vector<17x32xf32> -> vector<290x32xf32>
    %cst_8 = arith.constant 0.000000e+00 : f32
    %11 = vector.broadcast %cst_8 : f32 to vector<256x32xf32>
    %12 = vector.extract_strided_slice %10 {offsets = [0, 0], sizes = [256, 32], strides = [1, 1]} : vector<290x32xf32> to vector<256x32xf32>
    %c0_9 = arith.constant 0 : index
    %c0_10 = arith.constant 0 : index
    %13 = vector.load %arg9[%c0_9, %c0_10] : memref<256x9xf32, #tpu.memory_space<vmem>>, vector<256x1xf32>
    %14 = vector.broadcast %13 : vector<256x1xf32> to vector<256x32xf32>
    %15 = arith.mulf %12, %14 : vector<256x32xf32>
    %c0_11 = arith.constant 0 : index
    %c0_12 = arith.constant 0 : index
    %c0_13 = arith.constant 0 : index
    %16 = vector.load %arg4[%c0_11, %c0_12, %c0_13] : memref<9x32x32xf32, #tpu.memory_space<vmem>>, vector<1x32x32xf32>
    %17 = vector.shape_cast %16 : vector<1x32x32xf32> to vector<32x32xf32>
    %cst_14 = arith.constant dense<0.000000e+00> : vector<256x32xf32>
    %18 = tpu.matmul %15, %17, %cst_14 {dimension_numbers = #tpu.dot_dimension_numbers<[1], [0], [0], [1], [0, 0, 1, 1], [], []>} : vector<256x32xf32>, vector<32x32xf32>, vector<256x32xf32> -> vector<256x32xf32>
    %19 = arith.addf %11, %18 : vector<256x32xf32>
    %20 = vector.extract_strided_slice %10 {offsets = [1, 0], sizes = [256, 32], strides = [1, 1]} : vector<290x32xf32> to vector<256x32xf32>
    %c1 = arith.constant 1 : index
    %c0_15 = arith.constant 0 : index
    %c0_16 = arith.constant 0 : index
    %21 = vector.load %arg4[%c1, %c0_15, %c0_16] : memref<9x32x32xf32, #tpu.memory_space<vmem>>, vector<1x32x32xf32>
    %22 = vector.shape_cast %21 : vector<1x32x32xf32> to vector<32x32xf32>
    %cst_17 = arith.constant dense<0.000000e+00> : vector<256x32xf32>
    %23 = tpu.matmul %20, %22, %cst_17 {dimension_numbers = #tpu.dot_dimension_numbers<[1], [0], [0], [1], [0, 0, 1, 1], [], []>} : vector<256x32xf32>, vector<32x32xf32>, vector<256x32xf32> -> vector<256x32xf32>
    %24 = arith.addf %19, %23 : vector<256x32xf32>
    %25 = vector.extract_strided_slice %10 {offsets = [2, 0], sizes = [256, 32], strides = [1, 1]} : vector<290x32xf32> to vector<256x32xf32>
    %c0_18 = arith.constant 0 : index
    %c2 = arith.constant 2 : index
    %26 = vector.load %arg9[%c0_18, %c2] : memref<256x9xf32, #tpu.memory_space<vmem>>, vector<256x1xf32>
    %27 = vector.broadcast %26 : vector<256x1xf32> to vector<256x32xf32>
    %28 = arith.mulf %25, %27 : vector<256x32xf32>
    %c2_19 = arith.constant 2 : index
    %c0_20 = arith.constant 0 : index
    %c0_21 = arith.constant 0 : index
    %29 = vector.load %arg4[%c2_19, %c0_20, %c0_21] : memref<9x32x32xf32, #tpu.memory_space<vmem>>, vector<1x32x32xf32>
    %30 = vector.shape_cast %29 : vector<1x32x32xf32> to vector<32x32xf32>
    %cst_22 = arith.constant dense<0.000000e+00> : vector<256x32xf32>
    %31 = tpu.matmul %28, %30, %cst_22 {dimension_numbers = #tpu.dot_dimension_numbers<[1], [0], [0], [1], [0, 0, 1, 1], [], []>} : vector<256x32xf32>, vector<32x32xf32>, vector<256x32xf32> -> vector<256x32xf32>
    %32 = arith.addf %24, %31 : vector<256x32xf32>
    %33 = vector.extract_strided_slice %10 {offsets = [16, 0], sizes = [256, 32], strides = [1, 1]} : vector<290x32xf32> to vector<256x32xf32>
    %c0_23 = arith.constant 0 : index
    %c3 = arith.constant 3 : index
    %34 = vector.load %arg9[%c0_23, %c3] : memref<256x9xf32, #tpu.memory_space<vmem>>, vector<256x1xf32>
    %35 = vector.broadcast %34 : vector<256x1xf32> to vector<256x32xf32>
    %36 = arith.mulf %33, %35 : vector<256x32xf32>
    %c3_24 = arith.constant 3 : index
    %c0_25 = arith.constant 0 : index
    %c0_26 = arith.constant 0 : index
    %37 = vector.load %arg4[%c3_24, %c0_25, %c0_26] : memref<9x32x32xf32, #tpu.memory_space<vmem>>, vector<1x32x32xf32>
    %38 = vector.shape_cast %37 : vector<1x32x32xf32> to vector<32x32xf32>
    %cst_27 = arith.constant dense<0.000000e+00> : vector<256x32xf32>
    %39 = tpu.matmul %36, %38, %cst_27 {dimension_numbers = #tpu.dot_dimension_numbers<[1], [0], [0], [1], [0, 0, 1, 1], [], []>} : vector<256x32xf32>, vector<32x32xf32>, vector<256x32xf32> -> vector<256x32xf32>
    %40 = arith.addf %32, %39 : vector<256x32xf32>
    %41 = vector.extract_strided_slice %10 {offsets = [17, 0], sizes = [256, 32], strides = [1, 1]} : vector<290x32xf32> to vector<256x32xf32>
    %c4 = arith.constant 4 : index
    %c0_28 = arith.constant 0 : index
    %c0_29 = arith.constant 0 : index
    %42 = vector.load %arg4[%c4, %c0_28, %c0_29] : memref<9x32x32xf32, #tpu.memory_space<vmem>>, vector<1x32x32xf32>
    %43 = vector.shape_cast %42 : vector<1x32x32xf32> to vector<32x32xf32>
    %cst_30 = arith.constant dense<0.000000e+00> : vector<256x32xf32>
    %44 = tpu.matmul %41, %43, %cst_30 {dimension_numbers = #tpu.dot_dimension_numbers<[1], [0], [0], [1], [0, 0, 1, 1], [], []>} : vector<256x32xf32>, vector<32x32xf32>, vector<256x32xf32> -> vector<256x32xf32>
    %45 = arith.addf %40, %44 : vector<256x32xf32>
    %46 = vector.extract_strided_slice %10 {offsets = [18, 0], sizes = [256, 32], strides = [1, 1]} : vector<290x32xf32> to vector<256x32xf32>
    %c0_31 = arith.constant 0 : index
    %c5 = arith.constant 5 : index
    %47 = vector.load %arg9[%c0_31, %c5] : memref<256x9xf32, #tpu.memory_space<vmem>>, vector<256x1xf32>
    %48 = vector.broadcast %47 : vector<256x1xf32> to vector<256x32xf32>
    %49 = arith.mulf %46, %48 : vector<256x32xf32>
    %c5_32 = arith.constant 5 : index
    %c0_33 = arith.constant 0 : index
    %c0_34 = arith.constant 0 : index
    %50 = vector.load %arg4[%c5_32, %c0_33, %c0_34] : memref<9x32x32xf32, #tpu.memory_space<vmem>>, vector<1x32x32xf32>
    %51 = vector.shape_cast %50 : vector<1x32x32xf32> to vector<32x32xf32>
    %cst_35 = arith.constant dense<0.000000e+00> : vector<256x32xf32>
    %52 = tpu.matmul %49, %51, %cst_35 {dimension_numbers = #tpu.dot_dimension_numbers<[1], [0], [0], [1], [0, 0, 1, 1], [], []>} : vector<256x32xf32>, vector<32x32xf32>, vector<256x32xf32> -> vector<256x32xf32>
    %53 = arith.addf %45, %52 : vector<256x32xf32>
    %54 = vector.extract_strided_slice %10 {offsets = [32, 0], sizes = [256, 32], strides = [1, 1]} : vector<290x32xf32> to vector<256x32xf32>
    %c0_36 = arith.constant 0 : index
    %c6 = arith.constant 6 : index
    %55 = vector.load %arg9[%c0_36, %c6] : memref<256x9xf32, #tpu.memory_space<vmem>>, vector<256x1xf32>
    %56 = vector.broadcast %55 : vector<256x1xf32> to vector<256x32xf32>
    %57 = arith.mulf %54, %56 : vector<256x32xf32>
    %c6_37 = arith.constant 6 : index
    %c0_38 = arith.constant 0 : index
    %c0_39 = arith.constant 0 : index
    %58 = vector.load %arg4[%c6_37, %c0_38, %c0_39] : memref<9x32x32xf32, #tpu.memory_space<vmem>>, vector<1x32x32xf32>
    %59 = vector.shape_cast %58 : vector<1x32x32xf32> to vector<32x32xf32>
    %cst_40 = arith.constant dense<0.000000e+00> : vector<256x32xf32>
    %60 = tpu.matmul %57, %59, %cst_40 {dimension_numbers = #tpu.dot_dimension_numbers<[1], [0], [0], [1], [0, 0, 1, 1], [], []>} : vector<256x32xf32>, vector<32x32xf32>, vector<256x32xf32> -> vector<256x32xf32>
    %61 = arith.addf %53, %60 : vector<256x32xf32>
    %62 = vector.extract_strided_slice %10 {offsets = [33, 0], sizes = [256, 32], strides = [1, 1]} : vector<290x32xf32> to vector<256x32xf32>
    %c7 = arith.constant 7 : index
    %c0_41 = arith.constant 0 : index
    %c0_42 = arith.constant 0 : index
    %63 = vector.load %arg4[%c7, %c0_41, %c0_42] : memref<9x32x32xf32, #tpu.memory_space<vmem>>, vector<1x32x32xf32>
    %64 = vector.shape_cast %63 : vector<1x32x32xf32> to vector<32x32xf32>
    %cst_43 = arith.constant dense<0.000000e+00> : vector<256x32xf32>
    %65 = tpu.matmul %62, %64, %cst_43 {dimension_numbers = #tpu.dot_dimension_numbers<[1], [0], [0], [1], [0, 0, 1, 1], [], []>} : vector<256x32xf32>, vector<32x32xf32>, vector<256x32xf32> -> vector<256x32xf32>
    %66 = arith.addf %61, %65 : vector<256x32xf32>
    %67 = vector.extract_strided_slice %10 {offsets = [34, 0], sizes = [256, 32], strides = [1, 1]} : vector<290x32xf32> to vector<256x32xf32>
    %c0_44 = arith.constant 0 : index
    %c8 = arith.constant 8 : index
    %68 = vector.load %arg9[%c0_44, %c8] : memref<256x9xf32, #tpu.memory_space<vmem>>, vector<256x1xf32>
    %69 = vector.broadcast %68 : vector<256x1xf32> to vector<256x32xf32>
    %70 = arith.mulf %67, %69 : vector<256x32xf32>
    %c8_45 = arith.constant 8 : index
    %c0_46 = arith.constant 0 : index
    %c0_47 = arith.constant 0 : index
    %71 = vector.load %arg4[%c8_45, %c0_46, %c0_47] : memref<9x32x32xf32, #tpu.memory_space<vmem>>, vector<1x32x32xf32>
    %72 = vector.shape_cast %71 : vector<1x32x32xf32> to vector<32x32xf32>
    %cst_48 = arith.constant dense<0.000000e+00> : vector<256x32xf32>
    %73 = tpu.matmul %70, %72, %cst_48 {dimension_numbers = #tpu.dot_dimension_numbers<[1], [0], [0], [1], [0, 0, 1, 1], [], []>} : vector<256x32xf32>, vector<32x32xf32>, vector<256x32xf32> -> vector<256x32xf32>
    %74 = arith.addf %66, %73 : vector<256x32xf32>
    %c0_49 = arith.constant 0 : index
    %c0_50 = arith.constant 0 : index
    %75 = vector.load %arg5[%c0_49, %c0_50] : memref<1x32xf32, #tpu.memory_space<vmem>>, vector<1x32xf32>
    %76 = vector.broadcast %75 : vector<1x32xf32> to vector<256x32xf32>
    %77 = arith.addf %74, %76 : vector<256x32xf32>
    %cst_51 = arith.constant 0.000000e+00 : f32
    %78 = vector.broadcast %cst_51 : f32 to vector<256x32xf32>
    %79 = arith.maximumf %77, %78 : vector<256x32xf32>
    %c0_52 = arith.constant 0 : index
    %c0_53 = arith.constant 0 : index
    %80 = vector.load %arg6[%c0_52, %c0_53] : memref<32x128xf32, #tpu.memory_space<vmem>>, vector<32x128xf32>
    %cst_54 = arith.constant dense<0.000000e+00> : vector<256x128xf32>
    %81 = tpu.matmul %79, %80, %cst_54 {dimension_numbers = #tpu.dot_dimension_numbers<[1], [0], [0], [1], [0, 0, 1, 1], [], []>} : vector<256x32xf32>, vector<32x128xf32>, vector<256x128xf32> -> vector<256x128xf32>
    %c0_55 = arith.constant 0 : index
    %c0_56 = arith.constant 0 : index
    %82 = vector.load %arg7[%c0_55, %c0_56] : memref<32x128xf32, #tpu.memory_space<vmem>>, vector<32x128xf32>
    %cst_57 = arith.constant dense<0.000000e+00> : vector<256x128xf32>
    %83 = tpu.matmul %1, %82, %cst_57 {dimension_numbers = #tpu.dot_dimension_numbers<[1], [0], [0], [1], [0, 0, 1, 1], [], []>} : vector<256x32xf32>, vector<32x128xf32>, vector<256x128xf32> -> vector<256x128xf32>
    %84 = arith.addf %81, %83 : vector<256x128xf32>
    %c0_58 = arith.constant 0 : index
    %c0_59 = arith.constant 0 : index
    %85 = vector.load %arg8[%c0_58, %c0_59] : memref<1x128xf32, #tpu.memory_space<vmem>>, vector<1x128xf32>
    %86 = vector.broadcast %85 : vector<1x128xf32> to vector<256x128xf32>
    %87 = arith.addf %84, %86 : vector<256x128xf32>
    %cst_60 = arith.constant 0.000000e+00 : f32
    %88 = vector.broadcast %cst_60 : f32 to vector<256x128xf32>
    %89 = arith.maximumf %87, %88 : vector<256x128xf32>
    %c0_61 = arith.constant 0 : index
    %c0_62 = arith.constant 0 : index
    %c0_63 = arith.constant 0 : index
    %90 = vector.load %arg10[%c0_61, %c0_62, %c0_63] : memref<1x256x128xf32, #tpu.memory_space<vmem>>, vector<1x256x128xf32>
    %91 = vector.shape_cast %90 : vector<1x256x128xf32> to vector<256x128xf32>
    %92 = vector.shape_cast %89 : vector<256x128xf32> to vector<1x256x128xf32>
    tpu.vector_store %arg10[%c0_61, %c0_62, %c0_63], %92 {strides = array<i32>} : memref<1x256x128xf32, #tpu.memory_space<vmem>>, vector<1x256x128xf32>,
    return
  }
  func.func @transform_0(%arg0: i32) -> (i32, i32, i32) {
    %c0_i32 = arith.constant 0 : i32
    %c0_i32_0 = arith.constant 0 : i32
    %c0_i32_1 = arith.constant 0 : i32
    return %arg0, %c0_i32, %c0_i32_0 : i32, i32, i32
  }
  func.func @transform_1(%arg0: i32) -> (i32, i32) {
    %c0_i32 = arith.constant 0 : i32
    %c0_i32_0 = arith.constant 0 : i32
    %c0_i32_1 = arith.constant 0 : i32
    return %c0_i32, %c0_i32_0 : i32, i32
  }
  func.func @transform_2(%arg0: i32) -> (i32, i32) {
    %c0_i32 = arith.constant 0 : i32
    %c0_i32_0 = arith.constant 0 : i32
    %c0_i32_1 = arith.constant 0 : i32
    return %c0_i32, %c0_i32_0 : i32, i32
  }
  func.func @transform_3(%arg0: i32) -> (i32, i32, i32) {
    %c0_i32 = arith.constant 0 : i32
    %c0_i32_0 = arith.constant 0 : i32
    %c0_i32_1 = arith.constant 0 : i32
    %c0_i32_2 = arith.constant 0 : i32
    return %c0_i32, %c0_i32_0, %c0_i32_1 : i32, i32, i32
  }
  func.func @transform_4(%arg0: i32) -> (i32, i32) {
    %c0_i32 = arith.constant 0 : i32
    %c0_i32_0 = arith.constant 0 : i32
    %c0_i32_1 = arith.constant 0 : i32
    return %c0_i32, %c0_i32_0 : i32, i32
  }
  func.func @transform_5(%arg0: i32) -> (i32, i32) {
    %c0_i32 = arith.constant 0 : i32
    %c0_i32_0 = arith.constant 0 : i32
    %c0_i32_1 = arith.constant 0 : i32
    return %c0_i32, %c0_i32_0 : i32, i32
  }
  func.func @transform_6(%arg0: i32) -> (i32, i32) {
    %c0_i32 = arith.constant 0 : i32
    %c0_i32_0 = arith.constant 0 : i32
    %c0_i32_1 = arith.constant 0 : i32
    return %c0_i32, %c0_i32_0 : i32, i32
  }
  func.func @transform_7(%arg0: i32) -> (i32, i32) {
    %c0_i32 = arith.constant 0 : i32
    %c0_i32_0 = arith.constant 0 : i32
    %c0_i32_1 = arith.constant 0 : i32
    return %c0_i32, %c0_i32_0 : i32, i32
  }
  func.func @transform_8(%arg0: i32) -> (i32, i32) {
    %c0_i32 = arith.constant 0 : i32
    %c0_i32_0 = arith.constant 0 : i32
    %c0_i32_1 = arith.constant 0 : i32
    return %c0_i32, %c0_i32_0 : i32, i32
  }
  func.func @transform_9(%arg0: i32) -> (i32, i32, i32) {
    %c0_i32 = arith.constant 0 : i32
    %c0_i32_0 = arith.constant 0 : i32
    %c0_i32_1 = arith.constant 0 : i32
    return %arg0, %c0_i32, %c0_i32_0 : i32, i32, i32
  }
}

</mosaic_0001>

<bundles_post_ra>
// kernel: bottleneck_forward.1
= control target key start
LH: loop header
LB: loop body
LE: loop exit
PB: predicated region body
PF: predicated region fallthrough
CT: control target
= control target key end

     0   :  { %s11311_s0 = inlined_call_operand.hbm [shape: f32[2,256,32], index: 0, kind: input, shape index: {}]   ;;  %s11312_s1 = inlined_call_operand.hbm [shape: f32[32,32], index: 1, kind: input, shape index: {}]   ;;  %s11313_s2 = inlined_call_operand.vmem [shape: f32[1,32], index: 2, kind: input, shape index: {}]   ;;  %s11314_s3 = inlined_call_operand.vmem [shape: f32[9,32,32], index: 3, kind: input, shape index: {}]   ;;  %s11315_s4 = inlined_call_operand.vmem [shape: f32[1,32], index: 4, kind: input, shape index: {}]   ;;  %s11316_s5 = inlined_call_operand.hbm [shape: f32[32,128], index: 5, kind: input, shape index: {}]   ;;  %s11317_s6 = inlined_call_operand.hbm [shape: f32[32,128], index: 6, kind: input, shape index: {}]   ;;  %s11318_s7 = inlined_call_operand.vmem [shape: f32[1,128], index: 7, kind: input, shape index: {}]   ;;  %s11319_s8 = inlined_call_operand.vmem [shape: f32[256,9], index: 8, kind: input, shape index: {}]   ;;  %s11320_s9 = inlined_call_operand.hbm [shape: f32[2,256,128], index: 9, kind: output, shape index: {}]  }
   0x1   :  { %11458 = sst [smem:[#allocation114_spill]] %s11312_s1 }
   0x2   :  { %11459 = sst [smem:[#allocation115_spill]] %s11316_s5 }
   0x3   :  { %11460 = sst [smem:[#allocation116_spill]] %s11317_s6 }
   0x4   :  { %14 = vsyncpa [#allocation3], 0 }
   0x5   :  { %16 = vsyncpa [#allocation3 + $0x1], 0 }
   0x6   :  { %17 = vsyncpa [#allocation6], 0 }
   0x7   :  { %18 = vsyncpa [#allocation9], 0 }
   0x8   :  { %19 = vsyncpa [#allocation4], 0 }
   0x9   :  { %21 = vsyncpa [#allocation4 + $0x1], 0  ;;  %s8198_s30 = smov 0   ;;  %s8200_s10 = smov 0  }
   0xa   :  { %s8202_s11 = smov 0   ;;  %s8204_s12 = smov 0  }
   0xb LB: > { %s8219_s13 = sadd.s32 4294967295, %s8130_s12   ;;  %s6198_s14 = sadd.s32 4294967294, %s8130_s12   ;;  %s8130_s12 = sphi %s8204_s12, %s11826_s12   ;;  %s8126_s11 = sphi %s8202_s11, %s11825_s11   ;;  %s8122_s10 = sphi %s8200_s10, %s11824_s10   ;;  %s8118_s30 = sphi %s8198_s30, %s11823_s30  }
   0xc   : > { %p47_p0 = scmp.ne.s32.totalorder %s8122_s10, %s8118_s30  ;;  %p11321_p1 = scmp.eq.s32.totalorder %s8219_s13, 0 }
   0xd   : > { %p239_p2 = scmp.eq.s32.totalorder %s8219_s13, 1  ;;  %p245_p3 = scmp.eq.s32.totalorder %s6198_s14, 1 }
   0xe   : > { %p8228_p4 = por %p11321_p1, %p47_p0  ;;  %p6199_p5 = scmp.ge.s32.totalorder %s8130_s12, 1 }
   0xf   : > { %p8233_p6 = por %p245_p3, %p47_p0  ;;  %p252_p7 = scmp.lt.s32.totalorder %s8130_s12, 3 }
  0x10   : > { %s11461_s15 = scalar_select %p8228_p4, 1, 0 }
  0x11   : > { %s11462_s16 = scalar_select %p8233_p6, 1, 0 }
  0x12   : > { %p8238_p8 = pnand %p6199_p5, %p252_p7  ;;  %s8132_s18 = smov [#allocation5]  }
  0x13   : > { %s264_s19 = sshll.u32 %s8132_s18, 4  ;;  %s8133_s21 = smov [#allocation7]   ;;  %s265_s19 = int_to_ptr.vmem [resolvable:$true] %s264_s19 }
  0x14   : > { %s11463_s17 = scalar_select %p8238_p8, 1, 0 }
  0x15   : > { %p7759_p9 = pneg %p8238_p8  ;;  %s286_s22 = sshll.u32 %s8133_s21, 4  ;;  %s287_s22 = int_to_ptr.vmem [resolvable:$true] %s286_s22 }
  0x16   : > { %s8134_s23 = smov [#allocation8]   ;;  %s7963_s25 = scalar_lea.vmem %s265_s19, 512 }
  0x17   : > { %p8247_p11 = pnand %p7759_p9, %p11321_p1  ;;  %s299_s24 = sshll.u32 %s8134_s23, 4  ;;  %s300_s24 = int_to_ptr.vmem [resolvable:$true] %s299_s24 }
  0x18   : > { %p7964_p13 = scmp.ne.s32.totalorder %s265_s19, %s7963_s25  ;;  %p7971_p5 = scmp.lt.s32.totalorder %s265_s19, %s265_s19 }
  0x19   : > { %p7954_p12 = pneg %p8247_p11  ;;  %p7972_p7 = scmp.lt.s32.totalorder %s7963_s25, %s7963_s25 }
  0x1b   : > { %p7966_p0 = pnand %p7964_p13, %p7954_p12  ;;  %p7973_p9 = por %p7972_p7, %p7971_p5 }
  0x1d   : > { %p7967_p3 = pneg %p7966_p0 }
  0x1f   : > { %p7974_p10 = pnand %p7973_p9, %p7967_p3 }
  0x21   : > { %7977 = shalt.err (!%p7974_p10)
}
  0x22   : > { %s11322_s26 = smov 128   ;;  %s11323_s27 = smov 8  }
  0x23   : > { %s11465_s1 = sld [smem:[#allocation114_spill]]  ;;  %s7989_s14 = scalar_lea.vmem %s287_s22, 512 }
  0x24   : > { %p7990_p13 = scmp.ne.s32.totalorder %s287_s22, %s7989_s14  ;;  %p7997_p3 = scmp.lt.s32.totalorder %s287_s22, %s287_s22 }
  0x25   : > { %p7998_p10 = scmp.lt.s32.totalorder %s7989_s14, %s7989_s14 }
  0x26   : > { %p7992_p0 = pnand %p7990_p13, %p7954_p12 }
  0x27   : > { %p7999_p7 = por %p7998_p10, %p7997_p3 }
  0x28   : > { %p7993_p5 = pneg %p7992_p0 }
  0x29   : > { %7762 = dma.hbm_to_vmem [thread:$0]  (!%p8247_p11), %s11465_s1, 512, %s265_s19, [#allocation6], %s11322_s26, %s11322_s26, %s11323_s27  }
  0x2a   : > { %p8000_p9 = pnand %p7999_p7, %p7993_p5 }
  0x2c   : > { %8003 = shalt.err (!%p8000_p9)
}
  0x2d   : > { %s11466_s5 = sld [smem:[#allocation115_spill]]  ;;  %s8015_s19 = scalar_lea.vmem %s300_s24, 512 }
  0x2e   : > { %p8016_p1 = scmp.ne.s32.totalorder %s300_s24, %s8015_s19  ;;  %p8023_p3 = scmp.lt.s32.totalorder %s300_s24, %s300_s24 }
  0x2f   : > { %p8024_p5 = scmp.lt.s32.totalorder %s8015_s19, %s8015_s19 }
  0x30   : > { %p8018_p13 = pnand %p8016_p1, %p7954_p12 }
  0x31   : > { %p8025_p10 = por %p8024_p5, %p8023_p3 }
  0x32   : > { %p8019_p0 = pneg %p8018_p13 }
  0x33   : > { %7765 = dma.hbm_to_vmem [thread:$0]  (!%p8247_p11), %s11466_s5, 512, %s287_s22, [#allocation6], %s11322_s26, %s11322_s26, %s11323_s27  }
  0x34   : > { %p8026_p7 = pnand %p8025_p10, %p8019_p0 }
  0x36   : > { %8029 = shalt.err (!%p8026_p7)
}
  0x37   : > { %s11467_s6 = sld [smem:[#allocation116_spill]]  ;;  %s8287_s22 = sadd.s32 1, %s8130_s12  }
  0x38   : > { %s31_s20 = ssub.s32 %s8130_s12, %s8287_s22  ;;  %s34_s28 = sadd.s32 1, %s8126_s11 }
  0x39   : > { %p32_p1 = scmp.eq.s32.totalorder %s31_s20, 0  ;;  %p41_p12 = scmp.ne.s32.totalorder %s8126_s11, %s8122_s10 }
  0x3a   : > { %p42_p9 = scmp.eq.s32.totalorder %s8130_s12, 0  ;;  %p7780_p13 = scmp.lt.s32.totalorder %s8130_s12, 2 }
  0x3b   : > { %s8297_s29 = scalar_select %p32_p1, %s8126_s11, %s34_s28  }
  0x3c   : > { %p43_p0 = por %p42_p9, %p41_p12  ;;  %p8301_p3 = por %p239_p2, %p41_p12 }
  0x3d   : > { %7768 = dma.hbm_to_vmem [thread:$0]  (!%p8247_p11), %s11467_s6, 512, %s300_s24, [#allocation9], %s11322_s26, %s11322_s26, %s11323_s27  }
  0x3e   : > { %s11468_s14 = scalar_select %p8301_p3, 1, 0 }
  0x3f   : > { %s319_s18 = sand.u32 1, %s8126_s11   ;;  %s6637_s21 = sshll.u32 %s8130_s12, 12 }
  0x40   : > { %s6204_s24 = sshll.u32 %s319_s18, 8  ;;  %s8310_s25 = scalar_lea.hbm %s11311_s0, %s6637_s21 }
  0x41   : > { %s323_s20 = scalar_lea.vmem [#allocation2], %s6204_s24  ;;  %p8312_p11 = pnand %p7780_p13, %p43_p0 }
  0x42   : > { %s330_s28 = sshll.u32 %s323_s20, 4  ;;  %s8318_s27 = scalar_lea.sflag [#allocation3], %s319_s18  ;;  %s8316_s28 = int_to_ptr.vmem [resolvable:$true] %s330_s28 }
  0x43   : > { %s8030_s1 = scalar_lea.hbm %s8310_s25, 4096  ;;  %p8032_p5 = pneg %p8312_p11 }
  0x44   : > { %p8031_p2 = scmp.ne.s32.totalorder %s8310_s25, %s8030_s1  ;;  %s8035_s24 = scalar_lea.hbm %s11311_s0, 8192 }
  0x45   : > { %p8036_p1 = scmp.lt.s32.totalorder %s8310_s25, %s11311_s0  ;;  %p8037_p12 = scmp.lt.s32.totalorder %s8035_s24, %s8030_s1 }
  0x46   : > { %p8033_p10 = pnand %p8032_p5, %p8031_p2 }
  0x47   : > { %p8038_p9 = por %p8037_p12, %p8036_p1 }
  0x48   : > { %p8034_p7 = pneg %p8033_p10 }
  0x4a   : > { %p8039_p13 = pnand %p8038_p9, %p8034_p7 }
  0x4c   : > { %8042 = shalt.err (!%p8039_p13)
}
  0x4d   : > { %s8043_s18 = scalar_lea.vmem %s8316_s28, 4096  ;;  %s8137_s5 = smov [#allocation2]  }
  0x4e   : > { %p8044_p0 = scmp.ne.s32.totalorder %s8316_s28, %s8043_s18  ;;  %s8048_s6 = sshll.u32 %s8137_s5, 4  ;;  %s8049_s6 = int_to_ptr.vmem [resolvable:$false] %s8048_s6 }
  0x4f   : > { %s8050_s21 = scalar_lea.vmem %s8049_s6, 8192  ;;  %p8051_p10 = scmp.lt.s32.totalorder %s8316_s28, %s8049_s6 }
  0x50   : > { %p8046_p6 = pnand %p8044_p0, %p8032_p5  ;;  %p8052_p3 = scmp.lt.s32.totalorder %s8050_s21, %s8043_s18 }
  0x52   : > { %p8047_p2 = pneg %p8046_p6  ;;  %p8053_p4 = por %p8052_p3, %p8051_p10 }
  0x54   : > { %p8054_p8 = pnand %p8053_p4, %p8047_p2 }
  0x56   : > { %8057 = shalt.err (!%p8054_p8)
}
  0x57   : > { %s11470_s1 = smov 8   ;;  %s11471_s19 = smov 128  }
  0x58   : > { %7772 = dma.hbm_to_vmem [thread:$0]  (!%p8312_p11), %s8310_s25, 4096, %s8316_s28, %s8318_s27, %s11471_s19, %s11471_s19, %s11470_s1  }
  0x59   : > { %p11472_p6 = scmp.ne.s32.totalorder %s11463_s17, 0 }
  0x5b   : > { %342 = sbr.rel (%p11472_p6) target bundleno = 1160 (0x488), region = 56 }
  0x60   : > { %s8345_s5 = sand.u32 1, %s8122_s10   ;;  %p11473_p4 = scmp.ne.s32.totalorder %s11461_s15, 0 }
  0x61   : > { %s6208_s6 = sshll.u32 %s8345_s5, 8  ;;  %s345_s24 = scalar_lea.sflag [#allocation3], %s8345_s5 }
  0x62   : > { %s8351_s26 = scalar_lea.vmem [#allocation2], %s6208_s6 }
  0x63   : > { %8101 = dma.done.wait (%p11473_p4), %s345_s24, 4096  }
  0x64   : > { %8103 = vsyncadd (%p11473_p4), %s345_s24, 4294963200  ;;  %p11474_p8 = scmp.eq.s32.totalorder %s8219_s13, 0 }
  0x66   : > { %8105 = dma.done.wait (%p11474_p8), [#allocation6], 1024   ;;  %p11475_p3 = pmov %p11474_p8 }
  0x68   : > { %8107 = vsyncadd (%p11475_p3), [#allocation6], 4294966272  ;;  %p11476_p11 = pmov %p11475_p3 }
  0x69   : > { %p11477_p5 = pmov %p11475_p3 }
  0x6a   : > { %8109 = dma.done.wait (%p11476_p11), [#allocation9], 512  }
  0x6b   : > { %8111 = vsyncadd (%p11477_p5), [#allocation9], 4294966784  ;;  %v8138_v0 = vmov 2   ;;  %v8139_v1 = vmov 0   ;;  %v8370_v2 = vld [vmem:[%s11319_s8 + $0x10] sm:$0xff]  ;;  %v8375_v3 = vld [vmem:[%s11319_s8] sm:$0xff] }
  0x6c   : > { %7832 = vset.pattern.permute.xlu0 %v8138_v0  ;;  %7831 = vset.pattern.permute.xlu1 %v8139_v1  ;;  %v430_v4 = vld [vmem:[#allocation5 + $0x18] sm:$0xff]  ;;  %vm438_vm0 = vcmask 261120   ;;  %v429_v5 = vld [vmem:[#allocation5 + $0x10] sm:$0xff]  ;;  %v395_v7 = vld [vmem:[%s8351_s26] sm:$0xff]  ;;  %vm824_vm1 = vcmask 1040384   ;;  %vm1158_vm2 = vcmask 1046528  }
  0x6d   : > { %967 = vperm.xlu1 %7831, %v8370_v2   ;;  %1834 = vperm.xlu0 %7832, %v8375_v3   ;;  %v8382_v6 = vld [vmem:[%s11319_s8 + $0x18] sm:$0xff]  ;;  %v428_v8 = vld [vmem:[#allocation5 + $0x8] sm:$0xff]  ;;  %v427_v9 = vld [vmem:[#allocation5] sm:$0xff]  ;;  %vm1929_vm3 = vcmask 1041408   ;;  %vm2097_vm4 = vcmask 1045504   ;;  %s11178_s23 = scalar_lea.vmem [#allocation10], %s6208_s6 }
  0x6e   : > { %7071 = vmatprep.subr.mxu0 %v430_v4  ;;  %7079 = vmatprep.mubr.msk.f32.mxu0 %vm438_vm0, %v395_v7  ;;  %v8391_v10 = vld [vmem:[%s11319_s8 + $0x28] sm:$0xff]  ;;  %v397_v12 = vld [vmem:[%s8351_s26 + $0x10] sm:$0xff]  ;;  %v8401_v13 = vld [vmem:[%s11319_s8 + $0x38] sm:$0xff]  ;;  %s6638_s6 = sshll.u32 %s8219_s13, 12  ;;  %s6096_s20 = sshll.u32 %s11178_s23, 4  ;;  %s11266_s20 = int_to_ptr.vmem [resolvable:$true] %s6096_s20 }
  0x6f   : > { %7072 = vmatpush3.msra.mxu0 %v430_v4  ;;  %v396_v11 = vld [vmem:[%s8351_s26 + $0x8] sm:$0xff]  ;;  %v398_v14 = vld [vmem:[%s8351_s26 + $0x18] sm:$0xff]  ;;  %v399_v15 = vld [vmem:[%s8351_s26 + $0x20] sm:$0xff]  ;;  %s11264_s1 = scalar_lea.hbm %s11320_s9, %s6638_s6  ;;  %s6083_s19 = scalar_lea.sflag [#allocation4], %s8345_s5 }
  0x70   : > { %7073 = vmatprep.subr.mxu0 %v429_v5  ;;  %v8412_v16 = vld [vmem:[%s11319_s8 + $0x48] sm:$0xff]  ;;  %v401_v18 = vld [vmem:[%s8351_s26 + $0x30] sm:$0xff]  ;;  %v8424_v19 = vld [vmem:[%s11319_s8 + $0x58] sm:$0xff]  ;;  %s8058_s13 = scalar_lea.vmem %s11266_s20, 4096  ;;  %p11820_p1 = scmp.ne.s32.totalorder %s11468_s14, 0 }
  0x71   : > { %7074 = vmatpush3.msra.mxu0 %v429_v5  ;;  %972 = vperm.xlu1 %7831, %v8382_v6   ;;  %v400_v17 = vld [vmem:[%s8351_s26 + $0x28] sm:$0xff]  ;;  %v402_v20 = vld [vmem:[%s8351_s26 + $0x38] sm:$0xff]  ;;  %v403_v22 = vld [vmem:[%s8351_s26 + $0x40] sm:$0xff]  ;;  %p8059_p7 = scmp.ne.s32.totalorder %s11266_s20, %s8058_s13  ;;  %s8145_s24 = smov [#allocation10]  }
  0x72   : > { %1843 = vperm.xlu0 %7832, %v8382_v6   ;;  %7075 = vmatprep.subr.mxu0 %v428_v8  ;;  %v8430_v21 = vld [vmem:[%s11319_s8 + $0x8] sm:$0xff]  ;;  %v8441_v23 = vld [vmem:[%s11319_s8 + $0x70] sm:$0xff]  ;;  %v406_v27 = vld [vmem:[%s8351_s26 + $0x58] sm:$0xff]  ;;  %s8062_s15 = sshll.u32 %s8145_s24, 4  ;;  %s8063_s15 = int_to_ptr.vmem [resolvable:$false] %s8062_s15 }
  0x73   : > { %7076 = vmatpush3.msra.mxu0 %v428_v8  ;;  %v404_v24 = vld [vmem:[%s8351_s26 + $0x48] sm:$0xff]  ;;  %v405_v25 = vld [vmem:[%s8351_s26 + $0x50] sm:$0xff]  ;;  %v8458_v28 = vld [vmem:[%s11319_s8 + $0x20] sm:$0xff]  ;;  %p8060_p12 = pnand %p8059_p7, %p11820_p1  ;;  %s8064_s17 = scalar_lea.vmem %s8063_s15, 8192 }
  0x74   : > { %7077 = vmatprep.subr.mxu0 %v427_v9  ;;  %v8452_v26 = vld [vmem:[%s11319_s8 + $0x88] sm:$0xff]  ;;  %v407_v29 = vld [vmem:[%s8351_s26 + $0x60] sm:$0xff]  ;;  %v8474_v32 = vld [vmem:[%s11319_s8 + $0x30] sm:$0xff]  ;;  %p8065_p13 = scmp.lt.s32.totalorder %s11266_s20, %s8063_s15  ;;  %p8066_p0 = scmp.lt.s32.totalorder %s8064_s17, %s8058_s13 }
  0x75   : > { %7078 = vmatpush3.msra.mxu0 %v427_v9  ;;  %982 = vperm.xlu1 %7831, %v8391_v10   ;;  %v8468_v30 = vld [vmem:[%s11319_s8 + $0xa0] sm:$0xff]  ;;  %v408_v31 = vld [vmem:[%s8351_s26 + $0x68] sm:$0xff]  ;;  %v409_v33 = vld [vmem:[%s8351_s26 + $0x70] sm:$0xff]  ;;  %p8061_p9 = pneg %p8060_p12 }
  0x76   : > { %1849 = vperm.xlu0 %7832, %v8391_v10   ;;  %7080 = vmatmul.mubr.msk.f32.vlgmr.msra.gmra.mxu0 %vm438_vm0, %v396_v11  ;;  %v8484_v34 = vld [vmem:[%s11319_s8 + $0xb8] sm:$0xff]  ;;  %v8490_v36 = vld [vmem:[%s11319_s8 + $0x40] sm:$0xff]  ;;  %v8500_v38 = vld [vmem:[%s11319_s8 + $0xd0] sm:$0xff]  ;;  %p8067_p2 = por %p8066_p0, %p8065_p13 }
  0x77   : > { %7082 = vmatprep.mubr.msk.f32.mxu0 %vm438_vm0, %v397_v12  ;;  %v410_v35 = vld [vmem:[%s8351_s26 + $0x78] sm:$0xff]  ;;  %v411_v37 = vld [vmem:[%s8351_s26 + $0x80] sm:$0xff]  ;;  %v412_v39 = vld [vmem:[%s8351_s26 + $0x88] sm:$0xff] }
  0x78   : > { %v8506_v40 = vld [vmem:[%s11319_s8 + $0x50] sm:$0xff]  ;;  %v8516_v42 = vld [vmem:[%s11319_s8 + $0xe8] sm:$0xff]  ;;  %v414_v43 = vld [vmem:[%s8351_s26 + $0x98] sm:$0xff]  ;;  %p8068_p10 = pnand %p8067_p2, %p8061_p9 }
  0x79   : > { %992 = vperm.xlu1 %7831, %v8401_v13   ;;  %v413_v41 = vld [vmem:[%s8351_s26 + $0x90] sm:$0xff]  ;;  %v8522_v44 = vld [vmem:[%s11319_s8 + $0x60] sm:$0xff]  ;;  %v416_v46 = vld [vmem:[%s8351_s26 + $0xa8] sm:$0xff] }
  0x7a   : > { %1855 = vperm.xlu0 %7832, %v8401_v13   ;;  %7083 = vmatmul.mubr.msk.f32.gmra.mxu0 %vm438_vm0, %v398_v14  ;;  %v415_v45 = vld [vmem:[%s8351_s26 + $0xa0] sm:$0xff]  ;;  %v8533_v47 = vld [vmem:[%s11319_s8 + $0x68] sm:$0xff]  ;;  %v417_v48 = vld [vmem:[%s8351_s26 + $0xb0] sm:$0xff]  ;;  %v8140_v14 = vmov 0.0  }
  0x7b   : > { %7085 = vmatprep.mubr.msk.f32.mxu0 %vm438_vm0, %v399_v15  ;;  %v418_v49 = vld [vmem:[%s8351_s26 + $0xb8] sm:$0xff]  ;;  %v419_v50 = vld [vmem:[%s8351_s26 + $0xc0] sm:$0xff]  ;;  %v420_v51 = vld [vmem:[%s8351_s26 + $0xc8] sm:$0xff]  ;;  %v8627_v15 = vrot.slane %v8140_v14, 1 }
  0x7c   : > { %v421_v52 = vld [vmem:[%s8351_s26 + $0xd0] sm:$0xff]  ;;  %v422_v53 = vld [vmem:[%s8351_s26 + $0xd8] sm:$0xff]  ;;  %v423_v54 = vld [vmem:[%s8351_s26 + $0xe0] sm:$0xff] }
  0x7d   : > { %1002 = vperm.xlu1 %7831, %v8412_v16   ;;  %v8560_v55 = vld [vmem:[%s11319_s8 + $0x78] sm:$0xff]  ;;  %v424_v56 = vld [vmem:[%s8351_s26 + $0xe8] sm:$0xff]  ;;  %v425_v57 = vld [vmem:[%s8351_s26 + $0xf0] sm:$0xff]  ;;  %11478 = vst [vmem:[#allocation15_spill] sm:$0xff] %v8627_v15  ;;  %7135 = vmatprep.mubr.msk.f32.mxu1 %vm438_vm0, %v8627_v15 }
  0x7e   : > { %1861 = vperm.xlu0 %7832, %v8412_v16   ;;  %7086 = vmatmul.mubr.msk.f32.gmra.mxu0 %vm438_vm0, %v400_v17  ;;  %v8572_v58 = vld [vmem:[%s11319_s8 + $0x80] sm:$0xff]  ;;  %v426_v59 = vld [vmem:[%s8351_s26 + $0xf8] sm:$0xff]  ;;  %v1149_v61 = vld [vmem:[%s11314_s3 + $0x10] sm:$0xff] }
  0x7f   : > { %7088 = vmatprep.mubr.msk.f32.mxu0 %vm438_vm0, %v401_v18  ;;  %v1150_v60 = vld [vmem:[%s11314_s3 + $0x18] sm:$0xff]  ;;  %v1148_v63 = vld [vmem:[%s11314_s3 + $0x8] sm:$0xff]  ;;  %v8600_v4 = vld [vmem:[%s11319_s8 + $0x90] sm:$0xff] }
  0x80   : > { %7183 = vmatprep.subr.mxu0 %v1150_v60  ;;  %v6249_v62 = vld [vmem:[%s11314_s3 + $0x38] sm:$0xff]  ;;  %v6248_v7 = vld [vmem:[%s11314_s3 + $0x30] sm:$0xff]  ;;  %v1147_v8 = vld [vmem:[%s11314_s3] sm:$0xff] }
  0x81   : > { %7833 = vset.pattern.permute.xlu1 %v8138_v0  ;;  %7184 = vmatpush3.msra.mxu0 %v1150_v60  ;;  %v8605_v5 = vld [vmem:[%s11319_s8 + $0x98] sm:$0xff]  ;;  %v6247_v9 = vld [vmem:[%s11314_s3 + $0x28] sm:$0xff]  ;;  %v8622_v11 = vld [vmem:[%s11319_s8 + $0xb0] sm:$0xff] }
  0x82   : > { %1867 = vperm.xlu0 %7832, %v8424_v19   ;;  %7089 = vmatmul.mubr.msk.f32.gmra.mxu0 %vm438_vm0, %v402_v20  ;;  %v6246_v12 = vld [vmem:[%s11314_s3 + $0x20] sm:$0xff]  ;;  %v8634_v17 = vld [vmem:[%s11319_s8 + $0xc8] sm:$0xff]  ;;  %v8651_v20 = vld [vmem:[%s11319_s8 + $0xf0] sm:$0xff] }
  0x83   : > { %1837 = vperm.xlu1 %7833, %v8430_v21   ;;  %7091 = vmatprep.mubr.msk.f32.mxu0 %vm438_vm0, %v403_v22  ;;  %v8644_v18 = vld [vmem:[%s11319_s8 + $0xe0] sm:$0xff]  ;;  %v944_v22 = vld [vmem:[%s11319_s8 + $0xa8] sm:$0xff]  ;;  %v6353_v60 = vld [vmem:[%s11314_s3 + $0x78] sm:$0xff] }
  0x84   : > { %7185 = vmatprep.subr.mxu0 %v1149_v61  ;;  %7127 = vmatprep.subr.mxu1 %v6249_v62 }
  0x85   : > { %7186 = vmatpush3.msra.mxu0 %v1149_v61  ;;  %7128 = vmatpush3.msra.mxu1 %v6249_v62  ;;  %v11327_v61 = vmov 6  }
  0x86   : > { %1876 = vperm.xlu0 %7832, %v8441_v23   ;;  %7092 = vmatmul.mubr.msk.f32.gmra.mxu0 %vm438_vm0, %v404_v24  ;;  %v11329_v24 = vmov 3  }
  0x87   : > { %1840 = vperm.xlu1 %7833, %v8370_v2   ;;  %7094 = vmatprep.mubr.msk.f32.mxu0 %vm438_vm0, %v405_v25  ;;  %v8669_v25 = vld [vmem:[%s11319_s8 + $0xc0] sm:$0xff] }
  0x88   : > { %7187 = vmatprep.subr.mxu0 %v1148_v63  ;;  %7129 = vmatprep.subr.mxu1 %v6248_v7 }
  0x89   : > { %7188 = vmatpush3.msra.mxu0 %v1148_v63  ;;  %7130 = vmatpush3.msra.mxu1 %v6248_v7 }
  0x8a   : > { %1885 = vperm.xlu0 %7832, %v8452_v26   ;;  %7095 = vmatmul.mubr.msk.f32.gmra.mxu0 %vm438_vm0, %v406_v27 }
  0x8b   : > { %1846 = vperm.xlu1 %7833, %v8458_v28   ;;  %7097 = vmatprep.mubr.msk.f32.mxu0 %vm438_vm0, %v407_v29 }
  0x8c   : > { %7189 = vmatprep.subr.mxu0 %v1147_v8  ;;  %7131 = vmatprep.subr.mxu1 %v6247_v9 }
  0x8d   : > { %7190 = vmatpush3.msra.mxu0 %v1147_v8  ;;  %7132 = vmatpush3.msra.mxu1 %v6247_v9 }
  0x8e   : > { %1894 = vperm.xlu0 %7832, %v8468_v30   ;;  %7098 = vmatmul.mubr.msk.f32.gmra.mxu0 %vm438_vm0, %v408_v31 }
  0x8f   : > { %1852 = vperm.xlu1 %7833, %v8474_v32   ;;  %7100 = vmatprep.mubr.msk.f32.mxu0 %vm438_vm0, %v409_v33 }
  0x90   : > { %7133 = vmatprep.subr.mxu1 %v6246_v12  ;;  %7295 = vmatprep.subr.mxu0 %v6353_v60 }
  0x91   : > { %7134 = vmatpush3.msra.mxu1 %v6246_v12 }
  0x92   : > { %1903 = vperm.xlu0 %7832, %v8484_v34   ;;  %7101 = vmatmul.mubr.msk.f32.gmra.mxu0 %vm438_vm0, %v410_v35  ;;  %v8696_v35 = vld [vmem:[%s11319_s8 + $0xd8] sm:$0xff] }
  0x93   : > { %1858 = vperm.xlu1 %7833, %v8490_v36   ;;  %7103 = vmatprep.mubr.msk.f32.mxu0 %vm438_vm0, %v411_v37 }
  0x96   : > { %1912 = vperm.xlu0 %7832, %v8500_v38   ;;  %7104 = vmatmul.mubr.msk.f32.gmra.mxu0 %vm438_vm0, %v412_v39 }
  0x97   : > { %1864 = vperm.xlu1 %7833, %v8506_v40   ;;  %7106 = vmatprep.mubr.msk.f32.mxu0 %vm438_vm0, %v413_v41 }
  0x9a   : > { %1921 = vperm.xlu0 %7832, %v8516_v42   ;;  %7107 = vmatmul.mubr.msk.f32.gmra.mxu0 %vm438_vm0, %v414_v43 }
  0x9b   : > { %1870 = vperm.xlu1 %7833, %v8522_v44   ;;  %7109 = vmatprep.mubr.msk.f32.mxu0 %vm438_vm0, %v415_v45  ;;  %v8714_v45 = vld [vmem:[%s11314_s3 + $0x58] sm:$0xff] }
  0x9c   : > { %7239 = vmatprep.subr.mxu1 %v8714_v45 }
  0x9e   : > { %7845 = vset.pattern.permute.xlu0 %v8139_v1  ;;  %7110 = vmatmul.mubr.msk.f32.gmra.mxu0 %vm438_vm0, %v416_v46 }
  0x9f   : > { %1873 = vperm.xlu1 %7833, %v8533_v47   ;;  %957 = vperm.xlu0 %7845, %v8375_v3  }
  0xa0   : > { %7112 = vmatprep.mubr.msk.f32.mxu0 %vm438_vm0, %v417_v48 }
  0xa2   : > { %7113 = vmatmul.mubr.msk.f32.gmra.mxu0 %vm438_vm0, %v418_v49 }
  0xa3   : > { %7834 = vset.pattern.permute.xlu1 %v8139_v1  ;;  %962 = vperm.xlu0 %7845, %v8430_v21  }
  0xa4   : > { %1012 = vperm.xlu1 %7834, %v8424_v19   ;;  %7115 = vmatprep.mubr.msk.f32.mxu0 %vm438_vm0, %v419_v50 }
  0xa6   : > { %7116 = vmatmul.mubr.msk.f32.gmra.mxu0 %vm438_vm0, %v420_v51 }
  0xa7   : > { %977 = vperm.xlu0 %7845, %v8458_v28   ;;  %7118 = vmatprep.mubr.msk.f32.mxu0 %vm438_vm0, %v421_v52 }
  0xa8   : > { %1017 = vperm.xlu1 %7834, %v8522_v44  }
  0xaa   : > { %7119 = vmatmul.mubr.msk.f32.gmra.mxu0 %vm438_vm0, %v422_v53  ;;  %v8740_v53 = vld [vmem:[%s11319_s8 + $0xf8] sm:$0xff] }
  0xab   : > { %987 = vperm.xlu0 %7845, %v8474_v32   ;;  %7121 = vmatprep.mubr.msk.f32.mxu0 %vm438_vm0, %v423_v54 }
  0xac   : > { %7835 = vset.pattern.permute.xlu1 %v8138_v0 }
  0xad   : > { %1879 = vperm.xlu1 %7835, %v8560_v55  }
  0xae   : > { %7122 = vmatmul.mubr.msk.f32.gmra.mxu0 %vm438_vm0, %v424_v56 }
  0xaf   : > { %997 = vperm.xlu0 %7845, %v8490_v36   ;;  %7124 = vmatprep.mubr.msk.f32.mxu0 %vm438_vm0, %v425_v57 }
  0xb1   : > { %1882 = vperm.xlu1 %7835, %v8572_v58  }
  0xb2   : > { %7125 = vmatmul.mubr.msk.f32.gmra.mxu0 %vm438_vm0, %v426_v59 }
  0xb3   : > { %1007 = vperm.xlu0 %7845, %v8506_v40  }
  0xb5   : > { %7836 = vset.pattern.permute.xlu1 %v8139_v1 }
  0xb6   : > { %1027 = vperm.xlu1 %7836, %v8441_v23  }
  0xb7   : > { %1022 = vperm.xlu0 %7845, %v8533_v47  }
  0xba   : > { %1032 = vperm.xlu1 %7836, %v8560_v55  }
  0xbb   : > { %1037 = vperm.xlu0 %7845, %v8572_v58  }
  0xbe   : > { %7837 = vset.pattern.permute.xlu1 %v8138_v0 }
  0xbf   : > { %1888 = vperm.xlu1 %7837, %v8600_v4   ;;  %1052 = vperm.xlu0 %7845, %v8605_v5  }
  0xc3   : > { %1891 = vperm.xlu1 %7837, %v8605_v5   ;;  %1067 = vperm.xlu0 %7845, %v8622_v11  }
  0xc7   : > { %7838 = vset.pattern.permute.xlu1 %v8139_v1  ;;  %1082 = vperm.xlu0 %7845, %v8634_v17  }
  0xc8   : > { %1042 = vperm.xlu1 %7838, %v8452_v26  }
  0xcb   : > { %1097 = vperm.xlu0 %7845, %v8644_v18  }
  0xcc   : > { %1047 = vperm.xlu1 %7838, %v8600_v4  }
  0xcf   : > { %1107 = vperm.xlu0 %7845, %v8651_v20  }
  0xd0   : > { %7839 = vset.pattern.permute.xlu1 %v8138_v0 }
  0xd1   : > { %1897 = vperm.xlu1 %7839, %v944_v22  }
  0xd3   : > { %7848 = vset.pattern.permute.xlu0 %v11329_v24 }
  0xd4   : > { %2485 = vperm.xlu0 %7848, %v8375_v3  }
  0xd5   : > { %1900 = vperm.xlu1 %7839, %v8622_v11  }
  0xd8   : > { %2497 = vperm.xlu0 %7848, %v8382_v6  }
  0xd9   : > { %7840 = vset.pattern.permute.xlu1 %v8139_v1 }
  0xda   : > { %1057 = vperm.xlu1 %7840, %v8468_v30  }
  0xdc   : > { %2505 = vperm.xlu0 %7848, %v8391_v10  }
  0xde   : > { %1062 = vperm.xlu1 %7840, %v944_v22  }
  0xe0   : > { %2513 = vperm.xlu0 %7848, %v8401_v13  }
  0xe2   : > { %7841 = vset.pattern.permute.xlu1 %v8138_v0 }
  0xe3   : > { %1906 = vperm.xlu1 %7841, %v8669_v25  }
  0xe4   : > { %2521 = vperm.xlu0 %7848, %v8412_v16  }
  0xe7   : > { %1909 = vperm.xlu1 %7841, %v8634_v17  }
  0xe8   : > { %2529 = vperm.xlu0 %7848, %v8424_v19   ;;  %v8676_v6 = vpop.permute.xlu1 %967  ;;  %v8678_v27 = vpop.permute.xlu0 %1834 }
  0xeb   : > { %7842 = vset.pattern.permute.xlu1 %v8139_v1 }
  0xec   : > { %1072 = vperm.xlu1 %7842, %v8484_v34   ;;  %2537 = vperm.xlu0 %7848, %v8533_v47   ;;  %v8683_v29 = vpop.permute.xlu1 %972 }
  0xed   : > { %v8685_v31 = vpop.permute.xlu0 %1843 }
  0xf0   : > { %1077 = vperm.xlu1 %7842, %v8669_v25   ;;  %2545 = vperm.xlu0 %7848, %v8560_v55   ;;  %v8689_v16 = vpop.permute.xlu1 %982 }
  0xf1   : > { %v8691_v33 = vpop.permute.xlu0 %1849 }
  0xf4   : > { %7843 = vset.pattern.permute.xlu1 %v8138_v0  ;;  %2553 = vperm.xlu0 %7848, %v8452_v26   ;;  %v8700_v37 = vpop.permute.xlu1 %992 }
  0xf5   : > { %1915 = vperm.xlu1 %7843, %v8696_v35   ;;  %v8703_v39 = vpop.permute.xlu0 %1855 }
  0xf8   : > { %2561 = vperm.xlu0 %7848, %v8605_v5   ;;  %v8706_v41 = vpop.permute.xlu1 %1002 }
  0xf9   : > { %1918 = vperm.xlu1 %7843, %v8644_v18   ;;  %v8709_v43 = vpop.permute.xlu0 %1861 }
  0xfc   : > { %2569 = vperm.xlu0 %7848, %v944_v22   ;;  %v6352_v22 = vld [vmem:[%s11314_s3 + $0x70] sm:$0xff] }
  0xfd   : > { %7844 = vset.pattern.permute.xlu1 %v8139_v1  ;;  %v8717_v46 = vpop.permute.xlu0 %1867 }
  0xfe   : > { %11479 = vst [vmem:[#allocation16_spill] sm:$0xff] %v8717_v46  ;;  %1087 = vperm.xlu1 %7844, %v8500_v38   ;;  %v8721_v48 = vpop.permute.xlu1 %1837 }
 0x100   : > { %2577 = vperm.xlu0 %7848, %v8484_v34  }
 0x101   : > { %v8724_v49 = vpop.permute.xlu0 %1876 }
 0x102   : > { %11480 = vst [vmem:[#allocation17_spill] sm:$0xff] %v8724_v49  ;;  %1092 = vperm.xlu1 %7844, %v8696_v35   ;;  %v8727_v50 = vpop.permute.xlu1 %1840 }
 0x104   : > { %2585 = vperm.xlu0 %7848, %v8634_v17  }
 0x105   : > { %v8730_v51 = vpop.permute.xlu0 %1885 }
 0x106   : > { %11481 = vst [vmem:[#allocation18_spill] sm:$0xff] %v8730_v51  ;;  %7846 = vset.pattern.permute.xlu1 %v8138_v0  ;;  %v8733_v52 = vpop.permute.xlu1 %1846 }
 0x107   : > { %1924 = vperm.xlu1 %7846, %v8651_v20  }
 0x108   : > { %2593 = vperm.xlu0 %7848, %v8696_v35  }
 0x109   : > { %v8742_v54 = vpop.permute.xlu0 %1894 }
 0x10a   : > { %11482 = vst [vmem:[#allocation19_spill] sm:$0xff] %v8742_v54  ;;  %v8744_v55 = vpop.permute.xlu1 %1852 }
 0x10b   : > { %1927 = vperm.xlu1 %7846, %v8740_v53  }
 0x10c   : > { %2601 = vperm.xlu0 %7848, %v8516_v42  }
 0x10d   : > { %v8748_v0 = vpop.permute.xlu0 %1903 }
 0x10e   : > { %11483 = vst [vmem:[#allocation20_spill] sm:$0xff] %v8748_v0  ;;  %v8750_v56 = vpop.permute.xlu1 %1858 }
 0x10f   : > { %7847 = vset.pattern.permute.xlu1 %v8139_v1 }
 0x110   : > { %1102 = vperm.xlu1 %7847, %v8516_v42   ;;  %2609 = vperm.xlu0 %7848, %v8740_v53  }
 0x111   : > { %v8755_v57 = vpop.permute.xlu0 %1912 }
 0x112   : > { %11484 = vst [vmem:[#allocation21_spill] sm:$0xff] %v8755_v57  ;;  %v8757_v59 = vpop.permute.xlu1 %1864 }
 0x113   : > { %11485 = vst [vmem:[#allocation22_spill] sm:$0xff] %v8757_v59 }
 0x114   : > { %1112 = vperm.xlu1 %7847, %v8740_v53   ;;  %7855 = vset.pattern.permute.xlu0 %v11327_v61 }
 0x115   : > { %3927 = vperm.xlu0 %7855, %v8430_v21   ;;  %v8765_v1 = vpop.permute.xlu0 %1921 }
 0x116   : > { %11486 = vst [vmem:[#allocation23_spill] sm:$0xff] %v8765_v1  ;;  %v8767_v62 = vpop.permute.xlu1 %1870 }
 0x117   : > { %11487 = vst [vmem:[#allocation24_spill] sm:$0xff] %v8767_v62 }
 0x118   : > { %7849 = vset.pattern.permute.xlu1 %v11329_v24 }
 0x119   : > { %2489 = vperm.xlu1 %7849, %v8430_v21   ;;  %3939 = vperm.xlu0 %7855, %v8458_v28  }
 0x11a   : > { %v8772_v63 = vpop.permute.xlu1 %1873  ;;  %v958_v7 = vpop.permute.xlu0 %957 }
 0x11b   : > { %11488 = vst [vmem:[#allocation25_spill] sm:$0xff] %v8772_v63  ;;  %v1115_v8 = vmul.f32 0.0, %v958_v7 }
 0x11d   : > { %2493 = vperm.xlu1 %7849, %v8370_v2   ;;  %3951 = vperm.xlu0 %7855, %v8401_v13   ;;  %v6351_v13 = vld [vmem:[%s11314_s3 + $0x68] sm:$0xff] }
 0x11e   : > { %v963_v9 = vpop.permute.xlu0 %962  ;;  %7191 = vmatprep.mubr.msk.f32.mxu0 %vm438_vm0, %v1115_v8  ;;  %v6350_v8 = vld [vmem:[%s11314_s3 + $0x60] sm:$0xff] }
 0x11f   : > { %v8777_v12 = vpop.permute.xlu1 %1012  ;;  %v1116_v14 = vmul.f32 0.0, %v963_v9 }
 0x121   : > { %2501 = vperm.xlu1 %7849, %v8458_v28   ;;  %3963 = vperm.xlu0 %7855, %v8506_v40  }
 0x122   : > { %v8784_v61 = vpop.permute.xlu0 %977  ;;  %7192 = vmatmul.mubr.msk.f32.vlgmr.msra.gmra.mxu0 %vm438_vm0, %v1116_v14 }
 0x123   : > { %v8787_v7 = vpop.permute.xlu1 %1017  ;;  %7296 = vmatpush3.msra.mxu0 %v6353_v60 }
 0x124   : > { %7297 = vmatprep.subr.mxu0 %v6352_v22 }
 0x125   : > { %2509 = vperm.xlu1 %7849, %v8474_v32   ;;  %3975 = vperm.xlu0 %7855, %v8533_v47  }
 0x126   : > { %v8794_v28 = vpop.permute.xlu0 %987  ;;  %7298 = vmatpush3.msra.mxu0 %v6352_v22  ;;  %v11330_v22 = vmov 5  }
 0x127   : > { %7299 = vmatprep.subr.mxu0 %v6351_v13 }
 0x128   : > { %v8799_v9 = vpop.permute.xlu1 %1879  ;;  %7300 = vmatpush3.msra.mxu0 %v6351_v13 }
 0x129   : > { %11489 = vst [vmem:[#allocation26_spill] sm:$0xff] %v8799_v9  ;;  %2517 = vperm.xlu1 %7849, %v8490_v36   ;;  %3987 = vperm.xlu0 %7855, %v8572_v58  }
 0x12a   : > { %v8803_v60 = vpop.permute.xlu0 %997  ;;  %7301 = vmatprep.subr.mxu0 %v6350_v8 }
 0x12b   : > { %7302 = vmatpush3.msra.mxu0 %v6350_v8  ;;  %v8821_v8 = vld [vmem:[%s11313_s2] ss:$0 sm:$0xff] }
 0x12c   : > { %v8805_v32 = vpop.permute.xlu1 %1882 }
 0x12d   : > { %11490 = vst [vmem:[#allocation27_spill] sm:$0xff] %v8805_v32  ;;  %2525 = vperm.xlu1 %7849, %v8506_v40   ;;  %3999 = vperm.xlu0 %7855, %v8605_v5  }
 0x12e   : > { %v8809_v47 = vpop.permute.xlu0 %1007 }
 0x131   : > { %2533 = vperm.xlu1 %7849, %v8522_v44   ;;  %v8812_v14 = vpop.permute.xlu1 %1027  ;;  %7868 = vset.pattern.permute.xlu0 %v11330_v22 }
 0x132   : > { %3277 = vperm.xlu0 %7868, %v8430_v21   ;;  %v8816_v13 = vpop.permute.xlu0 %1022 }
 0x135   : > { %2541 = vperm.xlu1 %7849, %v8441_v23   ;;  %v8824_v40 = vpop.permute.xlu1 %1032 }
 0x136   : > { %3289 = vperm.xlu0 %7868, %v8391_v10   ;;  %v7081_v44 = vpop.f32.mrf.mxu0  ;;  %v8827_v5 = vpop.permute.xlu0 %1037 }
 0x137   : > { %v607_v24 = vadd.f32 %v7081_v44, %v8821_v8 }
 0x138   : > { %v601_v22 = vpop.f32.mrf.mxu0 }
 0x139   : > { %v761_v1 = vmax.f32 %v607_v24, 0.0  ;;  %v602_v57 = vadd.f32 %v8821_v8, %v601_v22  ;;  %2549 = vperm.xlu1 %7849, %v8572_v58  }
 0x13a   : > { %v8832_v0 = vpop.permute.xlu1 %1888  ;;  %3298 = vperm.xlu0 %7868, %v8490_v36   ;;  %v7084_v54 = vpop.f32.mrf.mxu0 }
 0x13b   : > { %11491 = vst [vmem:[#allocation28_spill] sm:$0xff] %v8832_v0  ;;  %v826_v32 = vrot.slane %v761_v1, 7  ;;  %v760_v51 = vmax.f32 %v602_v57, 0.0  ;;  %v617_v10 = vadd.f32 %v7084_v54, %v8821_v8  ;;  %v8836_v9 = vpop.permute.xlu0 %1052 }
 0x13c   : > { %v611_v49 = vpop.f32.mrf.mxu0 }
 0x13d   : > { %v825_v44 = vrot.slane %v760_v51, 7  ;;  %v763_v63 = vmax.f32 %v617_v10, 0.0  ;;  %v612_v24 = vadd.f32 %v8821_v8, %v611_v49  ;;  %2557 = vperm.xlu1 %7849, %v8600_v4  }
 0x13e   : > { %v8840_v58 = vpop.permute.xlu1 %1891  ;;  %3307 = vperm.xlu0 %7868, %v8424_v19   ;;  %v7087_v36 = vpop.f32.mrf.mxu0 }
 0x13f   : > { %11492 = vst [vmem:[#allocation29_spill] sm:$0xff] %v8840_v58  ;;  %v8844_v1 = vsel %vm824_vm1, %v825_v44, %v826_v32  ;;  %v8847_v54 = vsel %vm824_vm1, 0.0, %v825_v44  ;;  %v830_v57 = vrot.slane %v763_v63, 7  ;;  %v762_v22 = vmax.f32 %v612_v24, 0.0  ;;  %v8849_v0 = vpop.permute.xlu0 %1067 }
 0x140   : > { %v627_v51 = vadd.f32 %v7087_v36, %v8821_v8  ;;  %v621_v49 = vpop.f32.mrf.mxu0  ;;  %v1117_v4 = vmul.f32 %v8676_v6, %v8847_v54  ;;  %v1161_v58 = vrot.slane %v8847_v54, 1  ;;  %v1118_v63 = vmul.f32 %v8683_v29, %v8844_v1 }
 0x141   : > { %v828_v10 = vrot.slane %v762_v22, 7  ;;  %v622_v19 = vadd.f32 %v8821_v8, %v621_v49  ;;  %2565 = vperm.xlu1 %7849, %v8468_v30  }
 0x142   : > { %v765_v44 = vmax.f32 %v627_v51, 0.0  ;;  %3316 = vperm.xlu0 %7868, %v8441_v23   ;;  %v7090_v24 = vpop.f32.mrf.mxu0  ;;  %7194 = vmatprep.mubr.msk.f32.mxu0 %vm438_vm0, %v1117_v4  ;;  %v1162_v23 = vsel %vm1158_vm2, %v8627_v15, %v1161_v58 }
 0x143   : > { %v8862_v36 = vsel %vm824_vm1, %v826_v32, %v828_v10  ;;  %v8865_v6 = vsel %vm824_vm1, %v828_v10, %v830_v57  ;;  %v764_v22 = vmax.f32 %v622_v19, 0.0  ;;  %v637_v49 = vadd.f32 %v7090_v24, %v8821_v8  ;;  %v8868_v62 = vpop.permute.xlu1 %1042  ;;  %7195 = vmatmul.mubr.msk.f32.gmra.mxu0 %vm438_vm0, %v1118_v63  ;;  %v8871_v29 = vpop.permute.xlu0 %1082  ;;  %7136 = vmatmul.mubr.msk.f32.vlgmr.msra.gmra.mxu1 %vm438_vm0, %v1162_v23 }
 0x144   : > { %11493 = vst [vmem:[#allocation30_spill] sm:$0xff] %v8862_v36  ;;  %11494 = vst [vmem:[#allocation31_spill] sm:$0xff] %v8865_v6  ;;  %v834_v51 = vrot.slane %v765_v44, 7  ;;  %v631_v4 = vpop.f32.mrf.mxu0  ;;  %v1163_v32 = vrot.slane %v8844_v1, 1  ;;  %v1119_v10 = vmul.f32 %v8784_v61, %v8862_v36  ;;  %v1165_v63 = vrot.slane %v8862_v36, 1  ;;  %7240 = vmatpush3.msra.mxu1 %v8714_v45 }
 0x145   : > { %v832_v59 = vrot.slane %v764_v22, 7  ;;  %v767_v19 = vmax.f32 %v637_v49, 0.0  ;;  %v632_v24 = vadd.f32 %v8821_v8, %v631_v4  ;;  %2573 = vperm.xlu1 %7849, %v8622_v11   ;;  %v1120_v61 = vmul.f32 %v8689_v16, %v8865_v6 }
 0x146   : > { %3325 = vperm.xlu0 %7868, %v8452_v26   ;;  %v7093_v44 = vpop.f32.mrf.mxu0  ;;  %v8884_v15 = vsel %vm1158_vm2, %v1161_v58, %v1163_v32  ;;  %7197 = vmatprep.mubr.msk.f32.mxu0 %vm438_vm0, %v1119_v10  ;;  %v1167_v22 = vrot.slane %v8865_v6, 1  ;;  %v8905_v10 = vsel %vm1158_vm2, %v1163_v32, %v1165_v63 }
 0x147   : > { %11495 = vst [vmem:[#allocation32_spill] sm:$0xff] %v8884_v15  ;;  %v8891_v49 = vsel %vm824_vm1, %v830_v57, %v832_v59  ;;  %v8894_v23 = vsel %vm824_vm1, %v832_v59, %v834_v51  ;;  %v838_v4 = vrot.slane %v767_v19, 7  ;;  %v766_v46 = vmax.f32 %v632_v24, 0.0  ;;  %7138 = vmatprep.mubr.msk.f32.mxu1 %vm438_vm0, %v8884_v15  ;;  %v8898_v26 = vpop.permute.xlu1 %1047  ;;  %v8900_v58 = vpop.permute.xlu0 %1097  ;;  %11498 = vst [vmem:[#allocation35_spill] sm:$0xff] %v8905_v10  ;;  %v6316_v24 = vld [vmem:[%s11314_s3 + $0x50] sm:$0xff] }
 0x148   : > { %11496 = vst [vmem:[#allocation33_spill] sm:$0xff] %v8891_v49  ;;  %11497 = vst [vmem:[#allocation34_spill] sm:$0xff] %v8894_v23  ;;  %v647_v16 = vadd.f32 %v7093_v44, %v8821_v8  ;;  %7198 = vmatmul.mubr.msk.f32.gmra.mxu0 %vm438_vm0, %v1120_v61  ;;  %v641_v59 = vpop.f32.mrf.mxu0  ;;  %v8909_v57 = vsel %vm1158_vm2, %v1165_v63, %v1167_v22  ;;  %v1121_v19 = vmul.f32 %v8794_v28, %v8891_v49 }
 0x149   : > { %11499 = vst [vmem:[#allocation36_spill] sm:$0xff] %v8909_v57  ;;  %v836_v15 = vrot.slane %v766_v46, 7  ;;  %7139 = vmatmul.mubr.msk.f32.gmra.mxu1 %vm438_vm0, %v8905_v10  ;;  %v642_v45 = vadd.f32 %v8821_v8, %v641_v59  ;;  %2581 = vperm.xlu1 %7849, %v8669_v25   ;;  %v1169_v32 = vrot.slane %v8891_v49, 1  ;;  %v1122_v63 = vmul.f32 %v8700_v37, %v8894_v23 }
 0x14a   : > { %v769_v44 = vmax.f32 %v647_v16, 0.0  ;;  %3334 = vperm.xlu0 %7868, %v8468_v30   ;;  %v7096_v28 = vpop.f32.mrf.mxu0  ;;  %7141 = vmatprep.mubr.msk.f32.mxu1 %vm438_vm0, %v8909_v57  ;;  %v1171_v46 = vrot.slane %v8894_v23, 1 }
 0x14b   : > { %v8928_v61 = vsel %vm824_vm1, %v834_v51, %v836_v15  ;;  %v8931_v59 = vsel %vm824_vm1, %v836_v15, %v838_v4  ;;  %v768_v25 = vmax.f32 %v642_v45, 0.0  ;;  %v657_v10 = vadd.f32 %v7096_v28, %v8821_v8  ;;  %7200 = vmatprep.mubr.msk.f32.mxu0 %vm438_vm0, %v1121_v19  ;;  %v8935_v37 = vpop.permute.xlu0 %1107  ;;  %7241 = vmatprep.subr.mxu1 %v6316_v24  ;;  %v6315_v19 = vld [vmem:[%s11314_s3 + $0x48] sm:$0xff] }
 0x14c   : > { %11500 = vst [vmem:[#allocation37_spill] sm:$0xff] %v8928_v61  ;;  %11501 = vst [vmem:[#allocation38_spill] sm:$0xff] %v8931_v59  ;;  %v842_v30 = vrot.slane %v769_v44, 7  ;;  %v8938_v16 = vsel %vm1158_vm2, %v1167_v22, %v1169_v32  ;;  %7201 = vmatmul.mubr.msk.f32.gmra.mxu0 %vm438_vm0, %v1122_v63  ;;  %v8941_v57 = vpop.permute.xlu1 %1897  ;;  %v651_v51 = vpop.f32.mrf.mxu0  ;;  %v8944_v15 = vsel %vm1158_vm2, %v1169_v32, %v1171_v46  ;;  %7242 = vmatpush3.msra.mxu1 %v6316_v24 }
 0x14d   : > { %11502 = vst [vmem:[#allocation39_spill] sm:$0xff] %v8938_v16  ;;  %11503 = vst [vmem:[#allocation40_spill] sm:$0xff] %v8941_v57  ;;  %v1123_v45 = vmul.f32 %v8803_v60, %v8928_v61  ;;  %v840_v44 = vrot.slane %v768_v25, 7  ;;  %v771_v28 = vmax.f32 %v657_v10, 0.0  ;;  %7142 = vmatmul.mubr.msk.f32.gmra.mxu1 %vm438_vm0, %v8938_v16  ;;  %v652_v22 = vadd.f32 %v8821_v8, %v651_v51 }
 0x14e   : > { %11504 = vst [vmem:[#allocation41_spill] sm:$0xff] %v8944_v15  ;;  %2589 = vperm.xlu1 %7849, %v8500_v38   ;;  %3343 = vperm.xlu0 %7868, %v8484_v34   ;;  %v7099_v32 = vpop.f32.mrf.mxu0  ;;  %v1173_v60 = vrot.slane %v8928_v61, 1  ;;  %v1124_v24 = vmul.f32 %v8706_v41, %v8931_v59  ;;  %v1175_v10 = vrot.slane %v8931_v59, 1 }
 0x14f   : > { %7144 = vmatprep.mubr.msk.f32.mxu1 %vm438_vm0, %v8944_v15  ;;  %v8963_v63 = vsel %vm824_vm1, %v838_v4, %v840_v44  ;;  %v8966_v25 = vsel %vm824_vm1, %v840_v44, %v842_v30  ;;  %v846_v51 = vrot.slane %v771_v28, 7  ;;  %7203 = vmatprep.mubr.msk.f32.mxu0 %vm438_vm0, %v1123_v45  ;;  %v8969_v34 = vpop.permute.xlu0 %2485  ;;  %v770_v15 = vmax.f32 %v652_v22, 0.0  ;;  %v6314_v45 = vld [vmem:[%s11314_s3 + $0x40] sm:$0xff] }
 0x150   : > { %11505 = vst [vmem:[#allocation42_spill] sm:$0xff] %v8963_v63  ;;  %11506 = vst [vmem:[#allocation43_spill] sm:$0xff] %v8966_v25  ;;  %7243 = vmatprep.subr.mxu1 %v6315_v19  ;;  %v667_v16 = vadd.f32 %v7099_v32, %v8821_v8  ;;  %v8973_v57 = vsel %vm1158_vm2, %v1171_v46, %v1173_v60  ;;  %7204 = vmatmul.mubr.msk.f32.gmra.mxu0 %vm438_vm0, %v1124_v24  ;;  %v8976_v41 = vpop.permute.xlu1 %1900  ;;  %v661_v4 = vpop.f32.mrf.mxu0 }
 0x151   : > { %11507 = vst [vmem:[#allocation44_spill] sm:$0xff] %v8973_v57  ;;  %11508 = vst [vmem:[#allocation45_spill] sm:$0xff] %v8976_v41  ;;  %v8979_v44 = vsel %vm1158_vm2, %v1173_v60, %v1175_v10  ;;  %7244 = vmatpush3.msra.mxu1 %v6315_v19  ;;  %v662_v28 = vadd.f32 %v8821_v8, %v661_v4  ;;  %v1125_v46 = vmul.f32 %v8809_v47, %v8963_v63 }
 0x152   : > { %11509 = vst [vmem:[#allocation46_spill] sm:$0xff] %v8979_v44  ;;  %7145 = vmatmul.mubr.msk.f32.gmra.mxu1 %vm438_vm0, %v8973_v57  ;;  %2597 = vperm.xlu1 %7849, %v8644_v18   ;;  %v844_v22 = vrot.slane %v770_v15, 7  ;;  %v773_v32 = vmax.f32 %v667_v16, 0.0  ;;  %v7102_v60 = vpop.f32.mrf.mxu0  ;;  %v1177_v19 = vrot.slane %v8963_v63, 1  ;;  %v1126_v24 = vmul.f32 %v8777_v12, %v8966_v25 }
 0x153   : > { %3352 = vperm.xlu0 %7868, %v8500_v38   ;;  %7147 = vmatprep.mubr.msk.f32.mxu1 %vm438_vm0, %v8979_v44  ;;  %v772_v57 = vmax.f32 %v662_v28, 0.0  ;;  %v677_v4 = vadd.f32 %v7102_v60, %v8821_v8  ;;  %v8998_v18 = vpop.permute.xlu0 %2497  ;;  %v9013_v28 = vld [vmem:[%s11314_s3 + $0x98] sm:$0xff] }
 0x154   : > { %7206 = vmatprep.mubr.msk.f32.mxu0 %vm438_vm0, %v1125_v46  ;;  %11510 = vst [vmem:[#allocation47_spill] sm:$0xff] %v8998_v18  ;;  %7245 = vmatprep.subr.mxu1 %v6314_v45  ;;  %v9001_v47 = vsel %vm824_vm1, %v842_v30, %v844_v22  ;;  %v9004_v38 = vsel %vm824_vm1, %v844_v22, %v846_v51  ;;  %v850_v16 = vrot.slane %v773_v32, 7  ;;  %v671_v12 = vpop.f32.mrf.mxu0  ;;  %v11514_v22 = vmov 5  }
 0x155   : > { %11511 = vst [vmem:[#allocation48_spill] sm:$0xff] %v9001_v47  ;;  %11512 = vst [vmem:[#allocation49_spill] sm:$0xff] %v9004_v38  ;;  %v9007_v15 = vsel %vm1158_vm2, %v1175_v10, %v1177_v19  ;;  %7207 = vmatmul.mubr.msk.f32.gmra.mxu0 %vm438_vm0, %v1126_v24  ;;  %7246 = vmatpush3.msra.mxu1 %v6314_v45  ;;  %v848_v46 = vrot.slane %v772_v57, 7  ;;  %v775_v60 = vmax.f32 %v677_v4, 0.0  ;;  %v9019_v10 = vpop.permute.xlu1 %1057  ;;  %v1179_v32 = vrot.slane %v8966_v25, 1 }
 0x156   : > { %11513 = vst [vmem:[#allocation50_spill] sm:$0xff] %v9007_v15  ;;  %7148 = vmatmul.mubr.msk.f32.gmra.mxu1 %vm438_vm0, %v9007_v15  ;;  %v672_v30 = vadd.f32 %v8821_v8, %v671_v12  ;;  %7850 = vset.pattern.permute.xlu1 %v11514_v22  ;;  %v7105_v45 = vpop.f32.mrf.mxu0  ;;  %v1127_v57 = vmul.f32 %v8787_v7, %v9001_v47  ;;  %v1181_v24 = vrot.slane %v9001_v47, 1 }
 0x157   : > { %3274 = vperm.xlu1 %7850, %v8375_v3   ;;  %3361 = vperm.xlu0 %7868, %v8516_v42   ;;  %v1128_v4 = vmul.f32 %v8816_v13, %v9004_v38  ;;  %v9030_v12 = vsel %vm824_vm1, %v846_v51, %v848_v46  ;;  %v9033_v15 = vsel %vm824_vm1, %v848_v46, %v850_v16  ;;  %v854_v44 = vrot.slane %v775_v60, 7  ;;  %v9035_v3 = vpop.permute.xlu0 %2505 }
 0x158   : > { %11515 = vst [vmem:[#allocation51_spill] sm:$0xff] %v9030_v12  ;;  %11516 = vst [vmem:[#allocation52_spill] sm:$0xff] %v9033_v15  ;;  %v774_v41 = vmax.f32 %v672_v30, 0.0  ;;  %7351 = vmatprep.subr.mxu1 %v9013_v28  ;;  %v687_v42 = vadd.f32 %v7105_v45, %v8821_v8  ;;  %v9040_v7 = vsel %vm1158_vm2, %v1177_v19, %v1179_v32  ;;  %7209 = vmatprep.mubr.msk.f32.mxu0 %vm438_vm0, %v1127_v57  ;;  %v681_v51 = vpop.f32.mrf.mxu0 }
 0x159   : > { %11517 = vst [vmem:[#allocation53_spill] sm:$0xff] %v9035_v3  ;;  %11518 = vst [vmem:[#allocation54_spill] sm:$0xff] %v9040_v7  ;;  %v9044_v13 = vsel %vm1158_vm2, %v1179_v32, %v1181_v24  ;;  %v1183_v46 = vrot.slane %v9004_v38, 1  ;;  %7150 = vmatprep.mubr.msk.f32.mxu1 %vm438_vm0, %v9040_v7  ;;  %7210 = vmatmul.mubr.msk.f32.gmra.mxu0 %vm438_vm0, %v1128_v4  ;;  %v682_v60 = vadd.f32 %v8821_v8, %v681_v51  ;;  %v9051_v30 = vpop.permute.xlu1 %1062  ;;  %v11352_v7 = vmov 8  }
 0x15a   : > { %11519 = vst [vmem:[#allocation55_spill] sm:$0xff] %v9044_v13  ;;  %v852_v18 = vrot.slane %v774_v41, 7  ;;  %v1129_v19 = vmul.f32 %v8812_v14, %v9030_v12  ;;  %v777_v45 = vmax.f32 %v687_v42, 0.0  ;;  %7151 = vmatmul.mubr.msk.f32.gmra.mxu1 %vm438_vm0, %v9044_v13  ;;  %v7108_v32 = vpop.f32.mrf.mxu0  ;;  %v1185_v57 = vrot.slane %v9030_v12, 1 }
 0x15b   : > { %3280 = vperm.xlu1 %7850, %v8370_v2   ;;  %v9059_v41 = vsel %vm1158_vm2, %v1181_v24, %v1183_v46  ;;  %v1130_v4 = vmul.f32 %v8824_v40, %v9033_v15  ;;  %v776_v42 = vmax.f32 %v682_v60, 0.0  ;;  %7875 = vset.pattern.permute.xlu0 %v11352_v7  ;;  %v697_v2 = vadd.f32 %v7108_v32, %v8821_v8  ;;  %v9074_v24 = vpop.permute.xlu0 %2513  ;;  %v9087_v32 = vld [vmem:[%s11314_s3 + $0xb8] sm:$0xff] }
 0x15c   : > { %11520 = vst [vmem:[#allocation56_spill] sm:$0xff] %v9059_v41  ;;  %v9065_v51 = vsel %vm824_vm1, %v850_v16, %v852_v18  ;;  %v9068_v14 = vsel %vm824_vm1, %v852_v18, %v854_v44  ;;  %7153 = vmatprep.mubr.msk.f32.mxu1 %vm438_vm0, %v9059_v41  ;;  %11523 = vst [vmem:[#allocation59_spill] sm:$0xff] %v9074_v24  ;;  %v858_v13 = vrot.slane %v777_v45, 7  ;;  %7212 = vmatprep.mubr.msk.f32.mxu0 %vm438_vm0, %v1129_v19  ;;  %v691_v18 = vpop.f32.mrf.mxu0  ;;  %v11526_v19 = vmov 3  }
 0x15d   : > { %11521 = vst [vmem:[#allocation57_spill] sm:$0xff] %v9065_v51  ;;  %11522 = vst [vmem:[#allocation58_spill] sm:$0xff] %v9068_v14  ;;  %4709 = vperm.xlu0 %7875, %v8430_v21   ;;  %v9079_v40 = vsel %vm1158_vm2, %v1183_v46, %v1185_v57  ;;  %v1187_v16 = vrot.slane %v9033_v15, 1  ;;  %v1131_v60 = vmul.f32 %v8827_v5, %v9065_v51  ;;  %v856_v7 = vrot.slane %v776_v42, 7 }
 0x15e   : > { %11524 = vst [vmem:[#allocation60_spill] sm:$0xff] %v9079_v40  ;;  %v779_v45 = vmax.f32 %v697_v2, 0.0  ;;  %7213 = vmatmul.mubr.msk.f32.gmra.mxu0 %vm438_vm0, %v1130_v4  ;;  %v692_v21 = vadd.f32 %v8821_v8, %v691_v18  ;;  %7407 = vmatprep.subr.mxu0 %v9087_v32  ;;  %v9094_v46 = vpop.permute.xlu1 %1906  ;;  %v7111_v5 = vpop.f32.mrf.mxu0  ;;  %v1189_v42 = vrot.slane %v9065_v51, 1  ;;  %v1132_v4 = vmul.f32 %v8868_v62, %v9068_v14 }
 0x15f   : > { %7154 = vmatmul.mubr.msk.f32.gmra.mxu1 %vm438_vm0, %v9079_v40  ;;  %11525 = vst [vmem:[#allocation61_spill] sm:$0xff] %v9094_v46  ;;  %7851 = vset.pattern.permute.xlu1 %v11526_v19  ;;  %v9098_v41 = vsel %vm1158_vm2, %v1185_v57, %v1187_v16  ;;  %v1191_v2 = vrot.slane %v9068_v14, 1  ;;  %v9105_v18 = vsel %vm824_vm1, %v854_v44, %v856_v7  ;;  %v9113_v57 = vpop.permute.xlu0 %2521  ;;  %v11530_v62 = vmov 6  }
 0x160   : > { %11527 = vst [vmem:[#allocation62_spill] sm:$0xff] %v9098_v41  ;;  %v9108_v40 = vsel %vm824_vm1, %v856_v7, %v858_v13  ;;  %v778_v46 = vmax.f32 %v692_v21, 0.0  ;;  %7156 = vmatprep.mubr.msk.f32.mxu1 %vm438_vm0, %v9098_v41  ;;  %7215 = vmatprep.mubr.msk.f32.mxu0 %vm438_vm0, %v1131_v60  ;;  %11529 = vst [vmem:[#allocation64_spill] sm:$0xff] %v9113_v57  ;;  %v707_v19 = vadd.f32 %v7111_v5, %v8821_v8  ;;  %v701_v24 = vpop.f32.mrf.mxu0 }
 0x161   : > { %11528 = vst [vmem:[#allocation63_spill] sm:$0xff] %v9108_v40  ;;  %2605 = vperm.xlu1 %7851, %v8651_v20   ;;  %7876 = vset.pattern.permute.xlu0 %v11530_v62  ;;  %v9119_v44 = vsel %vm1158_vm2, %v1187_v16, %v1189_v42  ;;  %v9122_v7 = vsel %vm1158_vm2, %v1189_v42, %v1191_v2  ;;  %v862_v21 = vrot.slane %v779_v45, 7  ;;  %v1193_v42 = vrot.slane %v9105_v18, 1 }
 0x162   : > { %11531 = vst [vmem:[#allocation65_spill] sm:$0xff] %v9119_v44  ;;  %11532 = vst [vmem:[#allocation66_spill] sm:$0xff] %v9122_v7  ;;  %v860_v3 = vrot.slane %v778_v46, 7  ;;  %7216 = vmatmul.mubr.msk.f32.gmra.mxu0 %vm438_vm0, %v1132_v4  ;;  %4011 = vperm.xlu0 %7876, %v8622_v11   ;;  %v702_v60 = vadd.f32 %v8821_v8, %v701_v24  ;;  %v1133_v20 = vmul.f32 %v8898_v26, %v9105_v18  ;;  %v9131_v16 = vpop.permute.xlu1 %1909  ;;  %v7114_v41 = vpop.f32.mrf.mxu0 }
 0x163   : > { %v781_v5 = vmax.f32 %v707_v19, 0.0  ;;  %7157 = vmatmul.mubr.msk.f32.gmra.mxu1 %vm438_vm0, %v9119_v44  ;;  %11533 = vst [vmem:[#allocation67_spill] sm:$0xff] %v9131_v16  ;;  %v1134_v45 = vmul.f32 %v8836_v9, %v9108_v40  ;;  %v717_v24 = vadd.f32 %v7114_v41, %v8821_v8  ;;  %v9145_v4 = vsel %vm1158_vm2, %v1191_v2, %v1193_v42  ;;  %v9159_v2 = vpop.permute.xlu0 %2529 }
 0x164   : > { %v9137_v46 = vsel %vm824_vm1, %v858_v13, %v860_v3  ;;  %v780_v11 = vmax.f32 %v702_v60, 0.0  ;;  %7159 = vmatprep.mubr.msk.f32.mxu1 %vm438_vm0, %v9122_v7  ;;  %7218 = vmatprep.mubr.msk.f32.mxu0 %vm438_vm0, %v1133_v20  ;;  %11535 = vst [vmem:[#allocation69_spill] sm:$0xff] %v9145_v4  ;;  %v711_v19 = vpop.f32.mrf.mxu0  ;;  %v1195_v9 = vrot.slane %v9108_v40, 1  ;;  %v9149_v13 = vsel %vm824_vm1, %v860_v3, %v862_v21  ;;  %v9155_v20 = vld [vmem:[%s11319_s8 + $0x18] sm:$0xff] }
 0x165   : > { %11534 = vst [vmem:[#allocation68_spill] sm:$0xff] %v9137_v46  ;;  %v866_v26 = vrot.slane %v781_v5, 7  ;;  %7852 = vset.pattern.permute.xlu1 %v11514_v22  ;;  %11536 = vst [vmem:[#allocation70_spill] sm:$0xff] %v9149_v13  ;;  %v712_v41 = vadd.f32 %v8821_v8, %v711_v19  ;;  %v783_v5 = vmax.f32 %v717_v24, 0.0 }
 0x166   : > { %v864_v60 = vrot.slane %v780_v11, 7  ;;  %7219 = vmatmul.mubr.msk.f32.gmra.mxu0 %vm438_vm0, %v1134_v45  ;;  %3283 = vperm.xlu1 %7852, %v9155_v20   ;;  %11537 = vst [vmem:[#allocation71_spill] sm:$0xff] %v9159_v2  ;;  %v7117_v3 = vpop.f32.mrf.mxu0  ;;  %v9165_v45 = vsel %vm1158_vm2, %v1193_v42, %v1195_v9  ;;  %v1135_v11 = vmul.f32 %v9019_v10, %v9137_v46  ;;  %v1197_v42 = vrot.slane %v9137_v46, 1 }
 0x167   : > { %7160 = vmatmul.mubr.msk.f32.gmra.mxu1 %vm438_vm0, %v9145_v4  ;;  %4023 = vperm.xlu0 %7876, %v8634_v17   ;;  %11538 = vst [vmem:[#allocation72_spill] sm:$0xff] %v9165_v45  ;;  %v782_v44 = vmax.f32 %v712_v41, 0.0  ;;  %v727_v24 = vadd.f32 %v7117_v3, %v8821_v8  ;;  %v1073_v17 = vpop.permute.xlu1 %1072  ;;  %v870_v4 = vrot.slane %v783_v5, 7  ;;  %v1136_v10 = vmul.f32 %v9051_v30, %v9149_v13 }
 0x168   : > { %v9170_v7 = vsel %vm824_vm1, %v862_v21, %v864_v60  ;;  %v9173_v19 = vsel %vm824_vm1, %v864_v60, %v866_v26  ;;  %7162 = vmatprep.mubr.msk.f32.mxu1 %vm438_vm0, %v9165_v45  ;;  %7221 = vmatprep.mubr.msk.f32.mxu0 %vm438_vm0, %v1135_v11  ;;  %v721_v21 = vpop.f32.mrf.mxu0  ;;  %v7881_v60 = vld [vmem:[%s11319_s8 + $0x20] sm:$0xff]  ;;  %v1199_v3 = vrot.slane %v9149_v13, 1  ;;  %v9189_v11 = vsel %vm1158_vm2, %v1195_v9, %v1197_v42  ;;  %v9201_v45 = vpop.permute.xlu0 %2537 }
 0x169   : > { %11539 = vst [vmem:[#allocation73_spill] sm:$0xff] %v9170_v7  ;;  %11540 = vst [vmem:[#allocation74_spill] sm:$0xff] %v9173_v19  ;;  %v868_v2 = vrot.slane %v782_v44, 7  ;;  %v785_v57 = vmax.f32 %v727_v24, 0.0  ;;  %v722_v41 = vadd.f32 %v8821_v8, %v721_v21  ;;  %v1138_v5 = vmul.f32 %v1073_v17, %v9173_v19 }
 0x16a   : > { %3286 = vperm.xlu1 %7852, %v7881_v60   ;;  %11541 = vst [vmem:[#allocation75_spill] sm:$0xff] %v9189_v11  ;;  %7222 = vmatmul.mubr.msk.f32.gmra.mxu0 %vm438_vm0, %v1136_v10  ;;  %v7120_v30 = vpop.f32.mrf.mxu0  ;;  %v1137_v44 = vmul.f32 %v8849_v0, %v9170_v7  ;;  %v1201_v24 = vrot.slane %v9170_v7, 1  ;;  %11543 = vst [vmem:[#allocation77_spill] sm:$0xff] %v9201_v45 }
 0x16b   : > { %4031 = vperm.xlu0 %7876, %v8696_v35   ;;  %v9197_v60 = vsel %vm824_vm1, %v866_v26, %v868_v2  ;;  %v874_v21 = vrot.slane %v785_v57, 7  ;;  %7163 = vmatmul.mubr.msk.f32.gmra.mxu1 %vm438_vm0, %v9189_v11  ;;  %v784_v17 = vmax.f32 %v722_v41, 0.0  ;;  %v1078_v9 = vpop.permute.xlu1 %1077  ;;  %v737_v10 = vadd.f32 %v7120_v30, %v8821_v8 }
 0x16c   : > { %11542 = vst [vmem:[#allocation76_spill] sm:$0xff] %v9197_v60  ;;  %v9205_v35 = vsel %vm1158_vm2, %v1197_v42, %v1199_v3  ;;  %7224 = vmatprep.mubr.msk.f32.mxu0 %vm438_vm0, %v1137_v44  ;;  %v1139_v0 = vmul.f32 %v1078_v9, %v9197_v60  ;;  %v9210_v26 = vsel %vm1158_vm2, %v1199_v3, %v1201_v24  ;;  %v731_v57 = vpop.f32.mrf.mxu0  ;;  %v1203_v30 = vrot.slane %v9173_v19, 1  ;;  %v7882_v3 = vld [vmem:[%s11319_s8 + $0xe8] sm:$0xff] }
 0x16d   : > { %11544 = vst [vmem:[#allocation78_spill] sm:$0xff] %v9205_v35  ;;  %11545 = vst [vmem:[#allocation79_spill] sm:$0xff] %v9210_v26  ;;  %v9213_v7 = vsel %vm824_vm1, %v868_v2, %v870_v4  ;;  %v872_v41 = vrot.slane %v784_v17, 7  ;;  %7165 = vmatprep.mubr.msk.f32.mxu1 %vm438_vm0, %v9205_v35  ;;  %v732_v42 = vadd.f32 %v8821_v8, %v731_v57  ;;  %v787_v44 = vmax.f32 %v737_v10, 0.0 }
 0x16e   : > { %11546 = vst [vmem:[#allocation80_spill] sm:$0xff] %v9213_v7  ;;  %7853 = vset.pattern.permute.xlu1 %v11530_v62  ;;  %7225 = vmatmul.mubr.msk.f32.gmra.mxu0 %vm438_vm0, %v1138_v5  ;;  %v7123_v2 = vpop.f32.mrf.mxu0  ;;  %v1205_v17 = vrot.slane %v9197_v60, 1  ;;  %v1207_v9 = vrot.slane %v9213_v7, 1  ;;  %v1140_v35 = vmul.f32 %v8871_v29, %v9213_v7  ;;  %v9241_v29 = vsel %vm1158_vm2, %v1201_v24, %v1203_v30 }
 0x16f   : > { %4039 = vperm.xlu0 %7876, %v7882_v3   ;;  %v9229_v57 = vsel %vm824_vm1, %v870_v4, %v872_v41  ;;  %v9232_v10 = vsel %vm824_vm1, %v872_v41, %v874_v21  ;;  %7166 = vmatmul.mubr.msk.f32.gmra.mxu1 %vm438_vm0, %v9210_v26  ;;  %v786_v5 = vmax.f32 %v732_v42, 0.0  ;;  %v7883_v3 = vld [vmem:[%s11319_s8] sm:$0xff]  ;;  %v747_v11 = vadd.f32 %v7123_v2, %v8821_v8 }
 0x170   : > { %11547 = vst [vmem:[#allocation81_spill] sm:$0xff] %v9229_v57  ;;  %11548 = vst [vmem:[#allocation82_spill] sm:$0xff] %v9232_v10  ;;  %3923 = vperm.xlu1 %7853, %v7883_v3   ;;  %v878_v45 = vrot.slane %v787_v44, 7  ;;  %7227 = vmatprep.mubr.msk.f32.mxu0 %vm438_vm0, %v1139_v0  ;;  %v9245_v4 = vsel %vm1158_vm2, %v1203_v30, %v1205_v17  ;;  %v9247_v41 = vpop.permute.xlu1 %1915  ;;  %v741_v26 = vpop.f32.mrf.mxu0  ;;  %v9255_v24 = vsel %vm1158_vm2, %v1205_v17, %v1207_v9 }
 0x171   : > { %11549 = vst [vmem:[#allocation83_spill] sm:$0xff] %v9241_v29  ;;  %11550 = vst [vmem:[#allocation84_spill] sm:$0xff] %v9245_v4  ;;  %v876_v42 = vrot.slane %v786_v5, 7  ;;  %v789_v7 = vmax.f32 %v747_v11, 0.0  ;;  %7168 = vmatprep.mubr.msk.f32.mxu1 %vm438_vm0, %v9241_v29  ;;  %v9251_v3 = vpop.permute.xlu0 %2545  ;;  %v742_v44 = vadd.f32 %v8821_v8, %v741_v26  ;;  %v1209_v0 = vrot.slane %v9229_v57, 1 }
 0x172   : > { %11551 = vst [vmem:[#allocation85_spill] sm:$0xff] %v9247_v41  ;;  %11552 = vst [vmem:[#allocation86_spill] sm:$0xff] %v9251_v3  ;;  %v7126_v2 = vpop.f32.mrf.mxu0  ;;  %v1211_v30 = vrot.slane %v9232_v10, 1  ;;  %7228 = vmatmul.mubr.msk.f32.gmra.mxu0 %vm438_vm0, %v1140_v35  ;;  %v1930_v11 = vrot.slane %v8678_v27, 6  ;;  %v1931_v5 = vrot.slane %v8721_v48, 6 }
 0x173   : > { %11553 = vst [vmem:[#allocation87_spill] sm:$0xff] %v9255_v24  ;;  %4047 = vperm.xlu0 %7876, %v8740_v53   ;;  %v9264_v29 = vsel %vm824_vm1, %v874_v21, %v876_v42  ;;  %7169 = vmatmul.mubr.msk.f32.gmra.mxu1 %vm438_vm0, %v9245_v4  ;;  %v9270_v26 = vsel %vm824_vm1, %v876_v42, %v878_v45  ;;  %v788_v17 = vmax.f32 %v742_v44, 0.0  ;;  %v9275_v53 = vld [vmem:[%s11319_s8 + $0x30] sm:$0xff]  ;;  %v882_v42 = vrot.slane %v789_v7, 7 }
 0x174   : > { %11554 = vst [vmem:[#allocation88_spill] sm:$0xff] %v9264_v29  ;;  %7854 = vset.pattern.permute.xlu1 %v11514_v22  ;;  %11555 = vst [vmem:[#allocation89_spill] sm:$0xff] %v9270_v26  ;;  %v757_v27 = vadd.f32 %v7126_v2, %v8821_v8  ;;  %7171 = vmatprep.mubr.msk.f32.mxu1 %vm438_vm0, %v9255_v24  ;;  %v9282_v48 = vsel %vm1158_vm2, %v1207_v9, %v1209_v0  ;;  %v9284_v21 = vpop.permute.xlu1 %1918  ;;  %v751_v35 = vpop.f32.mrf.mxu0  ;;  %v1213_v60 = vrot.slane %v9264_v29, 1  ;;  %v11559_v2 = vmov 8  }
 0x175   : > { %3292 = vperm.xlu1 %7854, %v9275_v53   ;;  %11556 = vst [vmem:[#allocation90_spill] sm:$0xff] %v9282_v48  ;;  %11557 = vst [vmem:[#allocation91_spill] sm:$0xff] %v9284_v21  ;;  %v752_v44 = vadd.f32 %v8821_v8, %v751_v35  ;;  %v9288_v4 = vsel %vm1158_vm2, %v1209_v0, %v1211_v30  ;;  %v880_v3 = vrot.slane %v788_v17, 7  ;;  %v9292_v19 = vpop.permute.xlu0 %2553  ;;  %v1215_v24 = vrot.slane %v9270_v26, 1  ;;  %v9300_v8 = vld [vmem:[%s11319_s8 + $0x28] sm:$0xff] }
 0x176   : > { %11558 = vst [vmem:[#allocation92_spill] sm:$0xff] %v9288_v4  ;;  %11560 = vst [vmem:[#allocation93_spill] sm:$0xff] %v9292_v19  ;;  %v1932_v7 = vsel %vm1929_vm3, %v1930_v11, %v1931_v5  ;;  %v1933_v0 = vrot.slane %v8727_v50, 6  ;;  %v791_v35 = vmax.f32 %v757_v27, 0.0  ;;  %v9317_v19 = vsel %vm1158_vm2, %v1211_v30, %v1213_v60  ;;  %v9333_v30 = vld [vmem:[%s11319_s8 + $0x40] sm:$0xff] }
 0x177   : > { %7879 = vset.pattern.permute.xlu0 %v11559_v2  ;;  %7172 = vmatmul.mubr.msk.f32.gmra.mxu1 %vm438_vm0, %v9282_v48  ;;  %v790_v9 = vmax.f32 %v752_v44, 0.0  ;;  %v9306_v17 = vsel %vm824_vm1, %v878_v45, %v880_v3  ;;  %v7886_v44 = vld [vmem:[%s11319_s8 + $0x38] sm:$0xff]  ;;  %v9314_v2 = vsel %vm824_vm1, %v880_v3, %v882_v42  ;;  %11563 = vst [vmem:[#allocation96_spill] sm:$0xff] %v9317_v19  ;;  %v1935_v27 = vrot.slane %v8685_v31, 6 }
 0x178   : > { %4721 = vperm.xlu0 %7879, %v9300_v8   ;;  %11561 = vst [vmem:[#allocation94_spill] sm:$0xff] %v9306_v17  ;;  %7174 = vmatprep.mubr.msk.f32.mxu1 %vm438_vm0, %v9288_v4  ;;  %11562 = vst [vmem:[#allocation95_spill] sm:$0xff] %v9314_v2  ;;  %v9320_v45 = vsel %vm1158_vm2, %v1213_v60, %v1215_v24  ;;  %v2026_v41 = vmul.f32 0.0, %v1930_v11  ;;  %v1217_v3 = vrot.slane %v9306_v17, 1  ;;  %v9336_v31 = vrot.slane %v791_v35, 7  ;;  %v7888_v35 = vld [vmem:[%s11319_s8 + $0x10] sm:$0xff] }
 0x179   : > { %3295 = vperm.xlu1 %7854, %v7886_v44   ;;  %v884_v48 = vrot.slane %v790_v9, 7  ;;  %v1088_v50 = vpop.permute.xlu1 %1087  ;;  %11564 = vst [vmem:[#allocation97_spill] sm:$0xff] %v9320_v45  ;;  %v2027_v44 = vmul.f32 0.0, %v1932_v7  ;;  %v1219_v60 = vrot.slane %v9314_v2, 1  ;;  %v1934_v9 = vsel %vm1929_vm3, %v1931_v5, %v1933_v0 }
 0x17a   : > { %v1141_v21 = vmul.f32 %v1088_v50, %v9229_v57  ;;  %11566 = vst [vmem:[#allocation99_spill] sm:$0xff] %v9336_v31  ;;  %v1937_v7 = vrot.slane %v8733_v52, 6  ;;  %v9346_v50 = vpop.permute.xlu0 %2561  ;;  %v1936_v11 = vsel %vm1929_vm3, %v1933_v0, %v1935_v27  ;;  %v2098_v4 = vrot.slane %v2026_v41, 2  ;;  %v7889_v0 = vld [vmem:[%s11319_s8 + $0x50] sm:$0xff] }
 0x17b   : > { %v9325_v16 = vsel %vm824_vm1, %v882_v42, %v884_v48  ;;  %7175 = vmatmul.mubr.msk.f32.gmra.mxu1 %vm438_vm0, %v9317_v19  ;;  %v1939_v42 = vrot.slane %v8691_v33, 6  ;;  %11567 = vst [vmem:[#allocation100_spill] sm:$0xff] %v9346_v50  ;;  %v9352_v19 = vsel %vm1158_vm2, %v1215_v24, %v1217_v3  ;;  %v2028_v33 = vmul.f32 %v1934_v9, %v8847_v54 }
 0x17c   : > { %11565 = vst [vmem:[#allocation98_spill] sm:$0xff] %v9325_v16  ;;  %4730 = vperm.xlu0 %7879, %v9333_v30   ;;  %7177 = vmatprep.mubr.msk.f32.mxu1 %vm438_vm0, %v9320_v45  ;;  %11568 = vst [vmem:[#allocation101_spill] sm:$0xff] %v9352_v19  ;;  %v9359_v52 = vsel %vm1158_vm2, %v1217_v3, %v1219_v60  ;;  %v2099_v50 = vrot.slane %v2027_v44, 2  ;;  %v2029_v24 = vmul.f32 %v1936_v11, %v8844_v1 }
 0x17d   : > { %7856 = vset.pattern.permute.xlu1 %v11530_v62  ;;  %7230 = vmatprep.mubr.msk.f32.mxu0 %vm438_vm0, %v1141_v21  ;;  %v1093_v45 = vpop.permute.xlu1 %1092  ;;  %11569 = vst [vmem:[#allocation102_spill] sm:$0xff] %v9359_v52  ;;  %v1143_v21 = vmul.f32 %v8900_v58, %v9264_v29  ;;  %v9379_v44 = vsel %vm824_vm1, %v884_v48, %v9336_v31  ;;  %v1941_v3 = vrot.slane %v8744_v55, 6  ;;  %v1943_v11 = vrot.slane %v8703_v39, 6  ;;  %v9399_v39 = vld [vmem:[%s11319_s8 + $0x60] sm:$0xff] }
 0x17e   : > { %3931 = vperm.xlu1 %7856, %v7888_v35   ;;  %v1142_v5 = vmul.f32 %v1093_v45, %v9232_v10  ;;  %v11570_v45 = vrot.slane %v9325_v16, 1  ;;  %11572 = vst [vmem:[#allocation104_spill] sm:$0xff] %v9379_v44  ;;  %v1938_v58 = vsel %vm1929_vm3, %v1935_v27, %v1937_v7  ;;  %v2101_v9 = vrot.slane %v2028_v33, 2 }
 0x17f   : > { %7178 = vmatmul.mubr.msk.f32.gmra.mxu1 %vm438_vm0, %v9352_v19  ;;  %v2100_v55 = vsel %vm2097_vm4, %v2098_v4, %v2099_v50  ;;  %v2103_v48 = vrot.slane %v2029_v24, 2  ;;  %v1947_v27 = vrot.slane %v8709_v43, 6  ;;  %v1945_v33 = vrot.slane %v8750_v56, 6  ;;  %v6388_v56 = vld [vmem:[%s11314_s3 + $0x90] sm:$0xff] }
 0x180   : > { %4736 = vperm.xlu0 %7879, %v7889_v0   ;;  %7180 = vmatprep.mubr.msk.f32.mxu1 %vm438_vm0, %v9359_v52  ;;  %v9374_v41 = vsel %vm1158_vm2, %v1219_v60, %v11570_v45  ;;  %v1940_v60 = vsel %vm1929_vm3, %v1937_v7, %v1939_v42  ;;  %v9390_v45 = vpop.permute.xlu0 %2569  ;;  %v1942_v7 = vsel %vm1929_vm3, %v1939_v42, %v1941_v3 }
 0x181   : > { %11571 = vst [vmem:[#allocation103_spill] sm:$0xff] %v9374_v41  ;;  %7231 = vmatmul.mubr.msk.f32.gmra.mxu0 %vm438_vm0, %v1142_v5  ;;  %v2030_v5 = vmul.f32 %v1938_v58, %v8862_v36  ;;  %v1944_v4 = vsel %vm1929_vm3, %v1941_v3, %v1943_v11  ;;  %v2102_v24 = vsel %vm2097_vm4, %v2099_v50, %v2101_v9 }
 0x182   : > { %3935 = vperm.xlu1 %7856, %v9155_v20   ;;  %7233 = vmatprep.mubr.msk.f32.mxu0 %vm438_vm0, %v1143_v21  ;;  %v9387_v35 = vpop.permute.xlu1 %1924  ;;  %v2031_v20 = vmul.f32 %v1940_v60, %v8865_v6  ;;  %v9412_v21 = vld [vmem:[%s11319_s8 + $0x48] sm:$0xff]  ;;  %v2032_v42 = vmul.f32 %v1942_v7, %v8891_v49  ;;  %v2104_v50 = vsel %vm2097_vm4, %v2101_v9, %v2103_v48 }
 0x183   : > { %7181 = vmatmul.mubr.msk.f32.gmra.mxu1 %vm438_vm0, %v9374_v41  ;;  %v2105_v43 = vrot.slane %v2030_v5, 2  ;;  %v2033_v60 = vmul.f32 %v1944_v4, %v8894_v23  ;;  %v6387_v5 = vld [vmem:[%s11314_s3 + $0x88] sm:$0xff]  ;;  %v11574_v4 = vld [vmem:[#allocation22_spill] sm:$0xff]  ;;  %v1948_v52 = vsel %vm1929_vm3, %v1945_v33, %v1947_v27 }
 0x184   : > { %4742 = vperm.xlu0 %7879, %v9399_v39   ;;  %7247 = vmatprep.mubr.msk.f32.mxu1 %vm438_vm0, %v2100_v55  ;;  %v2107_v3 = vrot.slane %v2031_v20, 2  ;;  %v9427_v55 = vld [vmem:[%s11319_s8 + $0x70] sm:$0xff]  ;;  %v11573_v7 = vld [vmem:[#allocation16_spill] sm:$0xff]  ;;  %v1946_v20 = vsel %vm1929_vm3, %v1943_v11, %v1945_v33  ;;  %v9438_v41 = vpop.permute.xlu0 %2577  ;;  %v2035_v44 = vmul.f32 %v1948_v52, %v8931_v59  ;;  %v9459_v52 = vld [vmem:[%s11319_s8 + $0x80] sm:$0xff] }
 0x185   : > { %v1951_v9 = vrot.slane %v11573_v7, 6  ;;  %v2106_v19 = vsel %vm2097_vm4, %v2103_v48, %v2105_v43  ;;  %v6386_v7 = vld [vmem:[%s11314_s3 + $0x80] sm:$0xff]  ;;  %v2111_v31 = vrot.slane %v2033_v60, 2  ;;  %v1145_v48 = vmul.f32 %v8935_v37, %v9306_v17 }
 0x186   : > { %7857 = vset.pattern.permute.xlu1 %v11514_v22  ;;  %v9415_v58 = vpop.permute.xlu1 %1927  ;;  %v2108_v11 = vsel %vm2097_vm4, %v2105_v43, %v2107_v3 }
 0x187   : > { %3301 = vperm.xlu1 %7857, %v9412_v21   ;;  %7248 = vmatmul.mubr.msk.f32.vlgmr.msra.gmra.mxu1 %vm438_vm0, %v2102_v24  ;;  %v1949_v24 = vrot.slane %v11574_v4, 6 }
 0x188   : > { %4748 = vperm.xlu0 %7879, %v9427_v55   ;;  %7250 = vmatprep.mubr.msk.f32.mxu1 %vm438_vm0, %v2104_v50  ;;  %v2109_v50 = vrot.slane %v2032_v42, 2  ;;  %v11575_v42 = vld [vmem:[#allocation24_spill] sm:$0xff] }
 0x189   : > { %7352 = vmatpush3.msra.mxu1 %v9013_v28  ;;  %v2034_v28 = vmul.f32 %v1946_v20, %v8928_v61  ;;  %v1950_v33 = vsel %vm1929_vm3, %v1947_v27, %v1949_v24  ;;  %v1952_v43 = vsel %vm1929_vm3, %v1949_v24, %v1951_v9 }
 0x18a   : > { %7353 = vmatprep.subr.mxu1 %v6388_v56  ;;  %v2110_v60 = vsel %vm2097_vm4, %v2107_v3, %v2109_v50  ;;  %v2036_v27 = vmul.f32 %v1950_v33, %v8963_v63  ;;  %v2037_v24 = vmul.f32 %v1952_v43, %v8966_v25  ;;  %v2612_v3 = vmul.f32 %v8969_v34, %v8847_v54 }
 0x18b   : > { %3304 = vperm.xlu1 %7857, %v7889_v0   ;;  %7354 = vmatpush3.msra.mxu1 %v6388_v56  ;;  %v1103_v4 = vpop.permute.xlu1 %1102  ;;  %v1953_v56 = vrot.slane %v11575_v42, 6  ;;  %v2113_v37 = vrot.slane %v2034_v28, 2  ;;  %v2115_v42 = vrot.slane %v2035_v44, 2 }
 0x18c   : > { %7251 = vmatmul.mubr.msk.f32.gmra.mxu1 %vm438_vm0, %v2106_v19  ;;  %7355 = vmatprep.subr.mxu1 %v6387_v5  ;;  %v1144_v0 = vmul.f32 %v1103_v4, %v9270_v26  ;;  %v11576_v19 = vld [vmem:[#allocation25_spill] sm:$0xff]  ;;  %v2117_v34 = vrot.slane %v2036_v27, 2  ;;  %v11579_v27 = vld [vmem:[#allocation18_spill] sm:$0xff] }
 0x18d   : > { %7253 = vmatprep.mubr.msk.f32.mxu1 %vm438_vm0, %v2108_v11  ;;  %7356 = vmatpush3.msra.mxu1 %v6387_v5  ;;  %v1955_v20 = vrot.slane %v11576_v19, 6  ;;  %v9467_v5 = vpop.permute.xlu0 %2585  ;;  %v2112_v11 = vsel %vm2097_vm4, %v2109_v50, %v2111_v31  ;;  %v1954_v19 = vsel %vm1929_vm3, %v1951_v9, %v1953_v56  ;;  %v2114_v43 = vsel %vm2097_vm4, %v2111_v31, %v2113_v37 }
 0x18e   : > { %7357 = vmatprep.subr.mxu1 %v6386_v7  ;;  %4754 = vperm.xlu0 %7879, %v9459_v52   ;;  %v2116_v9 = vsel %vm2097_vm4, %v2113_v37, %v2115_v42 }
 0x18f   : > { %7858 = vset.pattern.permute.xlu1 %v11530_v62  ;;  %7234 = vmatmul.mubr.msk.f32.gmra.mxu0 %vm438_vm0, %v1144_v0  ;;  %v1113_v4 = vpop.permute.xlu1 %1112  ;;  %v11577_v0 = vld [vmem:[#allocation17_spill] sm:$0xff]  ;;  %v1956_v50 = vsel %vm1929_vm3, %v1953_v56, %v1955_v20 }
 0x190   : > { %7254 = vmatmul.mubr.msk.f32.gmra.mxu1 %vm438_vm0, %v2110_v60  ;;  %3943 = vperm.xlu1 %7858, %v9300_v8   ;;  %v1146_v28 = vmul.f32 %v1113_v4, %v9314_v2  ;;  %v1957_v33 = vrot.slane %v11577_v0, 6  ;;  %v11578_v8 = vld [vmem:[#allocation26_spill] sm:$0xff]  ;;  %v2038_v60 = vmul.f32 %v1954_v19, %v9001_v47  ;;  %v2039_v56 = vmul.f32 %v1956_v50, %v9004_v38 }
 0x191   : > { %7256 = vmatprep.mubr.msk.f32.mxu1 %vm438_vm0, %v2112_v11  ;;  %7236 = vmatprep.mubr.msk.f32.mxu0 %vm438_vm0, %v1145_v48  ;;  %v1959_v44 = vrot.slane %v11578_v8, 6  ;;  %v9488_v48 = vld [vmem:[%s11314_s3 + $0xd8] sm:$0xff]  ;;  %v1963_v11 = vrot.slane %v11579_v27, 6  ;;  %v9499_v19 = vpop.permute.xlu0 %2593  ;;  %v11582_v27 = vld [vmem:[#allocation29_spill] sm:$0xff] }
 0x192   : > { %7358 = vmatpush3.msra.mxu1 %v6386_v7  ;;  %v2119_v7 = vrot.slane %v2037_v24, 2  ;;  %v1958_v4 = vsel %vm1929_vm3, %v1955_v20, %v1957_v33  ;;  %v2118_v24 = vsel %vm2097_vm4, %v2115_v42, %v2117_v34  ;;  %v2121_v50 = vrot.slane %v2038_v60, 2  ;;  %v11581_v42 = vld [vmem:[#allocation28_spill] sm:$0xff] }
 0x193   : > { %7237 = vmatmul.mubr.msk.f32.gmra.mxu0 %vm438_vm0, %v1146_v28  ;;  %v11580_v28 = vld [vmem:[#allocation27_spill] sm:$0xff]  ;;  %7463 = vmatprep.subr.mxu1 %v9488_v48  ;;  %v2040_v8 = vmul.f32 %v1958_v4, %v9030_v12  ;;  %v1965_v60 = vrot.slane %v11581_v42, 6  ;;  %v1967_v4 = vrot.slane %v11582_v27, 6 }
 0x194   : > { %7257 = vmatmul.mubr.msk.f32.gmra.mxu1 %vm438_vm0, %v2114_v43  ;;  %3947 = vperm.xlu1 %7858, %v9275_v53   ;;  %v2490_v31 = vpop.permute.xlu1 %2489  ;;  %v1961_v0 = vrot.slane %v11580_v28, 6  ;;  %v1960_v53 = vsel %vm1929_vm3, %v1957_v33, %v1959_v44  ;;  %v2120_v20 = vsel %vm2097_vm4, %v2117_v34, %v2119_v7  ;;  %v2123_v43 = vrot.slane %v2039_v56, 2  ;;  %v11583_v28 = vld [vmem:[#allocation47_spill] sm:$0xff] }
 0x195   : > { %7259 = vmatprep.mubr.msk.f32.mxu1 %vm438_vm0, %v2116_v9  ;;  %7303 = vmatprep.mubr.msk.f32.mxu0 %vm438_vm0, %v2612_v3  ;;  %v2613_v37 = vmul.f32 %v2490_v31, %v8844_v1  ;;  %v9509_v3 = vld [vmem:[%s11319_s8 + $0x90] sm:$0xff]  ;;  %v2041_v33 = vmul.f32 %v1960_v53, %v9033_v15  ;;  %v2122_v53 = vsel %vm2097_vm4, %v2119_v7, %v2121_v50  ;;  %v2125_v42 = vrot.slane %v2040_v8, 2  ;;  %v9535_v27 = vld [vmem:[%s11319_s8 + $0xa0] sm:$0xff] }
 0x196   : > { %4760 = vperm.xlu0 %7879, %v9509_v3   ;;  %v1962_v31 = vsel %vm1929_vm3, %v1959_v44, %v1961_v0  ;;  %v1964_v56 = vsel %vm1929_vm3, %v1961_v0, %v1963_v11  ;;  %v6424_v44 = vld [vmem:[%s11314_s3 + $0xb0] sm:$0xff]  ;;  %11584 = vst [vmem:[#allocation16_spill] sm:$0xff] %v9535_v27  ;;  %v2124_v7 = vsel %vm2097_vm4, %v2121_v50, %v2123_v43 }
 0x197   : > { %7304 = vmatmul.mubr.msk.f32.vlgmr.msra.gmra.mxu0 %vm438_vm0, %v2613_v37  ;;  %v9538_v37 = vpop.permute.xlu0 %2601  ;;  %v9544_v0 = vmul.f32 %v1964_v56, %v9068_v14  ;;  %v1966_v8 = vsel %vm1929_vm3, %v1963_v11, %v1965_v60  ;;  %v1968_v50 = vsel %vm1929_vm3, %v1965_v60, %v1967_v4  ;;  %v11587_v11 = vld [vmem:[#allocation40_spill] sm:$0xff]  ;;  %v9563_v60 = vld [vmem:[%s11319_s8 + $0xb0] sm:$0xff] }
 0x198   : > { %7260 = vmatmul.mubr.msk.f32.gmra.mxu1 %vm438_vm0, %v2118_v24  ;;  %7859 = vset.pattern.permute.xlu1 %v11514_v22  ;;  %v2494_v9 = vpop.permute.xlu1 %2493  ;;  %v2615_v24 = vmul.f32 %v11583_v28, %v8865_v6  ;;  %v11585_v28 = vld [vmem:[#allocation19_spill] sm:$0xff] }
 0x199   : > { %7262 = vmatprep.mubr.msk.f32.mxu1 %vm438_vm0, %v2120_v20  ;;  %3310 = vperm.xlu1 %7859, %v9399_v39   ;;  %v2614_v34 = vmul.f32 %v2494_v9, %v8862_v36  ;;  %v2042_v20 = vmul.f32 %v1962_v31, %v9065_v51  ;;  %v7896_v9 = vld [vmem:[%s11319_s8 + $0x68] sm:$0xff] }
 0x19a   : > { %7408 = vmatpush3.msra.mxu0 %v9087_v32  ;;  %4766 = vperm.xlu0 %7879, %v9535_v27   ;;  %v2127_v32 = vrot.slane %v2041_v33, 2  ;;  %v2126_v27 = vsel %vm2097_vm4, %v2123_v43, %v2125_v42  ;;  %v9571_v43 = vmul.f32 %v1968_v50, %v9108_v40 }
 0x19b   : > { %7306 = vmatprep.mubr.msk.f32.mxu0 %vm438_vm0, %v2614_v34  ;;  %v11586_v34 = vld [vmem:[#allocation53_spill] sm:$0xff]  ;;  %7409 = vmatprep.subr.mxu0 %v6424_v44  ;;  %v2129_v6 = vrot.slane %v2042_v20, 2  ;;  %v6423_v20 = vld [vmem:[%s11314_s3 + $0xa8] sm:$0xff]  ;;  %v9583_v50 = vpop.permute.xlu0 %2609 }
 0x19c   : > { %7263 = vmatmul.mubr.msk.f32.gmra.mxu1 %vm438_vm0, %v2122_v53  ;;  %v2502_v31 = vpop.permute.xlu1 %2501  ;;  %v1969_v53 = vrot.slane %v11585_v28, 6  ;;  %v2617_v33 = vmul.f32 %v11586_v34, %v8894_v23  ;;  %7307 = vmatmul.mubr.msk.f32.gmra.mxu0 %vm438_vm0, %v2615_v24  ;;  %v2128_v24 = vsel %vm2097_vm4, %v2125_v42, %v2127_v32  ;;  %v11589_v28 = vld [vmem:[#allocation20_spill] sm:$0xff] }
 0x19d   : > { %7265 = vmatprep.mubr.msk.f32.mxu1 %vm438_vm0, %v2124_v7  ;;  %3313 = vperm.xlu1 %7859, %v7896_v9   ;;  %v2616_v56 = vmul.f32 %v2502_v31, %v8891_v49  ;;  %v1971_v7 = vrot.slane %v11587_v11, 6  ;;  %v2044_v9 = vmul.f32 %v1966_v8, %v9105_v18  ;;  %v2131_v31 = vrot.slane %v9544_v0, 2  ;;  %v11590_v0 = vld [vmem:[#allocation59_spill] sm:$0xff]  ;;  %v11595_v49 = vld [vmem:[#allocation73_spill] sm:$0xff] }
 0x19e   : > { %7410 = vmatpush3.msra.mxu0 %v6424_v44  ;;  %4772 = vperm.xlu0 %7879, %v9563_v60   ;;  %v11588_v44 = vld [vmem:[#allocation45_spill] sm:$0xff]  ;;  %v1975_v42 = vrot.slane %v11589_v28, 6  ;;  %v1970_v34 = vsel %vm1929_vm3, %v1967_v4, %v1969_v53  ;;  %v9594_v4 = vld [vmem:[%s11319_s8 + $0xc0] sm:$0xff] }
 0x19f   : > { %7309 = vmatprep.mubr.msk.f32.mxu0 %vm438_vm0, %v2616_v56  ;;  %v1973_v8 = vrot.slane %v11588_v44, 6  ;;  %v2619_v56 = vmul.f32 %v11590_v0, %v8931_v59  ;;  %v2130_v44 = vsel %vm2097_vm4, %v2127_v32, %v2129_v6  ;;  %v2133_v23 = vrot.slane %v2044_v9, 2  ;;  %7411 = vmatprep.subr.mxu0 %v6423_v20 }
 0x1a0   : > { %7266 = vmatmul.mubr.msk.f32.gmra.mxu1 %vm438_vm0, %v2126_v27  ;;  %v2510_v27 = vpop.permute.xlu1 %2509  ;;  %7310 = vmatmul.mubr.msk.f32.gmra.mxu0 %vm438_vm0, %v2617_v33  ;;  %v2046_v28 = vmul.f32 %v1970_v34, %v9137_v46  ;;  %v6422_v33 = vld [vmem:[%s11314_s3 + $0xa0] sm:$0xff] }
 0x1a1   : > { %7268 = vmatprep.mubr.msk.f32.mxu1 %vm438_vm0, %v2128_v24  ;;  %7860 = vset.pattern.permute.xlu1 %v11530_v62  ;;  %v2618_v11 = vmul.f32 %v2510_v27, %v8928_v61  ;;  %v1972_v24 = vsel %vm1929_vm3, %v1969_v53, %v1971_v7  ;;  %v2135_v53 = vrot.slane %v9571_v43, 2  ;;  %v1974_v9 = vsel %vm1929_vm3, %v1971_v7, %v1973_v8  ;;  %v11591_v27 = vld [vmem:[#allocation61_spill] sm:$0xff]  ;;  %v11593_v43 = vld [vmem:[#allocation64_spill] sm:$0xff] }
 0x1a2   : > { %3955 = vperm.xlu1 %7860, %v9333_v30   ;;  %4778 = vperm.xlu0 %7879, %v9594_v4   ;;  %v2132_v30 = vsel %vm2097_vm4, %v2129_v6, %v2131_v31  ;;  %v2047_v32 = vmul.f32 %v1972_v24, %v9149_v13  ;;  %v1977_v34 = vrot.slane %v11591_v27, 6  ;;  %v1976_v6 = vsel %vm1929_vm3, %v1973_v8, %v1975_v42  ;;  %v11594_v7 = vld [vmem:[#allocation85_spill] sm:$0xff] }
 0x1a3   : > { %7312 = vmatprep.mubr.msk.f32.mxu0 %vm438_vm0, %v2618_v11  ;;  %7412 = vmatpush3.msra.mxu0 %v6423_v20  ;;  %v2621_v59 = vmul.f32 %v11593_v43, %v8966_v25  ;;  %v1983_v61 = vrot.slane %v11594_v7, 6  ;;  %v2134_v27 = vsel %vm2097_vm4, %v2131_v31, %v2133_v23  ;;  %v2048_v20 = vmul.f32 %v1974_v9, %v11595_v49  ;;  %v9621_v8 = vld [vmem:[%s11319_s8 + $0xd0] sm:$0xff]  ;;  %v11600_v25 = vld [vmem:[#allocation71_spill] sm:$0xff] }
 0x1a4   : > { %7269 = vmatmul.mubr.msk.f32.gmra.mxu1 %vm438_vm0, %v2130_v44  ;;  %v2518_v0 = vpop.permute.xlu1 %2517  ;;  %v11592_v44 = vld [vmem:[#allocation67_spill] sm:$0xff]  ;;  %7313 = vmatmul.mubr.msk.f32.gmra.mxu0 %vm438_vm0, %v2619_v56  ;;  %11596 = vst [vmem:[#allocation22_spill] sm:$0xff] %v9621_v8  ;;  %v2136_v56 = vsel %vm2097_vm4, %v2133_v23, %v2135_v53  ;;  %v2139_v31 = vrot.slane %v2047_v32, 2  ;;  %v11599_v9 = vld [vmem:[#allocation21_spill] sm:$0xff]  ;;  %v1978_v43 = vsel %vm1929_vm3, %v1975_v42, %v1977_v34  ;;  %v9644_v42 = vld [vmem:[%s11319_s8 + $0x78] sm:$0xff] }
 0x1a5   : > { %7271 = vmatprep.mubr.msk.f32.mxu1 %vm438_vm0, %v2132_v30  ;;  %v1979_v11 = vrot.slane %v11592_v44, 6  ;;  %v2620_v24 = vmul.f32 %v2518_v0, %v8963_v63  ;;  %v2137_v30 = vrot.slane %v2046_v28, 2  ;;  %7413 = vmatprep.subr.mxu0 %v6422_v33  ;;  %v11598_v28 = vld [vmem:[#allocation74_spill] sm:$0xff]  ;;  %v1981_v44 = vrot.slane %v11599_v9, 6  ;;  %v11606_v63 = vld [vmem:[#allocation77_spill] sm:$0xff] }
 0x1a6   : > { %3959 = vperm.xlu1 %7860, %v9412_v21   ;;  %4784 = vperm.xlu0 %7879, %v9621_v8   ;;  %v9624_v21 = vpop.permute.xlu0 %3927  ;;  %v2049_v0 = vmul.f32 %v1976_v6, %v11598_v28 }
 0x1a7   : > { %11597 = vst [vmem:[#allocation24_spill] sm:$0xff] %v9624_v21  ;;  %7315 = vmatprep.mubr.msk.f32.mxu0 %vm438_vm0, %v2620_v24  ;;  %7414 = vmatpush3.msra.mxu0 %v6422_v33  ;;  %v1980_v8 = vsel %vm1929_vm3, %v1977_v34, %v1979_v11  ;;  %v1984_v32 = vsel %vm1929_vm3, %v1981_v44, %v1983_v61  ;;  %v2141_v33 = vrot.slane %v2048_v20, 2  ;;  %v11601_v34 = vld [vmem:[#allocation76_spill] sm:$0xff]  ;;  %v9651_v24 = vld [vmem:[%s11319_s8 + $0xe0] sm:$0xff] }
 0x1a8   : > { %7272 = vmatmul.mubr.msk.f32.gmra.mxu1 %vm438_vm0, %v2134_v27  ;;  %v2526_v7 = vpop.permute.xlu1 %2525  ;;  %v2623_v27 = vmul.f32 %v11600_v25, %v9004_v38  ;;  %7316 = vmatmul.mubr.msk.f32.gmra.mxu0 %vm438_vm0, %v2621_v59  ;;  %v2138_v6 = vsel %vm2097_vm4, %v2135_v53, %v2137_v30  ;;  %v2050_v25 = vmul.f32 %v1978_v43, %v11601_v34  ;;  %v11603_v59 = vld [vmem:[#allocation91_spill] sm:$0xff]  ;;  %v2143_v9 = vrot.slane %v2049_v0, 2 }
 0x1a9   : > { %7274 = vmatprep.mubr.msk.f32.mxu1 %vm438_vm0, %v2136_v56  ;;  %v2622_v23 = vmul.f32 %v2526_v7, %v9001_v47  ;;  %11602 = vst [vmem:[#allocation25_spill] sm:$0xff] %v9651_v24  ;;  %v1985_v56 = vrot.slane %v11603_v59, 6  ;;  %v2140_v53 = vsel %vm2097_vm4, %v2137_v30, %v2139_v31  ;;  %v11604_v7 = vld [vmem:[#allocation80_spill] sm:$0xff]  ;;  %v11605_v38 = vld [vmem:[#allocation23_spill] sm:$0xff]  ;;  %v1982_v21 = vsel %vm1929_vm3, %v1979_v11, %v1981_v44  ;;  %v9675_v11 = vld [vmem:[%s11319_s8 + $0xf0] sm:$0xff] }
 0x1aa   : > { %7861 = vset.pattern.permute.xlu1 %v11514_v22  ;;  %4790 = vperm.xlu0 %7879, %v9651_v24   ;;  %v2051_v20 = vmul.f32 %v1980_v8, %v11604_v7  ;;  %v1987_v43 = vrot.slane %v11605_v38, 6  ;;  %v2625_v24 = vmul.f32 %v11606_v63, %v9033_v15  ;;  %v9664_v59 = vpop.permute.xlu0 %3939  ;;  %v2053_v30 = vmul.f32 %v1984_v32, %v9232_v10 }
 0x1ab   : > { %3319 = vperm.xlu1 %7861, %v9644_v42   ;;  %7318 = vmatprep.mubr.msk.f32.mxu0 %vm438_vm0, %v2622_v23  ;;  %v2142_v8 = vsel %vm2097_vm4, %v2139_v31, %v2141_v33  ;;  %v2145_v38 = vrot.slane %v2050_v25, 2  ;;  %v2052_v0 = vmul.f32 %v1982_v21, %v9229_v57  ;;  %v1986_v63 = vsel %vm1929_vm3, %v1983_v61, %v1985_v56  ;;  %v11607_v23 = vld [vmem:[#allocation86_spill] sm:$0xff] }
 0x1ac   : > { %7275 = vmatmul.mubr.msk.f32.gmra.mxu1 %vm438_vm0, %v2138_v6  ;;  %v2534_v47 = vpop.permute.xlu1 %2533  ;;  %7319 = vmatmul.mubr.msk.f32.gmra.mxu0 %vm438_vm0, %v2623_v27  ;;  %v2144_v31 = vsel %vm2097_vm4, %v2141_v33, %v2143_v9  ;;  %v1988_v21 = vsel %vm1929_vm3, %v1985_v56, %v1987_v43  ;;  %v1991_v44 = vrot.slane %v9415_v58, 6  ;;  %v2627_v32 = vmul.f32 %v11607_v23, %v9068_v14 }
 0x1ad   : > { %7277 = vmatprep.mubr.msk.f32.mxu1 %vm438_vm0, %v2140_v53  ;;  %v2624_v6 = vmul.f32 %v2534_v47, %v9030_v12  ;;  %v1989_v47 = vrot.slane %v9387_v35, 6  ;;  %v2054_v35 = vmul.f32 %v1986_v63, %v9264_v29  ;;  %v2146_v33 = vsel %vm2097_vm4, %v2143_v9, %v2145_v38 }
 0x1ae   : > { %4796 = vperm.xlu0 %7879, %v9675_v11   ;;  %v2149_v25 = vrot.slane %v2052_v0, 2  ;;  %v2151_v56 = vrot.slane %v2053_v30, 2  ;;  %v2055_v58 = vmul.f32 %v1988_v21, %v9270_v26  ;;  %v11608_v30 = vld [vmem:[#allocation93_spill] sm:$0xff] }
 0x1af   : > { %3322 = vperm.xlu1 %7861, %v9459_v52   ;;  %7321 = vmatprep.mubr.msk.f32.mxu0 %vm438_vm0, %v2624_v6  ;;  %v2147_v52 = vrot.slane %v2051_v20, 2  ;;  %v1990_v53 = vsel %vm1929_vm3, %v1987_v43, %v1989_v47  ;;  %v9695_v20 = vpop.permute.xlu0 %3951  ;;  %v1992_v9 = vsel %vm1929_vm3, %v1989_v47, %v1991_v44 }
 0x1b0   : > { %7278 = vmatmul.mubr.msk.f32.gmra.mxu1 %vm438_vm0, %v2142_v8  ;;  %v2542_v27 = vpop.permute.xlu1 %2541  ;;  %7322 = vmatmul.mubr.msk.f32.gmra.mxu0 %vm438_vm0, %v2625_v24  ;;  %v9702_v24 = vld [vmem:[%s11319_s8 + $0x58] sm:$0xff]  ;;  %v2629_v8 = vmul.f32 %v11608_v30, %v9108_v40  ;;  %v2056_v63 = vmul.f32 %v1990_v53, %v9306_v17  ;;  %v2155_v21 = vrot.slane %v2055_v58, 2  ;;  %v2057_v47 = vmul.f32 %v1992_v9, %v9314_v2 }
 0x1b1   : > { %7280 = vmatprep.mubr.msk.f32.mxu1 %vm438_vm0, %v2144_v31  ;;  %v2626_v61 = vmul.f32 %v2542_v27, %v9065_v51  ;;  %v2148_v6 = vsel %vm2097_vm4, %v2145_v38, %v2147_v52  ;;  %v2153_v38 = vrot.slane %v2054_v35, 2  ;;  %v2150_v31 = vsel %vm2097_vm4, %v2147_v52, %v2149_v25  ;;  %v11609_v52 = vld [vmem:[#allocation100_spill] sm:$0xff] }
 0x1b2   : > { %v2152_v27 = vsel %vm2097_vm4, %v2149_v25, %v2151_v56  ;;  %v2631_v35 = vmul.f32 %v11609_v52, %v9149_v13  ;;  %v2058_v58 = vmul.f32 %v1991_v44, %v9325_v16  ;;  %v2633_v44 = vmul.f32 %v9390_v45, %v11598_v28  ;;  %v11611_v52 = vld [vmem:[#allocation35_spill] sm:$0xff] }
 0x1b3   : > { %7862 = vset.pattern.permute.xlu1 %v11530_v62  ;;  %7324 = vmatprep.mubr.msk.f32.mxu0 %vm438_vm0, %v2626_v61  ;;  %v2154_v25 = vsel %vm2097_vm4, %v2151_v56, %v2153_v38  ;;  %v2156_v53 = vsel %vm2097_vm4, %v2153_v38, %v2155_v21 }
 0x1b4   : > { %7281 = vmatmul.mubr.msk.f32.gmra.mxu1 %vm438_vm0, %v2146_v33  ;;  %3967 = vperm.xlu1 %7862, %v9702_v24   ;;  %v2550_v43 = vpop.permute.xlu1 %2549  ;;  %v2157_v33 = vrot.slane %v2056_v63, 2  ;;  %v2161_v56 = vrot.slane %v2058_v58, 2  ;;  %v2635_v63 = vmul.f32 %v9438_v41, %v11604_v7  ;;  %v2639_v58 = vmul.f32 %v9499_v19, %v9270_v26  ;;  %v6458_v19 = vld [vmem:[%s11314_s3 + $0xc0] sm:$0xff] }
 0x1b5   : > { %7283 = vmatprep.mubr.msk.f32.mxu1 %vm438_vm0, %v2148_v6  ;;  %v2628_v0 = vmul.f32 %v2550_v43, %v9105_v18  ;;  %7325 = vmatmul.mubr.msk.f32.gmra.mxu0 %vm438_vm0, %v2627_v32  ;;  %v9720_v32 = vpop.permute.xlu0 %3963 }
 0x1b6   : > { %v2158_v43 = vsel %vm2097_vm4, %v2155_v21, %v2157_v33  ;;  %v11610_v21 = vld [vmem:[#allocation32_spill] sm:$0xff] }
 0x1b7   : > { %7327 = vmatprep.mubr.msk.f32.mxu0 %vm438_vm0, %v2628_v0  ;;  %v9748_v0 = vld [vmem:[%s11319_s8 + $0x98] sm:$0xff] }
 0x1b8   : > { %7284 = vmatmul.mubr.msk.f32.gmra.mxu1 %vm438_vm0, %v2150_v31  ;;  %3971 = vperm.xlu1 %7862, %v9399_v39   ;;  %v2558_v23 = vpop.permute.xlu1 %2557  ;;  %v2159_v39 = vrot.slane %v2057_v47, 2 }
 0x1b9   : > { %7286 = vmatprep.mubr.msk.f32.mxu1 %vm438_vm0, %v2152_v27  ;;  %v2630_v61 = vmul.f32 %v2558_v23, %v9137_v46  ;;  %7328 = vmatmul.mubr.msk.f32.gmra.mxu0 %vm438_vm0, %v2629_v8  ;;  %v9739_v30 = vpop.permute.xlu0 %3975  ;;  %v2637_v23 = vmul.f32 %v9467_v5, %v9232_v10 }
 0x1ba   : > { %v2160_v8 = vsel %vm2097_vm4, %v2157_v33, %v2159_v39  ;;  %v2162_v31 = vsel %vm2097_vm4, %v2159_v39, %v2161_v56  ;;  %v6459_v33 = vld [vmem:[%s11314_s3 + $0xc8] sm:$0xff]  ;;  %v11613_v39 = vld [vmem:[#allocation39_spill] sm:$0xff] }
 0x1bb   : > { %7330 = vmatprep.mubr.msk.f32.mxu0 %vm438_vm0, %v2630_v61  ;;  %v6460_v61 = vld [vmem:[%s11314_s3 + $0xd0] sm:$0xff]  ;;  %v11615_v56 = vld [vmem:[#allocation44_spill] sm:$0xff] }
 0x1bc   : > { %7287 = vmatmul.mubr.msk.f32.gmra.mxu1 %vm438_vm0, %v2154_v25  ;;  %7863 = vset.pattern.permute.xlu1 %v11514_v22  ;;  %v2566_v6 = vpop.permute.xlu1 %2565 }
 0x1bd   : > { %7289 = vmatprep.mubr.msk.f32.mxu1 %vm438_vm0, %v2156_v53  ;;  %3328 = vperm.xlu1 %7863, %v9509_v3   ;;  %v2632_v9 = vmul.f32 %v2566_v6, %v11595_v49  ;;  %v9761_v27 = vpop.permute.xlu0 %3987 }
 0x1be   : > { %7331 = vmatmul.mubr.msk.f32.gmra.mxu0 %vm438_vm0, %v2631_v35  ;;  %v11612_v35 = vld [vmem:[#allocation36_spill] sm:$0xff] }
 0x1bf   : > { %7333 = vmatprep.mubr.msk.f32.mxu0 %vm438_vm0, %v2632_v9  ;;  %v2641_v9 = vmul.f32 %v9538_v37, %v9314_v2 }
 0x1c0   : > { %7290 = vmatmul.mubr.msk.f32.gmra.mxu1 %vm438_vm0, %v2158_v43  ;;  %v2574_v45 = vpop.permute.xlu1 %2573  ;;  %v11616_v43 = vld [vmem:[#allocation46_spill] sm:$0xff] }
 0x1c1   : > { %7292 = vmatprep.mubr.msk.f32.mxu1 %vm438_vm0, %v2160_v8  ;;  %3331 = vperm.xlu1 %7863, %v9748_v0   ;;  %v2634_v38 = vmul.f32 %v2574_v45, %v11601_v34  ;;  %v9785_v25 = vpop.permute.xlu0 %3999 }
 0x1c2   : > { %7334 = vmatmul.mubr.msk.f32.gmra.mxu0 %vm438_vm0, %v2633_v44  ;;  %v9802_v44 = vld [vmem:[%s11319_s8 + $0xa8] sm:$0xff] }
 0x1c3   : > { %7336 = vmatprep.mubr.msk.f32.mxu0 %vm438_vm0, %v2634_v38 }
 0x1c4   : > { %7293 = vmatmul.mubr.msk.f32.gmra.mxu1 %vm438_vm0, %v2162_v31  ;;  %v2582_v47 = vpop.permute.xlu1 %2581  ;;  %v11618_v31 = vld [vmem:[#allocation54_spill] sm:$0xff] }
 0x1c5   : > { %7359 = vmatprep.mubr.msk.f32.mxu1 %vm438_vm0, %v11610_v21  ;;  %7864 = vset.pattern.permute.xlu1 %v11530_v62  ;;  %v2636_v41 = vmul.f32 %v2582_v47, %v9229_v57  ;;  %v3278_v8 = vpop.permute.xlu0 %3277 }
 0x1c6   : > { %3979 = vperm.xlu1 %7864, %v9427_v55   ;;  %7337 = vmatmul.mubr.msk.f32.gmra.mxu0 %vm438_vm0, %v2635_v63  ;;  %v3370_v45 = vrot.slane %v3278_v8, 6  ;;  %v11617_v63 = vld [vmem:[#allocation50_spill] sm:$0xff] }
 0x1c7   : > { %7339 = vmatprep.mubr.msk.f32.mxu0 %vm438_vm0, %v2636_v41 }
 0x1c8   : > { %7360 = vmatmul.mubr.msk.f32.vlgmr.msra.gmra.mxu1 %vm438_vm0, %v11611_v52 }
 0x1c9   : > { %7362 = vmatprep.mubr.msk.f32.mxu1 %vm438_vm0, %v11612_v35  ;;  %v2590_v55 = vpop.permute.xlu1 %2589  ;;  %7464 = vmatpush3.msra.mxu1 %v9488_v48  ;;  %v11614_v48 = vld [vmem:[#allocation41_spill] sm:$0xff] }
 0x1ca   : > { %3983 = vperm.xlu1 %7864, %v9644_v42   ;;  %v2638_v5 = vmul.f32 %v2590_v55, %v9264_v29  ;;  %7465 = vmatprep.subr.mxu1 %v6460_v61 }
 0x1cb   : > { %7340 = vmatmul.mubr.msk.f32.gmra.mxu0 %vm438_vm0, %v2637_v23  ;;  %7466 = vmatpush3.msra.mxu1 %v6460_v61  ;;  %v11619_v23 = vld [vmem:[#allocation55_spill] sm:$0xff]  ;;  %v11620_v61 = vld [vmem:[#allocation56_spill] sm:$0xff] }
 0x1cc   : > { %7363 = vmatmul.mubr.msk.f32.gmra.mxu1 %vm438_vm0, %v11613_v39  ;;  %7342 = vmatprep.mubr.msk.f32.mxu0 %vm438_vm0, %v2638_v5 }
 0x1cd   : > { %7365 = vmatprep.mubr.msk.f32.mxu1 %vm438_vm0, %v11614_v48  ;;  %v2598_v53 = vpop.permute.xlu1 %2597  ;;  %7467 = vmatprep.subr.mxu1 %v6459_v33  ;;  %v11645_v48 = vld [vmem:[#allocation97_spill] sm:$0xff] }
 0x1ce   : > { %7865 = vset.pattern.permute.xlu1 %v11514_v22  ;;  %v2640_v6 = vmul.f32 %v2598_v53, %v9306_v17  ;;  %7468 = vmatpush3.msra.mxu1 %v6459_v33  ;;  %v11621_v33 = vld [vmem:[#allocation60_spill] sm:$0xff] }
 0x1cf   : > { %3337 = vperm.xlu1 %7865, %v9802_v44   ;;  %7343 = vmatmul.mubr.msk.f32.gmra.mxu0 %vm438_vm0, %v2639_v58 }
 0x1d0   : > { %7366 = vmatmul.mubr.msk.f32.gmra.mxu1 %vm438_vm0, %v11615_v56  ;;  %7345 = vmatprep.mubr.msk.f32.mxu0 %vm438_vm0, %v2640_v6  ;;  %v11622_v6 = vld [vmem:[#allocation62_spill] sm:$0xff] }
 0x1d1   : > { %7368 = vmatprep.mubr.msk.f32.mxu1 %vm438_vm0, %v11616_v43  ;;  %7469 = vmatprep.subr.mxu1 %v6458_v19  ;;  %v11643_v43 = vld [vmem:[#allocation42_spill] sm:$0xff] }
 0x1d2   : > { %v3275_v37 = vpop.permute.xlu1 %3274  ;;  %7470 = vmatpush3.msra.mxu1 %v6458_v19 }
 0x1d3   : > { %3340 = vperm.xlu1 %7865, %v9563_v60   ;;  %7346 = vmatmul.mubr.msk.f32.gmra.mxu0 %vm438_vm0, %v2641_v9  ;;  %v3369_v38 = vrot.slane %v3275_v37, 6  ;;  %v9824_v60 = vld [vmem:[%s11319_s8 + $0x88] sm:$0xff]  ;;  %v11624_v37 = vld [vmem:[#allocation65_spill] sm:$0xff] }
 0x1d4   : > { %7369 = vmatmul.mubr.msk.f32.gmra.mxu1 %vm438_vm0, %v11617_v63  ;;  %v11623_v9 = vld [vmem:[#allocation104_spill] sm:$0xff] }
 0x1d5   : > { %7371 = vmatprep.mubr.msk.f32.mxu1 %vm438_vm0, %v11618_v31  ;;  %v3371_v47 = vsel %vm1929_vm3, %v3369_v38, %v3370_v45  ;;  %v3465_v52 = vmul.f32 %v3369_v38, %v8847_v54  ;;  %v2643_v54 = vmul.f32 %v9583_v50, %v11623_v9  ;;  %v11642_v31 = vld [vmem:[#allocation38_spill] sm:$0xff] }
 0x1d6   : > { %v3281_v21 = vpop.permute.xlu1 %3280  ;;  %v3466_v55 = vmul.f32 %v3371_v47, %v8844_v1  ;;  %v3290_v47 = vpop.permute.xlu0 %3289 }
 0x1d7   : > { %7866 = vset.pattern.permute.xlu1 %v11530_v62  ;;  %v3372_v41 = vrot.slane %v3281_v21, 6  ;;  %v3536_v8 = vrot.slane %v3465_v52, 2  ;;  %v3378_v52 = vrot.slane %v3290_v47, 6 }
 0x1d8   : > { %7372 = vmatmul.mubr.msk.f32.gmra.mxu1 %vm438_vm0, %v11619_v23  ;;  %3991 = vperm.xlu1 %7866, %v9824_v60   ;;  %v3537_v1 = vrot.slane %v3466_v55, 2  ;;  %v11641_v23 = vld [vmem:[#allocation25_spill] sm:$0xff] }
 0x1d9   : > { %7374 = vmatprep.mubr.msk.f32.mxu1 %vm438_vm0, %v11620_v61  ;;  %v3373_v5 = vsel %vm1929_vm3, %v3370_v45, %v3372_v41  ;;  %v11625_v45 = vld [vmem:[#allocation66_spill] sm:$0xff] }
 0x1da   : > { %v3467_v53 = vmul.f32 %v3373_v5, %v8862_v36  ;;  %v3538_v50 = vsel %vm2097_vm4, %v3536_v8, %v3537_v1  ;;  %v11626_v5 = vld [vmem:[#allocation69_spill] sm:$0xff] }
 0x1dc   : > { %7375 = vmatmul.mubr.msk.f32.gmra.mxu1 %vm438_vm0, %v11621_v33  ;;  %3995 = vperm.xlu1 %7866, %v9509_v3   ;;  %v2606_v58 = vpop.permute.xlu1 %2605  ;;  %v3539_v3 = vrot.slane %v3467_v53, 2  ;;  %v11632_v33 = vld [vmem:[#allocation78_spill] sm:$0xff] }
 0x1dd   : > { %7377 = vmatprep.mubr.msk.f32.mxu1 %vm438_vm0, %v11622_v6  ;;  %v2642_v19 = vmul.f32 %v2606_v58, %v9325_v16  ;;  %v11627_v58 = vld [vmem:[#allocation31_spill] sm:$0xff] }
 0x1de   : > { %v3540_v8 = vsel %vm2097_vm4, %v3537_v1, %v3539_v3 }
 0x1df   : > { %7348 = vmatprep.mubr.msk.f32.mxu0 %vm438_vm0, %v2642_v19  ;;  %v11628_v19 = vld [vmem:[#allocation72_spill] sm:$0xff] }
 0x1e0   : > { %7378 = vmatmul.mubr.msk.f32.gmra.mxu1 %vm438_vm0, %v11624_v37  ;;  %7867 = vset.pattern.permute.xlu1 %v11514_v22  ;;  %v11631_v37 = vld [vmem:[#allocation34_spill] sm:$0xff] }
 0x1e1   : > { %7380 = vmatprep.mubr.msk.f32.mxu1 %vm438_vm0, %v11625_v45  ;;  %3346 = vperm.xlu1 %7867, %v9594_v4   ;;  %v3284_v38 = vpop.permute.xlu1 %3283 }
 0x1e2   : > { %7349 = vmatmul.mubr.msk.f32.gmra.mxu0 %vm438_vm0, %v2643_v54  ;;  %v3374_v21 = vrot.slane %v3284_v38, 6  ;;  %v9860_v54 = vld [vmem:[%s11319_s8 + $0xc8] sm:$0xff] }
 0x1e3   : > { %7415 = vmatprep.mubr.msk.f32.mxu0 %vm438_vm0, %v3538_v50 }
 0x1e4   : > { %v3375_v55 = vsel %vm1929_vm3, %v3372_v41, %v3374_v21  ;;  %7381 = vmatmul.mubr.msk.f32.gmra.mxu1 %vm438_vm0, %v11626_v5  ;;  %v11629_v5 = vld [vmem:[#allocation75_spill] sm:$0xff] }
 0x1e5   : > { %v3468_v53 = vmul.f32 %v3375_v55, %v11627_v58  ;;  %7383 = vmatprep.mubr.msk.f32.mxu1 %vm438_vm0, %v11628_v19  ;;  %3349 = vperm.xlu1 %7867, %v9860_v54   ;;  %v3287_v38 = vpop.permute.xlu1 %3286  ;;  %v11630_v19 = vld [vmem:[#allocation33_spill] sm:$0xff] }
 0x1e6   : > { %7416 = vmatmul.mubr.msk.f32.vlgmr.msra.gmra.mxu0 %vm438_vm0, %v3540_v8  ;;  %v3376_v41 = vrot.slane %v3287_v38, 6 }
 0x1e7   : > { %v3541_v50 = vrot.slane %v3468_v53, 2  ;;  %v11633_v53 = vld [vmem:[#allocation16_spill] sm:$0xff] }
 0x1e8   : > { %v3377_v47 = vsel %vm1929_vm3, %v3374_v21, %v3376_v41  ;;  %v3379_v55 = vsel %vm1929_vm3, %v3376_v41, %v3378_v52  ;;  %7384 = vmatmul.mubr.msk.f32.gmra.mxu1 %vm438_vm0, %v11629_v5  ;;  %v6497_v21 = vld [vmem:[%s11314_s3 + $0xf8] sm:$0xff] }
 0x1e9   : > { %v3469_v45 = vmul.f32 %v3377_v47, %v11630_v19  ;;  %v3470_v6 = vmul.f32 %v3379_v55, %v11631_v37  ;;  %7386 = vmatprep.mubr.msk.f32.mxu1 %vm438_vm0, %v11632_v33  ;;  %7869 = vset.pattern.permute.xlu1 %v11530_v62  ;;  %v3542_v1 = vsel %vm2097_vm4, %v3539_v3, %v3541_v50  ;;  %v9885_v47 = vld [vmem:[%s11314_s3 + $0x118] sm:$0xff]  ;;  %v11634_v55 = vld [vmem:[#allocation79_spill] sm:$0xff] }
 0x1ea   : > { %4003 = vperm.xlu1 %7869, %v11633_v53   ;;  %7418 = vmatprep.mubr.msk.f32.mxu0 %vm438_vm0, %v3542_v1  ;;  %v11635_v3 = vld [vmem:[#allocation83_spill] sm:$0xff]  ;;  %v11639_v33 = vld [vmem:[#allocation90_spill] sm:$0xff] }
 0x1eb   : > { %v3543_v8 = vrot.slane %v3469_v45, 2  ;;  %v3545_v38 = vrot.slane %v3470_v6, 2  ;;  %v9880_v41 = vpop.permute.xlu1 %3923  ;;  %7519 = vmatprep.subr.mxu0 %v6497_v21  ;;  %7575 = vmatprep.subr.mxu1 %v9885_v47  ;;  %v11636_v6 = vld [vmem:[#allocation84_spill] sm:$0xff] }
 0x1ec   : > { %7387 = vmatmul.mubr.msk.f32.gmra.mxu1 %vm438_vm0, %v11634_v55  ;;  %7520 = vmatpush3.msra.mxu0 %v6497_v21  ;;  %v11637_v21 = vld [vmem:[#allocation87_spill] sm:$0xff]  ;;  %v3299_v55 = vpop.permute.xlu0 %3298 }
 0x1ed   : > { %7389 = vmatprep.mubr.msk.f32.mxu1 %vm438_vm0, %v11635_v3  ;;  %v3544_v53 = vsel %vm2097_vm4, %v3541_v50, %v3543_v8  ;;  %v3546_v45 = vsel %vm2097_vm4, %v3543_v8, %v3545_v38  ;;  %v3384_v50 = vrot.slane %v3299_v55, 6 }
 0x1ee   : > { %4007 = vperm.xlu1 %7869, %v9802_v44   ;;  %7419 = vmatmul.mubr.msk.f32.gmra.mxu0 %vm438_vm0, %v3544_v53  ;;  %v9906_v53 = vld [vmem:[%s11319_s8 + $0xd8] sm:$0xff] }
 0x1ef   : > { %7421 = vmatprep.mubr.msk.f32.mxu0 %vm438_vm0, %v3546_v45  ;;  %v11638_v45 = vld [vmem:[#allocation37_spill] sm:$0xff] }
 0x1f0   : > { %7390 = vmatmul.mubr.msk.f32.gmra.mxu1 %vm438_vm0, %v11636_v6  ;;  %v3293_v1 = vpop.permute.xlu1 %3292  ;;  %v9971_v35 = vpop.permute.xlu0 %3307 }
 0x1f1   : > { %7392 = vmatprep.mubr.msk.f32.mxu1 %vm438_vm0, %v11637_v21  ;;  %v3380_v3 = vrot.slane %v3293_v1, 6  ;;  %v11640_v1 = vld [vmem:[#allocation92_spill] sm:$0xff] }
 0x1f2   : > { %7870 = vset.pattern.permute.xlu1 %v11514_v22 }
 0x1f3   : > { %v3381_v8 = vsel %vm1929_vm3, %v3378_v52, %v3380_v3  ;;  %3355 = vperm.xlu1 %7870, %v9906_v53  }
 0x1f4   : > { %v3471_v6 = vmul.f32 %v3381_v8, %v11638_v45  ;;  %7393 = vmatmul.mubr.msk.f32.gmra.mxu1 %vm438_vm0, %v11639_v33  ;;  %v3296_v21 = vpop.permute.xlu1 %3295  ;;  %v11644_v8 = vld [vmem:[#allocation96_spill] sm:$0xff] }
 0x1f5   : > { %7395 = vmatprep.mubr.msk.f32.mxu1 %vm438_vm0, %v11640_v1  ;;  %v3382_v5 = vrot.slane %v3296_v21, 6  ;;  %v11650_v1 = vld [vmem:[#allocation103_spill] sm:$0xff] }
 0x1f6   : > { %v3547_v55 = vrot.slane %v3471_v6, 2 }
 0x1f7   : > { %v3383_v52 = vsel %vm1929_vm3, %v3380_v3, %v3382_v5  ;;  %v3385_v61 = vsel %vm1929_vm3, %v3382_v5, %v3384_v50  ;;  %3358 = vperm.xlu1 %7870, %v11641_v23   ;;  %v6496_v5 = vld [vmem:[%s11314_s3 + $0xf0] sm:$0xff] }
 0x1f8   : > { %v3472_v63 = vmul.f32 %v3383_v52, %v11642_v31  ;;  %v9919_v56 = vmul.f32 %v3385_v61, %v11643_v43  ;;  %7396 = vmatmul.mubr.msk.f32.gmra.mxu1 %vm438_vm0, %v11644_v8  ;;  %v3548_v33 = vsel %vm2097_vm4, %v3545_v38, %v3547_v55  ;;  %7521 = vmatprep.subr.mxu0 %v6496_v5  ;;  %v11646_v61 = vld [vmem:[#allocation99_spill] sm:$0xff]  ;;  %v11648_v52 = vld [vmem:[#allocation101_spill] sm:$0xff]  ;;  %v11649_v8 = vld [vmem:[#allocation102_spill] sm:$0xff] }
 0x1f9   : > { %7398 = vmatprep.mubr.msk.f32.mxu1 %vm438_vm0, %v11645_v48  ;;  %v3932_v6 = vpop.permute.xlu1 %3931  ;;  %7422 = vmatmul.mubr.msk.f32.gmra.mxu0 %vm438_vm0, %v3548_v33  ;;  %v9934_v38 = vsel %vm824_vm1, %v11646_v61, 0.0  ;;  %v9941_v33 = vld [vmem:[%s11319_s8 + $0xb8] sm:$0xff]  ;;  %v7193_v48 = vpop.f32.mrf.mxu0 }
 0x1fa   : > { %v3549_v3 = vrot.slane %v3472_v63, 2  ;;  %v3551_v21 = vrot.slane %v9919_v56, 2  ;;  %7522 = vmatpush3.msra.mxu0 %v6496_v5  ;;  %11647 = vst [vmem:[#allocation17_spill] sm:$0xff] %v9934_v38  ;;  %v3008_v5 = vrot.slane %v11623_v9, 1 }
 0x1fb   : > { %7871 = vset.pattern.permute.xlu1 %v11530_v62  ;;  %v9960_v39 = vpop.f32.mrf.mxu0 }
 0x1fc   : > { %7399 = vmatmul.mubr.msk.f32.gmra.mxu1 %vm438_vm0, %v11648_v52  ;;  %4015 = vperm.xlu1 %7871, %v9941_v33   ;;  %v3550_v56 = vsel %vm2097_vm4, %v3547_v55, %v3549_v3  ;;  %v3552_v63 = vsel %vm2097_vm4, %v3549_v3, %v3551_v21  ;;  %v11651_v55 = vrot.slane %v9325_v16, 1  ;;  %11653 = vst [vmem:[#allocation18_spill] sm:$0xff] %v9960_v39 }
 0x1fd   : > { %7401 = vmatprep.mubr.msk.f32.mxu1 %vm438_vm0, %v11649_v8  ;;  %v3936_v61 = vpop.permute.xlu1 %3935  ;;  %7424 = vmatprep.mubr.msk.f32.mxu0 %vm438_vm0, %v3550_v56  ;;  %v11654_v8 = vrot.slane %v9934_v38, 1 }
 0x1fe   : > { %7425 = vmatmul.mubr.msk.f32.gmra.mxu0 %vm438_vm0, %v3552_v63  ;;  %v9957_v3 = vsel %vm1158_vm2, %v11651_v55, %v3008_v5  ;;  %v4050_v63 = vmul.f32 %v9880_v41, %v8862_v36  ;;  %v11656_v41 = vld [vmem:[#allocation24_spill] sm:$0xff] }
 0x1ff   : > { %11652 = vst [vmem:[#allocation26_spill] sm:$0xff] %v9957_v3 }
 0x200   : > { %7402 = vmatmul.mubr.msk.f32.gmra.mxu1 %vm438_vm0, %v11650_v1  ;;  %4019 = vperm.xlu1 %7871, %v9594_v4   ;;  %v9969_v1 = vsel %vm1158_vm2, %v3008_v5, %v11654_v8  ;;  %v4051_v8 = vmul.f32 %v11656_v41, %v11627_v58  ;;  %v11657_v5 = vld [vmem:[#allocation43_spill] sm:$0xff]  ;;  %v11660_v41 = vrot.slane %v9971_v35, 6 }
 0x201   : > { %7404 = vmatprep.mubr.msk.f32.mxu1 %vm438_vm0, %v9957_v3  ;;  %11655 = vst [vmem:[#allocation27_spill] sm:$0xff] %v9969_v1 }
 0x202   : > { %v3302_v56 = vpop.permute.xlu1 %3301 }
 0x203   : > { %v3386_v52 = vrot.slane %v3302_v56, 6  ;;  %v7196_v4 = vpop.f32.mrf.mxu0  ;;  %v7137_v36 = vpop.f32.mrf.mxu1 }
 0x204   : > { %7405 = vmatmul.mubr.msk.f32.gmra.mxu1 %vm438_vm0, %v9969_v1  ;;  %7872 = vset.pattern.permute.xlu1 %v11514_v22  ;;  %v4052_v1 = vmul.f32 %v3932_v6, %v11630_v19  ;;  %v9984_v22 = vadd.f32 %v7193_v48, %v7137_v36  ;;  %v10002_v36 = vld [vmem:[%s11319_s8 + $0xf8] sm:$0xff] }
 0x205   : > { %v3387_v39 = vsel %vm1929_vm3, %v3384_v50, %v3386_v52  ;;  %7471 = vmatprep.mubr.msk.f32.mxu1 %vm438_vm0, %v4050_v63  ;;  %3364 = vperm.xlu1 %7872, %v9675_v11   ;;  %v9986_v38 = vpop.f32.mrf.mxu0  ;;  %v9989_v50 = vpop.f32.mrf.mxu1  ;;  %v6532_v63 = vld [vmem:[%s11314_s3 + $0x110] sm:$0xff] }
 0x206   : > { %v3474_v56 = vmul.f32 %v3387_v39, %v11657_v5  ;;  %v3305_v3 = vpop.permute.xlu1 %3304  ;;  %11658 = vst [vmem:[#allocation28_spill] sm:$0xff] %v9986_v38  ;;  %11659 = vst [vmem:[#allocation29_spill] sm:$0xff] %v9989_v50  ;;  %v11662_v50 = vld [vmem:[#allocation49_spill] sm:$0xff] }
 0x207   : > { %v3388_v9 = vrot.slane %v3305_v3, 6  ;;  %v4053_v3 = vmul.f32 %v3936_v61, %v11631_v37 }
 0x208   : > { %v3553_v55 = vrot.slane %v3474_v56, 2  ;;  %7472 = vmatmul.mubr.msk.f32.vlgmr.msra.gmra.mxu1 %vm438_vm0, %v4051_v8  ;;  %v7199_v48 = vpop.f32.mrf.mxu0  ;;  %v11661_v8 = vld [vmem:[#allocation48_spill] sm:$0xff] }
 0x209   : > { %v3389_v39 = vsel %vm1929_vm3, %v3386_v52, %v3388_v9  ;;  %v3391_v6 = vsel %vm1929_vm3, %v3388_v9, %v11660_v41  ;;  %7474 = vmatprep.mubr.msk.f32.mxu1 %vm438_vm0, %v4052_v1  ;;  %3367 = vperm.xlu1 %7872, %v10002_v36   ;;  %v7140_v38 = vpop.f32.mrf.mxu1  ;;  %v6495_v1 = vld [vmem:[%s11314_s3 + $0xe8] sm:$0xff]  ;;  %v4054_v41 = vmul.f32 %v9664_v59, %v11638_v45 }
 0x20a   : > { %v3475_v56 = vmul.f32 %v3389_v39, %v11661_v8  ;;  %v10008_v52 = vmul.f32 %v3391_v6, %v11662_v50  ;;  %v3554_v9 = vsel %vm2097_vm4, %v3551_v21, %v3553_v55  ;;  %7576 = vmatpush3.msra.mxu1 %v9885_v47  ;;  %v10017_v19 = vadd.f32 %v7196_v4, %v7140_v38  ;;  %v10020_v39 = vpop.f32.mrf.mxu0  ;;  %v6531_v59 = vld [vmem:[%s11314_s3 + $0x108] sm:$0xff]  ;;  %v11665_v4 = vld [vmem:[#allocation22_spill] sm:$0xff] }
 0x20b   : > { %v3944_v61 = vpop.permute.xlu1 %3943  ;;  %7427 = vmatprep.mubr.msk.f32.mxu0 %vm438_vm0, %v3554_v9  ;;  %11663 = vst [vmem:[#allocation47_spill] sm:$0xff] %v10020_v39  ;;  %7577 = vmatprep.subr.mxu1 %v6532_v63  ;;  %v10025_v37 = vpop.f32.mrf.mxu1 }
 0x20c   : > { %v3555_v6 = vrot.slane %v3475_v56, 2  ;;  %v11434_v21 = vrot.slane %v10008_v52, 2  ;;  %7475 = vmatmul.mubr.msk.f32.gmra.mxu1 %vm438_vm0, %v4053_v3  ;;  %v4055_v47 = vmul.f32 %v3944_v61, %v11642_v31  ;;  %11664 = vst [vmem:[#allocation19_spill] sm:$0xff] %v10025_v37  ;;  %7523 = vmatprep.subr.mxu0 %v6495_v1  ;;  %v7202_v38 = vpop.f32.mrf.mxu0 }
 0x20d   : > { %7477 = vmatprep.mubr.msk.f32.mxu1 %vm438_vm0, %v4054_v41  ;;  %7873 = vset.pattern.permute.xlu1 %v11530_v62  ;;  %v7143_v56 = vpop.f32.mrf.mxu1 }
 0x20e   : > { %4027 = vperm.xlu1 %7873, %v11665_v4   ;;  %v3556_v9 = vsel %vm2097_vm4, %v3553_v55, %v3555_v6  ;;  %v3558_v3 = vsel %vm2097_vm4, %v3555_v6, %v11434_v21  ;;  %7578 = vmatpush3.msra.mxu1 %v6532_v63  ;;  %v10037_v61 = vadd.f32 %v7199_v48, %v7143_v56  ;;  %v10040_v37 = vpop.f32.mrf.mxu0 }
 0x20f   : > { %v3948_v39 = vpop.permute.xlu1 %3947  ;;  %7428 = vmatmul.mubr.msk.f32.gmra.mxu0 %vm438_vm0, %v3556_v9  ;;  %11666 = vst [vmem:[#allocation53_spill] sm:$0xff] %v10040_v37  ;;  %7579 = vmatprep.subr.mxu1 %v6531_v59  ;;  %v10044_v4 = vpop.f32.mrf.mxu1  ;;  %v4057_v63 = vmul.f32 %v9695_v20, %v11657_v5  ;;  %v11670_v9 = vmov 8  }
 0x210   : > { %7478 = vmatmul.mubr.msk.f32.gmra.mxu1 %vm438_vm0, %v4055_v47  ;;  %v4056_v41 = vmul.f32 %v3948_v39, %v11643_v43  ;;  %11667 = vst [vmem:[#allocation40_spill] sm:$0xff] %v10044_v4  ;;  %7430 = vmatprep.mubr.msk.f32.mxu0 %vm438_vm0, %v3558_v3  ;;  %v7205_v55 = vpop.f32.mrf.mxu0  ;;  %v6494_v39 = vld [vmem:[%s11314_s3 + $0xe0] sm:$0xff] }
 0x211   : > { %7524 = vmatpush3.msra.mxu0 %v6495_v1  ;;  %7580 = vmatpush3.msra.mxu1 %v6531_v59 }
 0x212   : > { %4035 = vperm.xlu1 %7873, %v11641_v23   ;;  %v7146_v48 = vpop.f32.mrf.mxu1  ;;  %7480 = vmatprep.mubr.msk.f32.mxu1 %vm438_vm0, %v4056_v41  ;;  %v10053_v47 = vpop.f32.mrf.mxu0  ;;  %v11671_v41 = vrot.slane %v9971_v35, 6 }
 0x213   : > { %v10051_v6 = vadd.f32 %v7202_v38, %v7146_v48  ;;  %11668 = vst [vmem:[#allocation45_spill] sm:$0xff] %v10053_v47  ;;  %7525 = vmatprep.subr.mxu0 %v6494_v39  ;;  %v10061_v23 = vpop.permute.xlu0 %3316 }
 0x214   : > { %7481 = vmatmul.mubr.msk.f32.gmra.mxu1 %vm438_vm0, %v4057_v63  ;;  %v3311_v1 = vpop.permute.xlu1 %3310  ;;  %v10059_v59 = vpop.f32.mrf.mxu1  ;;  %7526 = vmatpush3.msra.mxu0 %v6494_v39  ;;  %v7911_v63 = vld [vmem:[%s11319_s8] sm:$0xff] }
 0x215   : > { %11669 = vst [vmem:[#allocation20_spill] sm:$0xff] %v10059_v59  ;;  %v3392_v20 = vrot.slane %v3311_v1, 6  ;;  %v7208_v56 = vpop.f32.mrf.mxu0 }
 0x216   : > { %7874 = vset.pattern.permute.xlu1 %v11670_v9  ;;  %v7149_v38 = vpop.f32.mrf.mxu1 }
 0x217   : > { %v3393_v48 = vsel %vm1929_vm3, %v11671_v41, %v3392_v20  ;;  %v10068_v21 = vadd.f32 %v7205_v55, %v7149_v38  ;;  %4706 = vperm.xlu1 %7874, %v7911_v63   ;;  %v10073_v1 = vpop.f32.mrf.mxu0  ;;  %v11674_v55 = vrot.slane %v10061_v23, 6  ;;  %v7912_v63 = vld [vmem:[%s11319_s8 + $0x10] sm:$0xff] }
 0x218   : > { %11672 = vst [vmem:[#allocation59_spill] sm:$0xff] %v10073_v1  ;;  %v3477_v39 = vmul.f32 %v3393_v48, %v9030_v12  ;;  %v3314_v47 = vpop.permute.xlu1 %3313  ;;  %v10076_v37 = vpop.f32.mrf.mxu1 }
 0x219   : > { %11673 = vst [vmem:[#allocation61_spill] sm:$0xff] %v10076_v37  ;;  %v3394_v59 = vrot.slane %v3314_v47, 6  ;;  %v7211_v4 = vpop.f32.mrf.mxu0 }
 0x21a   : > { %v3559_v3 = vrot.slane %v3477_v39, 2  ;;  %v7152_v41 = vpop.f32.mrf.mxu1 }
 0x21b   : > { %v3395_v35 = vsel %vm1929_vm3, %v3392_v20, %v3394_v59  ;;  %v3397_v38 = vsel %vm1929_vm3, %v3394_v59, %v11674_v55  ;;  %4712 = vperm.xlu1 %7874, %v7912_v63   ;;  %v10089_v47 = vadd.f32 %v7208_v56, %v7152_v41  ;;  %v10091_v39 = vpop.f32.mrf.mxu0  ;;  %v11676_v20 = vrot.slane %v10008_v52, 2  ;;  %v6530_v56 = vld [vmem:[%s11314_s3 + $0x100] sm:$0xff] }
 0x21c   : > { %v3478_v48 = vmul.f32 %v3395_v35, %v9033_v15  ;;  %v10087_v1 = vmul.f32 %v3397_v38, %v9065_v51  ;;  %11675 = vst [vmem:[#allocation67_spill] sm:$0xff] %v10091_v39  ;;  %v10096_v59 = vpop.f32.mrf.mxu1  ;;  %7581 = vmatprep.subr.mxu1 %v6530_v56 }
 0x21d   : > { %v3560_v37 = vsel %vm2097_vm4, %v11676_v20, %v3559_v3  ;;  %11677 = vst [vmem:[#allocation64_spill] sm:$0xff] %v10096_v59  ;;  %v3956_v55 = vpop.permute.xlu1 %3955  ;;  %7582 = vmatpush3.msra.mxu1 %v6530_v56  ;;  %v7913_v56 = vld [vmem:[%s11319_s8 + $0x18] sm:$0xff] }
 0x21e   : > { %7431 = vmatmul.mubr.msk.f32.gmra.mxu0 %vm438_vm0, %v3560_v37  ;;  %v3561_v5 = vrot.slane %v3478_v48, 2  ;;  %v3563_v63 = vrot.slane %v10087_v1, 2  ;;  %v4058_v35 = vmul.f32 %v3956_v55, %v11661_v8  ;;  %v7214_v38 = vpop.f32.mrf.mxu0 }
 0x21f   : > { %v7155_v41 = vpop.f32.mrf.mxu1  ;;  %7877 = vset.pattern.permute.xlu1 %v11530_v62 }
 0x220   : > { %v10105_v52 = vadd.f32 %v7211_v4, %v7155_v41  ;;  %4043 = vperm.xlu1 %7877, %v9675_v11   ;;  %v10108_v20 = vpop.f32.mrf.mxu0  ;;  %7483 = vmatprep.mubr.msk.f32.mxu1 %vm438_vm0, %v4058_v35  ;;  %v3562_v37 = vsel %vm2097_vm4, %v3559_v3, %v3561_v5  ;;  %v3564_v1 = vsel %vm2097_vm4, %v3561_v5, %v3563_v63 }
 0x221   : > { %11678 = vst [vmem:[#allocation85_spill] sm:$0xff] %v10108_v20  ;;  %v10113_v48 = vpop.f32.mrf.mxu1  ;;  %v3960_v55 = vpop.permute.xlu1 %3959  ;;  %7433 = vmatprep.mubr.msk.f32.mxu0 %vm438_vm0, %v3562_v37  ;;  %v4060_v11 = vmul.f32 %v9720_v32, %v9030_v12 }
 0x222   : > { %11679 = vst [vmem:[#allocation21_spill] sm:$0xff] %v10113_v48  ;;  %v4059_v62 = vmul.f32 %v3960_v55, %v11662_v50  ;;  %v7217_v4 = vpop.f32.mrf.mxu0  ;;  %7434 = vmatmul.mubr.msk.f32.gmra.mxu0 %vm438_vm0, %v3564_v1  ;;  %v3326_v55 = vpop.permute.xlu0 %3325  ;;  %v7915_v50 = vld [vmem:[%s11319_s8 + $0x30] sm:$0xff] }
 0x223   : > { %v7158_v41 = vpop.f32.mrf.mxu1  ;;  %v3402_v20 = vrot.slane %v3326_v55, 6 }
 0x224   : > { %v10120_v35 = vadd.f32 %v7214_v38, %v7158_v41  ;;  %7878 = vset.pattern.permute.xlu1 %v11670_v9  ;;  %v10123_v5 = vpop.f32.mrf.mxu0  ;;  %7484 = vmatmul.mubr.msk.f32.gmra.mxu1 %vm438_vm0, %v4059_v62  ;;  %v11681_v62 = vrot.slane %v10061_v23, 6 }
 0x225   : > { %v10126_v3 = vpop.f32.mrf.mxu1  ;;  %4715 = vperm.xlu1 %7878, %v7913_v56   ;;  %7486 = vmatprep.mubr.msk.f32.mxu1 %vm438_vm0, %v4060_v11  ;;  %v7914_v11 = vld [vmem:[%s11319_s8 + $0x20] sm:$0xff] }
 0x226   : > { %11680 = vst [vmem:[#allocation71_spill] sm:$0xff] %v10126_v3  ;;  %v3320_v37 = vpop.permute.xlu1 %3319  ;;  %v7220_v32 = vpop.f32.mrf.mxu0 }
 0x227   : > { %v3398_v1 = vrot.slane %v3320_v37, 6  ;;  %v7161_v38 = vpop.f32.mrf.mxu1 }
 0x228   : > { %v10132_v41 = vadd.f32 %v7217_v4, %v7161_v38  ;;  %v10134_v9 = vpop.f32.mrf.mxu0 }
 0x229   : > { %v3399_v3 = vsel %vm1929_vm3, %v11681_v62, %v3398_v1  ;;  %v10139_v39 = vpop.f32.mrf.mxu1  ;;  %4718 = vperm.xlu1 %7878, %v7914_v11  }
 0x22a   : > { %v3480_v56 = vmul.f32 %v3399_v3, %v9068_v14  ;;  %v3323_v37 = vpop.permute.xlu1 %3322  ;;  %v7223_v4 = vpop.f32.mrf.mxu0 }
 0x22b   : > { %v3400_v48 = vrot.slane %v3323_v37, 6  ;;  %v7164_v59 = vpop.f32.mrf.mxu1 }
 0x22c   : > { %v3565_v38 = vrot.slane %v3480_v56, 2  ;;  %v10147_v12 = vadd.f32 %v7220_v32, %v7164_v59  ;;  %v10149_v62 = vpop.f32.mrf.mxu0 }
 0x22d   : > { %v3401_v55 = vsel %vm1929_vm3, %v3398_v1, %v3400_v48  ;;  %v3403_v23 = vsel %vm1929_vm3, %v3400_v48, %v3402_v20  ;;  %11682 = vst [vmem:[#allocation91_spill] sm:$0xff] %v10149_v62  ;;  %4724 = vperm.xlu1 %7878, %v7915_v50   ;;  %v10156_v37 = vpop.f32.mrf.mxu1  ;;  %v7916_v50 = vld [vmem:[%s11319_s8 + $0x38] sm:$0xff] }
 0x22e   : > { %v3481_v3 = vmul.f32 %v3401_v55, %v9105_v18  ;;  %v3482_v11 = vmul.f32 %v3403_v23, %v9108_v40  ;;  %v3566_v56 = vsel %vm2097_vm4, %v3563_v63, %v3565_v38  ;;  %v7226_v62 = vpop.f32.mrf.mxu0 }
 0x22f   : > { %v3968_v1 = vpop.permute.xlu1 %3967  ;;  %7436 = vmatprep.mubr.msk.f32.mxu0 %vm438_vm0, %v3566_v56  ;;  %v7167_v32 = vpop.f32.mrf.mxu1  ;;  %v4063_v56 = vmul.f32 %v9739_v30, %v9068_v14 }
 0x230   : > { %v3567_v59 = vrot.slane %v3481_v3, 2  ;;  %v3569_v48 = vrot.slane %v3482_v11, 2  ;;  %v4061_v8 = vmul.f32 %v3968_v1, %v9033_v15  ;;  %v10161_v43 = vadd.f32 %v7223_v4, %v7167_v32  ;;  %v10176_v1 = vpop.f32.mrf.mxu0 }
 0x231   : > { %4727 = vperm.xlu1 %7878, %v7916_v50   ;;  %v10166_v55 = vpop.f32.mrf.mxu1  ;;  %11683 = vst [vmem:[#allocation23_spill] sm:$0xff] %v10176_v1 }
 0x232   : > { %7487 = vmatmul.mubr.msk.f32.gmra.mxu1 %vm438_vm0, %v4061_v8  ;;  %v3568_v63 = vsel %vm2097_vm4, %v3565_v38, %v3567_v59  ;;  %v3570_v23 = vsel %vm2097_vm4, %v3567_v59, %v3569_v48  ;;  %v7917_v8 = vld [vmem:[%s11319_s8 + $0x48] sm:$0xff]  ;;  %v7229_v59 = vpop.f32.mrf.mxu0 }
 0x233   : > { %v3972_v3 = vpop.permute.xlu1 %3971  ;;  %7437 = vmatmul.mubr.msk.f32.gmra.mxu0 %vm438_vm0, %v3568_v63  ;;  %v7170_v11 = vpop.f32.mrf.mxu1 }
 0x234   : > { %v4062_v4 = vmul.f32 %v3972_v3, %v9065_v51  ;;  %7439 = vmatprep.mubr.msk.f32.mxu0 %vm438_vm0, %v3570_v23  ;;  %v10178_v32 = vadd.f32 %v7226_v62, %v7170_v11  ;;  %v3335_v62 = vpop.permute.xlu0 %3334 }
 0x235   : > { %4733 = vperm.xlu1 %7878, %v7917_v8   ;;  %v10183_v38 = vpop.f32.mrf.mxu1  ;;  %v3408_v11 = vrot.slane %v3335_v62, 6 }
 0x236   : > { %7489 = vmatprep.mubr.msk.f32.mxu1 %vm438_vm0, %v4062_v4 }
 0x237   : > { %7490 = vmatmul.mubr.msk.f32.gmra.mxu1 %vm438_vm0, %v4063_v56  ;;  %v7173_v50 = vpop.f32.mrf.mxu1  ;;  %v7918_v56 = vld [vmem:[%s11319_s8 + $0x68] sm:$0xff] }
 0x238   : > { %v3329_v63 = vpop.permute.xlu1 %3328  ;;  %v10188_v30 = vadd.f32 %v7229_v59, %v7173_v50 }
 0x239   : > { %v3404_v23 = vrot.slane %v3329_v63, 6  ;;  %4739 = vperm.xlu1 %7878, %v9702_v24   ;;  %v10190_v3 = vpop.f32.mrf.mxu1  ;;  %v10197_v63 = vpop.f32.mrf.mxu0 }
 0x23a   : > { %11684 = vst [vmem:[#allocation77_spill] sm:$0xff] %v10190_v3  ;;  %11685 = vst [vmem:[#allocation86_spill] sm:$0xff] %v10197_v63 }
 0x23b   : > { %v3405_v8 = vsel %vm1929_vm3, %v3402_v20, %v3404_v23  ;;  %v7176_v51 = vpop.f32.mrf.mxu1 }
 0x23c   : > { %v3483_v14 = vmul.f32 %v3405_v8, %v9137_v46  ;;  %v3332_v4 = vpop.permute.xlu1 %3331 }
 0x23d   : > { %v3406_v15 = vrot.slane %v3332_v4, 6  ;;  %4745 = vperm.xlu1 %7878, %v7918_v56   ;;  %v10199_v59 = vpop.f32.mrf.mxu1 }
 0x23e   : > { %v3571_v24 = vrot.slane %v3483_v14, 2  ;;  %11686 = vst [vmem:[#allocation93_spill] sm:$0xff] %v10199_v59 }
 0x23f   : > { %v3407_v50 = vsel %vm1929_vm3, %v3404_v23, %v3406_v15  ;;  %v3409_v62 = vsel %vm1929_vm3, %v3406_v15, %v3408_v11  ;;  %v7179_v3 = vpop.f32.mrf.mxu1 }
 0x240   : > { %v3484_v20 = vmul.f32 %v3407_v50, %v9149_v13  ;;  %v3485_v8 = vmul.f32 %v3409_v62, %v11595_v49  ;;  %v3572_v4 = vsel %vm2097_vm4, %v3569_v48, %v3571_v24 }
 0x241   : > { %4751 = vperm.xlu1 %7878, %v9644_v42   ;;  %v3980_v1 = vpop.permute.xlu1 %3979  ;;  %7440 = vmatmul.mubr.msk.f32.gmra.mxu0 %vm438_vm0, %v3572_v4  ;;  %v7232_v56 = vpop.f32.mrf.mxu0 }
 0x242   : > { %v3573_v14 = vrot.slane %v3484_v20, 2  ;;  %v3575_v63 = vrot.slane %v3485_v8, 2  ;;  %v10208_v59 = vpop.f32.mrf.mxu1  ;;  %v4064_v23 = vmul.f32 %v3980_v1, %v9105_v18  ;;  %v10211_v15 = vadd.f32 %v7232_v56, %v7176_v51 }
 0x243   : > { %v4066_v51 = vmul.f32 %v9761_v27, %v9137_v46 }
 0x244   : > { %v7182_v50 = vpop.f32.mrf.mxu1  ;;  %7492 = vmatprep.mubr.msk.f32.mxu1 %vm438_vm0, %v4064_v23  ;;  %v3574_v62 = vsel %vm2097_vm4, %v3571_v24, %v3573_v14  ;;  %v3576_v48 = vsel %vm2097_vm4, %v3573_v14, %v3575_v63  ;;  %v10230_v14 = vpop.permute.xlu0 %3343 }
 0x245   : > { %4757 = vperm.xlu1 %7878, %v9824_v60   ;;  %v3984_v42 = vpop.permute.xlu1 %3983  ;;  %7442 = vmatprep.mubr.msk.f32.mxu0 %vm438_vm0, %v3574_v62  ;;  %v3414_v62 = vrot.slane %v10230_v14, 6 }
 0x246   : > { %v10218_v20 = vpop.f32.mrf.mxu1  ;;  %v4065_v8 = vmul.f32 %v3984_v42, %v9108_v40  ;;  %7443 = vmatmul.mubr.msk.f32.gmra.mxu0 %vm438_vm0, %v3576_v48  ;;  %v10233_v48 = vpop.f32.mrf.mxu0 }
 0x247   : > { %11687 = vst [vmem:[#allocation100_spill] sm:$0xff] %v10218_v20 }
 0x248   : > { %v7249_v1 = vpop.f32.mrf.mxu1  ;;  %7493 = vmatmul.mubr.msk.f32.gmra.mxu1 %vm438_vm0, %v4065_v8 }
 0x249   : > { %v2453_v24 = vadd.f32 %v7249_v1, %v9984_v22  ;;  %4763 = vperm.xlu1 %7878, %v9748_v0   ;;  %7495 = vmatprep.mubr.msk.f32.mxu1 %vm438_vm0, %v4066_v51 }
 0x24a   : > { %v10228_v60 = vpop.f32.mrf.mxu1  ;;  %v3338_v4 = vpop.permute.xlu1 %3337 }
 0x24b   : > { %11688 = vst [vmem:[#allocation32_spill] sm:$0xff] %v10228_v60  ;;  %v3410_v56 = vrot.slane %v3338_v4, 6 }
 0x24c   : > { %v7252_v23 = vpop.f32.mrf.mxu1 }
 0x24d   : > { %v3411_v27 = vsel %vm1929_vm3, %v3408_v11, %v3410_v56  ;;  %v2455_v42 = vadd.f32 %v7252_v23, %v10017_v19  ;;  %4769 = vperm.xlu1 %7878, %v9802_v44  }
 0x24e   : > { %v3486_v0 = vmul.f32 %v3411_v27, %v11598_v28  ;;  %v10239_v22 = vpop.f32.mrf.mxu1  ;;  %v3341_v8 = vpop.permute.xlu1 %3340 }
 0x24f   : > { %11689 = vst [vmem:[#allocation35_spill] sm:$0xff] %v10239_v22  ;;  %v3412_v51 = vrot.slane %v3341_v8, 6  ;;  %v7235_v1 = vpop.f32.mrf.mxu0  ;;  %v11706_v22 = vld [vmem:[#allocation17_spill] sm:$0xff] }
 0x250   : > { %v3577_v4 = vrot.slane %v3486_v0, 2  ;;  %v7255_v60 = vpop.f32.mrf.mxu1  ;;  %v10241_v46 = vadd.f32 %v7235_v1, %v7179_v3  ;;  %v10263_v1 = vpop.permute.xlu0 %3352 }
 0x251   : > { %v3413_v14 = vsel %vm1929_vm3, %v3410_v56, %v3412_v51  ;;  %v3415_v40 = vsel %vm1929_vm3, %v3412_v51, %v3414_v62  ;;  %v10246_v11 = vadd.f32 %v7255_v60, %v10037_v61  ;;  %4775 = vperm.xlu1 %7878, %v9941_v33   ;;  %v10249_v44 = vpop.f32.mrf.mxu0 }
 0x252   : > { %v3487_v19 = vmul.f32 %v3413_v14, %v11601_v34  ;;  %v10253_v23 = vmul.f32 %v3415_v40, %v11604_v7  ;;  %v10255_v27 = vpop.f32.mrf.mxu1  ;;  %v3578_v3 = vsel %vm2097_vm4, %v3575_v63, %v3577_v4 }
 0x253   : > { %11690 = vst [vmem:[#allocation31_spill] sm:$0xff] %v10255_v27  ;;  %v3992_v0 = vpop.permute.xlu1 %3991  ;;  %7445 = vmatprep.mubr.msk.f32.mxu0 %vm438_vm0, %v3578_v3  ;;  %v7238_v56 = vpop.f32.mrf.mxu0 }
 0x254   : > { %v3579_v8 = vrot.slane %v3487_v19, 2  ;;  %v3581_v61 = vrot.slane %v10253_v23, 2  ;;  %v7258_v60 = vpop.f32.mrf.mxu1  ;;  %v4067_v33 = vmul.f32 %v3992_v0, %v9149_v13  ;;  %v10261_v51 = vadd.f32 %v7238_v56, %v7182_v50  ;;  %v11707_v13 = vld [vmem:[#allocation104_spill] sm:$0xff] }
 0x255   : > { %v2459_v40 = vadd.f32 %v7258_v60, %v10051_v6  ;;  %4781 = vperm.xlu1 %7878, %v9860_v54   ;;  %v10270_v63 = vpop.f32.mrf.mxu0  ;;  %v4069_v54 = vmul.f32 %v9785_v25, %v11598_v28 }
 0x256   : > { %v10267_v14 = vpop.f32.mrf.mxu1  ;;  %7496 = vmatmul.mubr.msk.f32.gmra.mxu1 %vm438_vm0, %v4067_v33  ;;  %11692 = vst [vmem:[#allocation37_spill] sm:$0xff] %v10270_v63  ;;  %v3580_v19 = vsel %vm2097_vm4, %v3577_v4, %v3579_v8  ;;  %v3582_v23 = vsel %vm2097_vm4, %v3579_v8, %v3581_v61  ;;  %v10286_v8 = vpop.permute.xlu0 %3361 }
 0x257   : > { %11691 = vst [vmem:[#allocation16_spill] sm:$0xff] %v10267_v14  ;;  %v3996_v3 = vpop.permute.xlu1 %3995  ;;  %7446 = vmatmul.mubr.msk.f32.gmra.mxu0 %vm438_vm0, %v3580_v19  ;;  %v7305_v4 = vpop.f32.mrf.mxu0 }
 0x258   : > { %v7261_v50 = vpop.f32.mrf.mxu1  ;;  %v4068_v0 = vmul.f32 %v3996_v3, %v11595_v49  ;;  %7448 = vmatprep.mubr.msk.f32.mxu0 %vm438_vm0, %v3582_v23  ;;  %v10288_v60 = vadd.f32 %v7305_v4, %v2453_v24 }
 0x259   : > { %v10280_v6 = vadd.f32 %v7261_v50, %v10068_v21  ;;  %4787 = vperm.xlu1 %7878, %v9906_v53   ;;  %v10294_v23 = vpop.f32.mrf.mxu0  ;;  %v7919_v53 = vld [vmem:[%s11319_s8 + $0xe8] sm:$0xff] }
 0x25a   : > { %v10283_v56 = vpop.f32.mrf.mxu1  ;;  %7498 = vmatprep.mubr.msk.f32.mxu1 %vm438_vm0, %v4068_v0  ;;  %11694 = vst [vmem:[#allocation38_spill] sm:$0xff] %v10294_v23 }
 0x25b   : > { %11693 = vst [vmem:[#allocation25_spill] sm:$0xff] %v10283_v56  ;;  %7499 = vmatmul.mubr.msk.f32.gmra.mxu1 %vm438_vm0, %v4069_v54 }
 0x25c   : > { %v7264_v33 = vpop.f32.mrf.mxu1  ;;  %v3347_v19 = vpop.permute.xlu1 %3346 }
 0x25d   : > { %v10292_v25 = vadd.f32 %v7264_v33, %v10089_v47  ;;  %v3416_v21 = vrot.slane %v3347_v19, 6  ;;  %4793 = vperm.xlu1 %7878, %v7919_v53   ;;  %v7308_v50 = vpop.f32.mrf.mxu0  ;;  %v3420_v33 = vrot.slane %v10263_v1, 6  ;;  %v10310_v53 = vpop.permute.xlu0 %4709 }
 0x25e   : > { %v10299_v3 = vpop.f32.mrf.mxu1  ;;  %v10303_v4 = vadd.f32 %v7308_v50, %v2455_v42 }
 0x25f   : > { %11695 = vst [vmem:[#allocation99_spill] sm:$0xff] %v10299_v3  ;;  %v3417_v24 = vsel %vm1929_vm3, %v3414_v62, %v3416_v21  ;;  %v10308_v56 = vpop.f32.mrf.mxu0 }
 0x260   : > { %v3489_v0 = vmul.f32 %v3417_v24, %v9229_v57  ;;  %v7267_v54 = vpop.f32.mrf.mxu1  ;;  %v3350_v47 = vpop.permute.xlu1 %3349  ;;  %11696 = vst [vmem:[#allocation24_spill] sm:$0xff] %v10308_v56 }
 0x261   : > { %v2465_v19 = vadd.f32 %v7267_v54, %v10105_v52  ;;  %v3418_v23 = vrot.slane %v3350_v47, 6  ;;  %4799 = vperm.xlu1 %7878, %v10002_v36   ;;  %v7311_v50 = vpop.f32.mrf.mxu0  ;;  %v4012_v28 = vpop.permute.xlu0 %4011 }
 0x262   : > { %v3583_v3 = vrot.slane %v3489_v0, 2  ;;  %v10312_v62 = vpop.f32.mrf.mxu1  ;;  %v10319_v54 = vadd.f32 %v7311_v50, %v10246_v11 }
 0x263   : > { %11697 = vst [vmem:[#allocation22_spill] sm:$0xff] %v10312_v62  ;;  %v3419_v24 = vsel %vm1929_vm3, %v3416_v21, %v3418_v23  ;;  %v3421_v42 = vsel %vm1929_vm3, %v3418_v23, %v3420_v33  ;;  %v10325_v62 = vpop.f32.mrf.mxu0 }
 0x264   : > { %v3490_v14 = vmul.f32 %v3419_v24, %v9232_v10  ;;  %v3491_v1 = vmul.f32 %v3421_v42, %v9264_v29  ;;  %v7270_v52 = vpop.f32.mrf.mxu1  ;;  %v3584_v36 = vsel %vm2097_vm4, %v3581_v61, %v3583_v3  ;;  %11698 = vst [vmem:[#allocation105_spill] sm:$0xff] %v10325_v62 }
 0x265   : > { %v10323_v47 = vadd.f32 %v7270_v52, %v10120_v35  ;;  %v4004_v0 = vpop.permute.xlu1 %4003  ;;  %7449 = vmatmul.mubr.msk.f32.gmra.mxu0 %vm438_vm0, %v3584_v36  ;;  %v7314_v42 = vpop.f32.mrf.mxu0 }
 0x266   : > { %v3585_v21 = vrot.slane %v3490_v14, 2  ;;  %v3587_v23 = vrot.slane %v3491_v1, 2  ;;  %v10328_v27 = vpop.f32.mrf.mxu1  ;;  %v4070_v24 = vmul.f32 %v4004_v0, %v11601_v34  ;;  %v10331_v50 = vadd.f32 %v7314_v42, %v2459_v40 }
 0x267   : > { %11699 = vst [vmem:[#allocation106_spill] sm:$0xff] %v10328_v27  ;;  %v10337_v14 = vpop.f32.mrf.mxu0  ;;  %v4072_v40 = vmul.f32 %v4012_v28, %v9229_v57 }
 0x268   : > { %v7273_v11 = vpop.f32.mrf.mxu1  ;;  %7501 = vmatprep.mubr.msk.f32.mxu1 %vm438_vm0, %v4070_v24  ;;  %v3586_v35 = vsel %vm2097_vm4, %v3583_v3, %v3585_v21  ;;  %v3588_v61 = vsel %vm2097_vm4, %v3585_v21, %v3587_v23  ;;  %11700 = vst [vmem:[#allocation107_spill] sm:$0xff] %v10337_v14 }
 0x269   : > { %v2469_v52 = vadd.f32 %v7273_v11, %v10132_v41  ;;  %v4008_v36 = vpop.permute.xlu1 %4007  ;;  %7451 = vmatprep.mubr.msk.f32.mxu0 %vm438_vm0, %v3586_v35  ;;  %v7317_v24 = vpop.f32.mrf.mxu0 }
 0x26a   : > { %v10340_v1 = vpop.f32.mrf.mxu1  ;;  %v4071_v0 = vmul.f32 %v4008_v36, %v11604_v7  ;;  %7452 = vmatmul.mubr.msk.f32.gmra.mxu0 %vm438_vm0, %v3588_v61  ;;  %v10346_v3 = vadd.f32 %v7317_v24, %v10280_v6 }
 0x26b   : > { %v10350_v21 = vpop.f32.mrf.mxu0 }
 0x26c   : > { %v7276_v42 = vpop.f32.mrf.mxu1  ;;  %7502 = vmatmul.mubr.msk.f32.gmra.mxu1 %vm438_vm0, %v4071_v0  ;;  %11701 = vst [vmem:[#allocation108_spill] sm:$0xff] %v10350_v21  ;;  %v3426_v21 = vrot.slane %v10286_v8, 6 }
 0x26d   : > { %v2471_v41 = vadd.f32 %v7276_v42, %v10147_v12  ;;  %7504 = vmatprep.mubr.msk.f32.mxu1 %vm438_vm0, %v4072_v40  ;;  %v7320_v61 = vpop.f32.mrf.mxu0 }
 0x26e   : > { %v10353_v11 = vpop.f32.mrf.mxu1  ;;  %v3356_v35 = vpop.permute.xlu1 %3355  ;;  %v10356_v28 = vadd.f32 %v7320_v61, %v10292_v25 }
 0x26f   : > { %v3422_v36 = vrot.slane %v3356_v35, 6  ;;  %v10360_v0 = vpop.f32.mrf.mxu0  ;;  %v4024_v61 = vpop.permute.xlu0 %4023 }
 0x270   : > { %v7279_v27 = vpop.f32.mrf.mxu1  ;;  %11702 = vst [vmem:[#allocation109_spill] sm:$0xff] %v10360_v0 }
 0x271   : > { %v3423_v6 = vsel %vm1929_vm3, %v3420_v33, %v3422_v36  ;;  %v2473_v24 = vadd.f32 %v7279_v27, %v10161_v43  ;;  %v7323_v35 = vpop.f32.mrf.mxu0 }
 0x272   : > { %v3492_v12 = vmul.f32 %v3423_v6, %v9270_v26  ;;  %v10363_v42 = vpop.f32.mrf.mxu1  ;;  %v3359_v40 = vpop.permute.xlu1 %3358  ;;  %v10366_v62 = vadd.f32 %v7323_v35, %v2465_v19 }
 0x273   : > { %v3424_v14 = vrot.slane %v3359_v40, 6  ;;  %v10371_v27 = vpop.f32.mrf.mxu0 }
 0x274   : > { %v3589_v57 = vrot.slane %v3492_v12, 2  ;;  %v7282_v7 = vpop.f32.mrf.mxu1  ;;  %11703 = vst [vmem:[#allocation110_spill] sm:$0xff] %v10371_v27 }
 0x275   : > { %v3425_v25 = vsel %vm1929_vm3, %v3422_v36, %v3424_v14  ;;  %v3427_v33 = vsel %vm1929_vm3, %v3424_v14, %v3426_v21  ;;  %v2475_v43 = vadd.f32 %v7282_v7, %v10178_v32  ;;  %v7326_v19 = vpop.f32.mrf.mxu0 }
 0x276   : > { %v3493_v6 = vmul.f32 %v3425_v25, %v9306_v17  ;;  %v3494_v0 = vmul.f32 %v3427_v33, %v9314_v2  ;;  %v10375_v8 = vpop.f32.mrf.mxu1  ;;  %v3590_v12 = vsel %vm2097_vm4, %v3587_v23, %v3589_v57  ;;  %v10381_v32 = vadd.f32 %v7326_v19, %v10323_v47 }
 0x277   : > { %v4016_v40 = vpop.permute.xlu1 %4015  ;;  %7454 = vmatprep.mubr.msk.f32.mxu0 %vm438_vm0, %v3590_v12  ;;  %v10384_v27 = vpop.f32.mrf.mxu0 }
 0x278   : > { %v3591_v36 = vrot.slane %v3493_v6, 2  ;;  %v3593_v35 = vrot.slane %v3494_v0, 2  ;;  %v7285_v14 = vpop.f32.mrf.mxu1  ;;  %v4073_v7 = vmul.f32 %v4016_v40, %v9232_v10  ;;  %11704 = vst [vmem:[#allocation111_spill] sm:$0xff] %v10384_v27  ;;  %v4032_v40 = vpop.permute.xlu0 %4031 }
 0x279   : > { %v2477_v25 = vadd.f32 %v7285_v14, %v10188_v30  ;;  %v7329_v0 = vpop.f32.mrf.mxu0  ;;  %v4075_v30 = vmul.f32 %v4024_v61, %v9270_v26 }
 0x27a   : > { %v10386_v33 = vpop.f32.mrf.mxu1  ;;  %7505 = vmatmul.mubr.msk.f32.gmra.mxu1 %vm438_vm0, %v4073_v7  ;;  %v3592_v23 = vsel %vm2097_vm4, %v3589_v57, %v3591_v36  ;;  %v3594_v12 = vsel %vm2097_vm4, %v3591_v36, %v3593_v35  ;;  %v10393_v19 = vadd.f32 %v7329_v0, %v2469_v52 }
 0x27b   : > { %v4020_v6 = vpop.permute.xlu1 %4019  ;;  %7455 = vmatmul.mubr.msk.f32.gmra.mxu0 %vm438_vm0, %v3592_v23  ;;  %v10398_v7 = vpop.f32.mrf.mxu0 }
 0x27c   : > { %v7288_v10 = vpop.f32.mrf.mxu1  ;;  %v4074_v47 = vmul.f32 %v4020_v6, %v9264_v29  ;;  %7457 = vmatprep.mubr.msk.f32.mxu0 %vm438_vm0, %v3594_v12 }
 0x27d   : > { %v2479_v14 = vadd.f32 %v7288_v10, %v10211_v15  ;;  %v4040_v10 = vpop.permute.xlu0 %4039 }
 0x27e   : > { %v10400_v57 = vpop.f32.mrf.mxu1  ;;  %7507 = vmatprep.mubr.msk.f32.mxu1 %vm438_vm0, %v4074_v47  ;;  %v7332_v36 = vpop.f32.mrf.mxu0 }
 0x27f   : > { %7508 = vmatmul.mubr.msk.f32.gmra.mxu1 %vm438_vm0, %v4075_v30  ;;  %v10404_v27 = vadd.f32 %v7332_v36, %v2471_v41 }
 0x280   : > { %v7291_v23 = vpop.f32.mrf.mxu1  ;;  %v3365_v52 = vpop.permute.xlu1 %3364 }
 0x281   : > { %v10407_v6 = vadd.f32 %v7291_v23, %v10241_v46  ;;  %v3428_v12 = vrot.slane %v3365_v52, 6  ;;  %v10409_v61 = vpop.f32.mrf.mxu0  ;;  %v10422_v52 = vpop.permute.xlu0 %4047 }
 0x282   : > { %v10411_v15 = vpop.f32.mrf.mxu1 }
 0x283   : > { %v3429_v0 = vsel %vm1929_vm3, %v3426_v21, %v3428_v12  ;;  %v7335_v26 = vpop.f32.mrf.mxu0 }
 0x284   : > { %v3495_v47 = vmul.f32 %v3429_v0, %v9325_v16  ;;  %v7294_v29 = vpop.f32.mrf.mxu1  ;;  %v10415_v30 = vadd.f32 %v7335_v26, %v2473_v24  ;;  %v3368_v41 = vpop.permute.xlu1 %3367 }
 0x285   : > { %v10418_v36 = vadd.f32 %v7294_v29, %v10261_v51  ;;  %v3430_v46 = vrot.slane %v3368_v41, 6  ;;  %v10420_v23 = vpop.f32.mrf.mxu0 }
 0x286   : > { %v3595_v34 = vrot.slane %v3495_v47, 2  ;;  %v10424_v56 = vpop.f32.mrf.mxu1 }
 0x287   : > { %11705 = vst [vmem:[#allocation112_spill] sm:$0xff] %v10424_v56  ;;  %v3431_v21 = vsel %vm1929_vm3, %v3428_v12, %v3430_v46  ;;  %v3497_v49 = vmul.f32 %v3430_v46, %v11706_v22  ;;  %v7338_v0 = vpop.f32.mrf.mxu0 }
 0x288   : > { %v3496_v26 = vmul.f32 %v3431_v21, %v11707_v13  ;;  %v7361_v24 = vpop.f32.mrf.mxu1  ;;  %v10429_v63 = vadd.f32 %v7338_v0, %v2475_v43  ;;  %v3596_v29 = vsel %vm2097_vm4, %v3593_v35, %v3595_v34  ;;  %v4077_v21 = vmul.f32 %v4032_v40, %v9314_v2  ;;  %v10442_v0 = vpop.permute.xlu0 %4721  ;;  %v11717_v2 = vld [vmem:[#allocation33_spill] sm:$0xff] }
 0x289   : > { %v3599_v51 = vrot.slane %v3497_v49, 2  ;;  %v10433_v41 = vadd.f32 %v7361_v24, %v10288_v60  ;;  %v4028_v20 = vpop.permute.xlu1 %4027  ;;  %v10435_v47 = vpop.f32.mrf.mxu0  ;;  %7458 = vmatmul.mubr.msk.f32.gmra.mxu0 %vm438_vm0, %v3596_v29 }
 0x28a   : > { %v3597_v12 = vrot.slane %v3496_v26, 2  ;;  %v10438_v56 = vpop.f32.mrf.mxu1  ;;  %v4076_v46 = vmul.f32 %v4028_v20, %v9306_v17 }
 0x28b   : > { %11708 = vst [vmem:[#allocation17_spill] sm:$0xff] %v10433_v41  ;;  %11709 = vst [vmem:[#allocation113_spill] sm:$0xff] %v10438_v56  ;;  %v7341_v43 = vpop.f32.mrf.mxu0 }
 0x28c   : > { %v7364_v35 = vpop.f32.mrf.mxu1  ;;  %v10444_v49 = vadd.f32 %v7341_v43, %v2477_v25  ;;  %7510 = vmatprep.mubr.msk.f32.mxu1 %vm438_vm0, %v4076_v46  ;;  %v3598_v60 = vsel %vm2097_vm4, %v3595_v34, %v3597_v12  ;;  %v3600_v24 = vsel %vm2097_vm4, %v3597_v12, %v3599_v51  ;;  %v4079_v34 = vmul.f32 %v4040_v10, %v11707_v13  ;;  %v11710_v51 = vld [vmem:[#allocation36_spill] sm:$0xff]  ;;  %v11711_v10 = vld [vmem:[#allocation39_spill] sm:$0xff] }
 0x28d   : > { %v10450_v26 = vadd.f32 %v7364_v35, %v10303_v4  ;;  %v4036_v29 = vpop.permute.xlu1 %4035  ;;  %v10452_v41 = vpop.f32.mrf.mxu0  ;;  %7460 = vmatprep.mubr.msk.f32.mxu0 %vm438_vm0, %v3598_v60  ;;  %7511 = vmatmul.mubr.msk.f32.gmra.mxu1 %vm438_vm0, %v4077_v21  ;;  %v4802_v60 = vrot.slane %v10310_v53, 6  ;;  %v11714_v53 = vld [vmem:[#allocation44_spill] sm:$0xff] }
 0x28e   : > { %v10456_v20 = vpop.f32.mrf.mxu1  ;;  %v4078_v25 = vmul.f32 %v4036_v29, %v9325_v16  ;;  %7461 = vmatmul.mubr.msk.f32.gmra.mxu0 %vm438_vm0, %v3600_v24  ;;  %v10477_v24 = vpop.permute.xlu0 %4730  ;;  %v11716_v16 = vld [vmem:[#allocation46_spill] sm:$0xff] }
 0x28f   : > { %v7344_v40 = vpop.f32.mrf.mxu0  ;;  %7527 = vmatprep.mubr.msk.f32.mxu0 %vm438_vm0, %v11710_v51 }
 0x290   : > { %v7367_v4 = vpop.f32.mrf.mxu1  ;;  %v10463_v12 = vadd.f32 %v7344_v40, %v2479_v14  ;;  %7513 = vmatprep.mubr.msk.f32.mxu1 %vm438_vm0, %v4078_v25  ;;  %v11712_v25 = vld [vmem:[#allocation41_spill] sm:$0xff] }
 0x291   : > { %v10467_v46 = vadd.f32 %v7367_v4, %v10319_v54  ;;  %v10469_v21 = vpop.f32.mrf.mxu0  ;;  %7514 = vmatmul.mubr.msk.f32.gmra.mxu1 %vm438_vm0, %v4079_v34 }
 0x292   : > { %v10472_v43 = vpop.f32.mrf.mxu1  ;;  %v4707_v35 = vpop.permute.xlu1 %4706  ;;  %7528 = vmatmul.mubr.msk.f32.vlgmr.msra.gmra.mxu0 %vm438_vm0, %v11711_v10 }
 0x293   : > { %v4801_v14 = vrot.slane %v4707_v35, 6  ;;  %v7347_v29 = vpop.f32.mrf.mxu0  ;;  %7530 = vmatprep.mubr.msk.f32.mxu0 %vm438_vm0, %v11712_v25  ;;  %v11715_v35 = vld [vmem:[#allocation30_spill] sm:$0xff] }
 0x294   : > { %v7370_v54 = vpop.f32.mrf.mxu1  ;;  %v10482_v40 = vadd.f32 %v7347_v29, %v10407_v6  ;;  %v10496_v29 = vpop.permute.xlu0 %4736 }
 0x295   : > { %v4803_v34 = vsel %vm1929_vm3, %v4801_v14, %v4802_v60  ;;  %v10486_v51 = vadd.f32 %v7370_v54, %v10331_v50  ;;  %v4897_v56 = vmul.f32 %v4801_v14, %v11715_v35 }
 0x296   : > { %v10488_v4 = vpop.f32.mrf.mxu1  ;;  %v4713_v10 = vpop.permute.xlu1 %4712  ;;  %7531 = vmatmul.mubr.msk.f32.gmra.mxu0 %vm438_vm0, %v11714_v53  ;;  %v4898_v13 = vmul.f32 %v4803_v34, %v11627_v58  ;;  %v11718_v53 = vld [vmem:[#allocation50_spill] sm:$0xff] }
 0x297   : > { %11713 = vst [vmem:[#allocation36_spill] sm:$0xff] %v10488_v4  ;;  %v4804_v25 = vrot.slane %v4713_v10, 6  ;;  %7533 = vmatprep.mubr.msk.f32.mxu0 %vm438_vm0, %v11716_v16  ;;  %v4968_v58 = vrot.slane %v4897_v56, 2  ;;  %v11719_v10 = vld [vmem:[#allocation54_spill] sm:$0xff]  ;;  %v10521_v56 = vpop.f32.mrf.mxu0 }
 0x298   : > { %v7373_v6 = vpop.f32.mrf.mxu1  ;;  %v4969_v14 = vrot.slane %v4898_v13, 2  ;;  %v10519_v13 = vpop.permute.xlu0 %4742 }
 0x299   : > { %v4805_v50 = vsel %vm1929_vm3, %v4802_v60, %v4804_v25  ;;  %v10500_v54 = vadd.f32 %v7373_v6, %v10346_v3  ;;  %v4081_v60 = vmul.f32 0.0, %v10422_v52 }
 0x29a   : > { %v4899_v17 = vmul.f32 %v4805_v50, %v11717_v2  ;;  %v10503_v4 = vpop.f32.mrf.mxu1  ;;  %7534 = vmatmul.mubr.msk.f32.gmra.mxu0 %vm438_vm0, %v11718_v53  ;;  %v11721_v50 = vld [vmem:[#allocation55_spill] sm:$0xff]  ;;  %v11722_v53 = vld [vmem:[#allocation56_spill] sm:$0xff] }
 0x29b   : > { %v4044_v34 = vpop.permute.xlu1 %4043  ;;  %7536 = vmatprep.mubr.msk.f32.mxu0 %vm438_vm0, %v11719_v10 }
 0x29c   : > { %v7376_v16 = vpop.f32.mrf.mxu1  ;;  %v4080_v35 = vmul.f32 %v4044_v34, %v11706_v22  ;;  %v4971_v2 = vrot.slane %v4899_v17, 2 }
 0x29d   : > { %v10512_v3 = vadd.f32 %v7376_v16, %v10356_v28  ;;  %v4970_v28 = vsel %vm2097_vm4, %v4968_v58, %v4969_v14 }
 0x29e   : > { %v10514_v6 = vpop.f32.mrf.mxu1  ;;  %7516 = vmatprep.mubr.msk.f32.mxu1 %vm438_vm0, %v4080_v35  ;;  %7537 = vmatmul.mubr.msk.f32.gmra.mxu0 %vm438_vm0, %v11721_v50  ;;  %v4972_v16 = vsel %vm2097_vm4, %v4969_v14, %v4971_v2 }
 0x29f   : > { %11720 = vst [vmem:[#allocation39_spill] sm:$0xff] %v10514_v6  ;;  %7517 = vmatmul.mubr.msk.f32.gmra.mxu1 %vm438_vm0, %v4081_v60  ;;  %7539 = vmatprep.mubr.msk.f32.mxu0 %vm438_vm0, %v11722_v53  ;;  %v11725_v6 = vld [vmem:[#allocation60_spill] sm:$0xff]  ;;  %v11726_v53 = vld [vmem:[#allocation62_spill] sm:$0xff] }
 0x2a0   : > { %v7379_v52 = vpop.f32.mrf.mxu1  ;;  %v4716_v17 = vpop.permute.xlu1 %4715  ;;  %7583 = vmatprep.mubr.msk.f32.mxu1 %vm438_vm0, %v4970_v28  ;;  %v11727_v28 = vld [vmem:[#allocation34_spill] sm:$0xff] }
 0x2a1   : > { %v10529_v34 = vadd.f32 %v7379_v52, %v10366_v62  ;;  %v4806_v10 = vrot.slane %v4716_v17, 6  ;;  %v4810_v62 = vrot.slane %v10442_v0, 6 }
 0x2a2   : > { %v10532_v35 = vpop.f32.mrf.mxu1  ;;  %v7350_v50 = vpop.f32.mrf.mxu0  ;;  %7540 = vmatmul.mubr.msk.f32.gmra.mxu0 %vm438_vm0, %v11725_v6  ;;  %v1755_v6 = vadd.f32 %v10123_v5, %v10139_v39 }
 0x2a3   : > { %11723 = vst [vmem:[#allocation41_spill] sm:$0xff] %v10529_v34  ;;  %11724 = vst [vmem:[#allocation44_spill] sm:$0xff] %v10532_v35  ;;  %v4807_v60 = vsel %vm1929_vm3, %v4804_v25, %v4806_v10  ;;  %v10538_v58 = vadd.f32 %v7350_v50, %v10418_v36  ;;  %7542 = vmatprep.mubr.msk.f32.mxu0 %vm438_vm0, %v11726_v53  ;;  %7584 = vmatmul.mubr.msk.f32.vlgmr.msra.gmra.mxu1 %vm438_vm0, %v4972_v16  ;;  %v10549_v35 = vpop.permute.xlu0 %4748  ;;  %v11729_v34 = vld [vmem:[#allocation66_spill] sm:$0xff] }
 0x2a4   : > { %v4900_v14 = vmul.f32 %v4807_v60, %v11727_v28  ;;  %v7382_v52 = vpop.f32.mrf.mxu1  ;;  %v10545_v17 = vpop.f32.mrf.mxu0  ;;  %v1765_v50 = vadd.f32 %v10134_v9, %v10156_v37  ;;  %v11728_v60 = vld [vmem:[#allocation65_spill] sm:$0xff]  ;;  %v2468_v28 = vadd.f32 %v10340_v1, %v1755_v6 }
 0x2a5   : > { %v10552_v36 = vadd.f32 %v7382_v52, %v10381_v32  ;;  %v4719_v25 = vpop.permute.xlu1 %4718 }
 0x2a6   : > { %v4973_v16 = vrot.slane %v4900_v14, 2  ;;  %v4808_v53 = vrot.slane %v4719_v25, 6  ;;  %v10556_v0 = vpop.f32.mrf.mxu1  ;;  %7543 = vmatmul.mubr.msk.f32.gmra.mxu0 %vm438_vm0, %v11728_v60  ;;  %v10565_v32 = vpop.f32.mrf.mxu0  ;;  %v2986_v37 = vadd.f32 %v10398_v7, %v2468_v28  ;;  %v11730_v60 = vld [vmem:[#allocation69_spill] sm:$0xff] }
 0x2a7   : > { %7545 = vmatprep.mubr.msk.f32.mxu0 %vm438_vm0, %v11729_v34  ;;  %v2470_v34 = vadd.f32 %v10353_v11, %v1765_v50 }
 0x2a8   : > { %v4809_v39 = vsel %vm1929_vm3, %v4806_v10, %v4808_v53  ;;  %v4811_v5 = vsel %vm1929_vm3, %v4808_v53, %v4810_v62  ;;  %v7385_v52 = vpop.f32.mrf.mxu1  ;;  %v4974_v9 = vsel %vm2097_vm4, %v4971_v2, %v4973_v16  ;;  %v10578_v2 = vpop.permute.xlu0 %4754 }
 0x2a9   : > { %v4901_v14 = vmul.f32 %v4809_v39, %v11638_v45  ;;  %v4902_v25 = vmul.f32 %v4811_v5, %v11642_v31  ;;  %v10572_v1 = vadd.f32 %v7385_v52, %v10393_v19  ;;  %v4725_v6 = vpop.permute.xlu1 %4724  ;;  %7586 = vmatprep.mubr.msk.f32.mxu1 %vm438_vm0, %v4974_v9  ;;  %v11731_v31 = vld [vmem:[#allocation72_spill] sm:$0xff]  ;;  %v11732_v19 = vld [vmem:[#allocation91_spill] sm:$0xff]  ;;  %v2988_v5 = vadd.f32 %v10409_v61, %v2470_v34  ;;  %v10587_v11 = vpop.f32.mrf.mxu0  ;;  %v11734_v9 = vld [vmem:[#allocation42_spill] sm:$0xff] }
 0x2aa   : > { %v4812_v10 = vrot.slane %v4725_v6, 6  ;;  %v3162_v53 = vpop.f32.mrf.mxu1  ;;  %7546 = vmatmul.mubr.msk.f32.gmra.mxu0 %vm438_vm0, %v11730_v60  ;;  %v1775_v39 = vadd.f32 %v11732_v19, %v10166_v55  ;;  %11733 = vst [vmem:[#allocation30_spill] sm:$0xff] %v10587_v11  ;;  %v4816_v60 = vrot.slane %v10477_v24, 6  ;;  %v11735_v61 = vld [vmem:[#allocation75_spill] sm:$0xff]  ;;  %v5432_v24 = vld [vmem:[#allocation8 + $0x18] sm:$0xff] }
 0x2ab   : > { %v4975_v7 = vrot.slane %v4901_v14, 2  ;;  %v4977_v28 = vrot.slane %v4902_v25, 2  ;;  %v10580_v45 = vadd.f32 %v3162_v53, %v2986_v37  ;;  %7548 = vmatprep.mubr.msk.f32.mxu0 %vm438_vm0, %v11731_v31  ;;  %7631 = vmatprep.subr.mxu0 %v5432_v24 }
 0x2ac   : > { %v4813_v50 = vsel %vm1929_vm3, %v4810_v62, %v4812_v10  ;;  %v7388_v52 = vpop.f32.mrf.mxu1  ;;  %v2472_v34 = vadd.f32 %v10363_v42, %v1775_v39  ;;  %7632 = vmatpush3.msra.mxu0 %v5432_v24  ;;  %v11743_v24 = vld [vmem:[#allocation83_spill] sm:$0xff] }
 0x2ad   : > { %v4903_v6 = vmul.f32 %v4813_v50, %v11734_v9  ;;  %v10592_v14 = vadd.f32 %v7388_v52, %v10404_v27  ;;  %v4728_v37 = vpop.permute.xlu1 %4727  ;;  %v4976_v25 = vsel %vm2097_vm4, %v4973_v16, %v4975_v7  ;;  %v4978_v53 = vsel %vm2097_vm4, %v4975_v7, %v4977_v28  ;;  %v11736_v7 = vld [vmem:[#allocation78_spill] sm:$0xff]  ;;  %v11737_v52 = vld [vmem:[#allocation23_spill] sm:$0xff] }
 0x2ae   : > { %v4814_v55 = vrot.slane %v4728_v37, 6  ;;  %v3172_v31 = vpop.f32.mrf.mxu1  ;;  %7587 = vmatmul.mubr.msk.f32.gmra.mxu1 %vm438_vm0, %v4976_v25  ;;  %7549 = vmatmul.mubr.msk.f32.gmra.mxu0 %vm438_vm0, %v11735_v61  ;;  %v7420_v62 = vpop.f32.mrf.mxu0  ;;  %v5428_v50 = vld [vmem:[#allocation7 + $0x18] sm:$0xff]  ;;  %v1785_v9 = vadd.f32 %v11737_v52, %v10183_v38  ;;  %v4820_v37 = vrot.slane %v10496_v29, 6  ;;  %v11740_v38 = vld [vmem:[#allocation77_spill] sm:$0xff] }
 0x2af   : > { %v4979_v19 = vrot.slane %v4903_v6, 2  ;;  %v10601_v27 = vadd.f32 %v3172_v31, %v2988_v5  ;;  %7589 = vmatprep.mubr.msk.f32.mxu1 %vm438_vm0, %v4978_v53  ;;  %v10605_v16 = vadd.f32 %v7420_v62, %v10450_v26  ;;  %7551 = vmatprep.mubr.msk.f32.mxu0 %vm438_vm0, %v11736_v7  ;;  %v2990_v26 = vadd.f32 %v10420_v23, %v2472_v34  ;;  %v11738_v6 = vld [vmem:[#allocation43_spill] sm:$0xff]  ;;  %v11739_v53 = vld [vmem:[#allocation48_spill] sm:$0xff]  ;;  %v11741_v29 = vld [vmem:[#allocation86_spill] sm:$0xff] }
 0x2b0   : > { %v4815_v42 = vsel %vm1929_vm3, %v4812_v10, %v4814_v55  ;;  %v4817_v39 = vsel %vm1929_vm3, %v4814_v55, %v4816_v60  ;;  %v7391_v5 = vpop.f32.mrf.mxu1  ;;  %7687 = vmatprep.subr.mxu1 %v5428_v50  ;;  %v1795_v7 = vadd.f32 %v11741_v29, %v11740_v38  ;;  %v2474_v10 = vadd.f32 %v10375_v8, %v1785_v9  ;;  %v10623_v55 = vpop.permute.xlu0 %4760  ;;  %v11742_v34 = vld [vmem:[#allocation79_spill] sm:$0xff] }
 0x2b1   : > { %v4904_v25 = vmul.f32 %v4815_v42, %v11738_v6  ;;  %v4905_v31 = vmul.f32 %v4817_v39, %v11739_v53  ;;  %v10618_v61 = vadd.f32 %v7391_v5, %v10415_v30  ;;  %v4734_v62 = vpop.permute.xlu1 %4733  ;;  %v4980_v23 = vsel %vm2097_vm4, %v4977_v28, %v4979_v19  ;;  %7688 = vmatpush3.msra.mxu1 %v5428_v50  ;;  %v11744_v6 = vld [vmem:[#allocation49_spill] sm:$0xff] }
 0x2b2   : > { %v4818_v52 = vrot.slane %v4734_v62, 6  ;;  %v3182_v11 = vpop.f32.mrf.mxu1  ;;  %7552 = vmatmul.mubr.msk.f32.gmra.mxu0 %vm438_vm0, %v11742_v34  ;;  %7590 = vmatmul.mubr.msk.f32.gmra.mxu1 %vm438_vm0, %v4980_v23  ;;  %v2992_v8 = vadd.f32 %v10435_v47, %v2474_v10  ;;  %v11745_v62 = vld [vmem:[#allocation51_spill] sm:$0xff]  ;;  %v4824_v38 = vrot.slane %v10519_v13, 6  ;;  %v10649_v34 = vpop.f32.mrf.mxu0  ;;  %v11748_v13 = vld [vmem:[#allocation93_spill] sm:$0xff] }
 0x2b3   : > { %v4981_v42 = vrot.slane %v4904_v25, 2  ;;  %v4983_v30 = vrot.slane %v4905_v31, 2  ;;  %v10628_v39 = vadd.f32 %v3182_v11, %v2990_v26  ;;  %7554 = vmatprep.mubr.msk.f32.mxu0 %vm438_vm0, %v11743_v24  ;;  %v2476_v31 = vadd.f32 %v10386_v33, %v1795_v7  ;;  %v11747_v33 = vld [vmem:[#allocation87_spill] sm:$0xff] }
 0x2b4   : > { %v4819_v9 = vsel %vm1929_vm3, %v4816_v60, %v4818_v52  ;;  %v4821_v5 = vsel %vm1929_vm3, %v4818_v52, %v4820_v37  ;;  %v7394_v28 = vpop.f32.mrf.mxu1  ;;  %v11746_v60 = vld [vmem:[#allocation84_spill] sm:$0xff]  ;;  %v4828_v52 = vrot.slane %v10549_v35, 6  ;;  %v1805_v7 = vadd.f32 %v10233_v48, %v11748_v13 }
 0x2b5   : > { %v4906_v53 = vmul.f32 %v4819_v9, %v11744_v6  ;;  %v4907_v50 = vmul.f32 %v4821_v5, %v11745_v62  ;;  %v10639_v25 = vadd.f32 %v7394_v28, %v10429_v63  ;;  %v4740_v11 = vpop.permute.xlu1 %4739  ;;  %v4982_v26 = vsel %vm2097_vm4, %v4979_v19, %v4981_v42  ;;  %v10659_v9 = vpop.permute.xlu0 %4766  ;;  %v11749_v28 = vld [vmem:[#allocation52_spill] sm:$0xff]  ;;  %v11750_v6 = vld [vmem:[#allocation57_spill] sm:$0xff] }
 0x2b6   : > { %v4822_v47 = vrot.slane %v4740_v11, 6  ;;  %v3192_v29 = vpop.f32.mrf.mxu1  ;;  %7592 = vmatprep.mubr.msk.f32.mxu1 %vm438_vm0, %v4982_v26  ;;  %7555 = vmatmul.mubr.msk.f32.gmra.mxu0 %vm438_vm0, %v11746_v60  ;;  %v4984_v10 = vsel %vm2097_vm4, %v4981_v42, %v4983_v30  ;;  %v2994_v24 = vadd.f32 %v10452_v41, %v2476_v31  ;;  %v2478_v41 = vadd.f32 %v10400_v57, %v1805_v7  ;;  %v11752_v57 = vld [vmem:[#allocation92_spill] sm:$0xff] }
 0x2b7   : > { %v4985_v63 = vrot.slane %v4906_v53, 2  ;;  %v4987_v23 = vrot.slane %v4907_v50, 2  ;;  %v10651_v19 = vadd.f32 %v3192_v29, %v2992_v8  ;;  %7593 = vmatmul.mubr.msk.f32.gmra.mxu1 %vm438_vm0, %v4984_v10  ;;  %7557 = vmatprep.mubr.msk.f32.mxu0 %vm438_vm0, %v11747_v33  ;;  %v11754_v33 = vrot.slane %v11706_v22, 1 }
 0x2b8   : > { %v4823_v35 = vsel %vm1929_vm3, %v4820_v37, %v4822_v47  ;;  %v4825_v42 = vsel %vm1929_vm3, %v4822_v47, %v4824_v38  ;;  %v7397_v5 = vpop.f32.mrf.mxu1  ;;  %v11751_v47 = vld [vmem:[#allocation90_spill] sm:$0xff]  ;;  %v2996_v7 = vadd.f32 %v10469_v21, %v2478_v41 }
 0x2b9   : > { %v4908_v8 = vmul.f32 %v4823_v35, %v11749_v28  ;;  %v4909_v53 = vmul.f32 %v4825_v42, %v11750_v6  ;;  %v10666_v62 = vadd.f32 %v7397_v5, %v10444_v49  ;;  %v4746_v50 = vpop.permute.xlu1 %4745  ;;  %v7423_v11 = vpop.f32.mrf.mxu0  ;;  %v4986_v48 = vsel %vm2097_vm4, %v4983_v30, %v4985_v63  ;;  %v11755_v5 = vld [vmem:[#allocation58_spill] sm:$0xff] }
 0x2ba   : > { %v4826_v26 = vrot.slane %v4746_v50, 6  ;;  %v3202_v31 = vpop.f32.mrf.mxu1  ;;  %v10671_v37 = vadd.f32 %v7423_v11, %v10467_v46  ;;  %7595 = vmatprep.mubr.msk.f32.mxu1 %vm438_vm0, %v4986_v48  ;;  %7558 = vmatmul.mubr.msk.f32.gmra.mxu0 %vm438_vm0, %v11751_v47  ;;  %v4988_v29 = vsel %vm2097_vm4, %v4985_v63, %v4987_v23  ;;  %v11753_v46 = vld [vmem:[#allocation15_spill] sm:$0xff]  ;;  %v1815_v63 = vadd.f32 %v10249_v44, %v10208_v59  ;;  %v11756_v48 = vld [vmem:[#allocation96_spill] sm:$0xff]  ;;  %v10707_v41 = vpop.permute.xlu0 %4772  ;;  %v11759_v47 = vld [vmem:[#allocation37_spill] sm:$0xff] }
 0x2bb   : > { %v4989_v49 = vrot.slane %v4908_v8, 2  ;;  %v4991_v60 = vrot.slane %v4909_v53, 2  ;;  %v10677_v10 = vadd.f32 %v3202_v31, %v2994_v24  ;;  %7596 = vmatmul.mubr.msk.f32.gmra.mxu1 %vm438_vm0, %v4988_v29  ;;  %v10680_v30 = vpop.f32.mrf.mxu0  ;;  %7560 = vmatprep.mubr.msk.f32.mxu0 %vm438_vm0, %v11752_v57  ;;  %v10688_v13 = vsel %vm1158_vm2, %v11754_v33, %v11753_v46 }
 0x2bc   : > { %v4827_v24 = vsel %vm1929_vm3, %v4824_v38, %v4826_v26  ;;  %v4829_v35 = vsel %vm1929_vm3, %v4826_v26, %v4828_v52  ;;  %v7400_v42 = vpop.f32.mrf.mxu1  ;;  %v2480_v11 = vadd.f32 %v10411_v15, %v1815_v63  ;;  %v4832_v59 = vrot.slane %v10578_v2, 6  ;;  %v11757_v2 = vld [vmem:[#allocation97_spill] sm:$0xff] }
 0x2bd   : > { %v4910_v28 = vmul.f32 %v4827_v24, %v11755_v5  ;;  %v4911_v8 = vmul.f32 %v4829_v35, %v9105_v18  ;;  %v10698_v6 = vadd.f32 %v7400_v42, %v10463_v12  ;;  %v4752_v53 = vpop.permute.xlu1 %4751  ;;  %v4990_v50 = vsel %vm2097_vm4, %v4987_v23, %v4989_v49  ;;  %v11758_v23 = vld [vmem:[#allocation100_spill] sm:$0xff]  ;;  %v11760_v24 = vld [vmem:[#allocation63_spill] sm:$0xff] }
 0x2be   : > { %v4830_v44 = vrot.slane %v4752_v53, 6  ;;  %v3212_v21 = vpop.f32.mrf.mxu1  ;;  %7598 = vmatprep.mubr.msk.f32.mxu1 %vm438_vm0, %v4990_v50  ;;  %v7426_v38 = vpop.f32.mrf.mxu0  ;;  %7561 = vmatmul.mubr.msk.f32.gmra.mxu0 %vm438_vm0, %v11756_v48  ;;  %v4992_v18 = vsel %vm2097_vm4, %v4989_v49, %v4991_v60  ;;  %v1825_v29 = vadd.f32 %v11759_v47, %v11758_v23  ;;  %v4836_v57 = vrot.slane %v10623_v55, 6  ;;  %v11761_v35 = vld [vmem:[#allocation68_spill] sm:$0xff]  ;;  %v11766_v47 = vld [vmem:[#allocation102_spill] sm:$0xff] }
 0x2bf   : > { %v4993_v12 = vrot.slane %v4910_v28, 2  ;;  %v4995_v26 = vrot.slane %v4911_v8, 2  ;;  %v10709_v31 = vadd.f32 %v3212_v21, %v2996_v7  ;;  %v10712_v15 = vadd.f32 %v7426_v38, %v10486_v51  ;;  %7599 = vmatmul.mubr.msk.f32.gmra.mxu1 %vm438_vm0, %v4992_v18  ;;  %7563 = vmatprep.mubr.msk.f32.mxu0 %vm438_vm0, %v11757_v2  ;;  %v11762_v8 = vld [vmem:[#allocation112_spill] sm:$0xff]  ;;  %v11764_v38 = vld [vmem:[#allocation19_spill] sm:$0xff] }
 0x2c0   : > { %v4831_v49 = vsel %vm1929_vm3, %v4828_v52, %v4830_v44  ;;  %v4833_v33 = vsel %vm1929_vm3, %v4830_v44, %v4832_v59  ;;  %v7403_v63 = vpop.f32.mrf.mxu1  ;;  %v2998_v7 = vadd.f32 %v10521_v56, %v2480_v11  ;;  %v2482_v53 = vadd.f32 %v11762_v8, %v1825_v29  ;;  %v11763_v52 = vld [vmem:[#allocation101_spill] sm:$0xff]  ;;  %v11765_v48 = vld [vmem:[#allocation28_spill] sm:$0xff] }
 0x2c1   : > { %v4912_v51 = vmul.f32 %v4831_v49, %v11760_v24  ;;  %v4913_v42 = vmul.f32 %v4833_v33, %v11761_v35  ;;  %v10726_v5 = vadd.f32 %v7403_v63, %v10482_v40  ;;  %v4758_v28 = vpop.permute.xlu1 %4757  ;;  %v4994_v55 = vsel %vm2097_vm4, %v4991_v60, %v4993_v12  ;;  %v5431_v56 = vld [vmem:[#allocation8 + $0x10] sm:$0xff]  ;;  %v10744_v33 = vpop.permute.xlu0 %4778  ;;  %v11767_v63 = vld [vmem:[#allocation70_spill] sm:$0xff] }
 0x2c2   : > { %v4834_v50 = vrot.slane %v4758_v28, 6  ;;  %v3222_v21 = vpop.f32.mrf.mxu1  ;;  %7564 = vmatmul.mubr.msk.f32.gmra.mxu0 %vm438_vm0, %v11763_v52  ;;  %v4996_v44 = vsel %vm2097_vm4, %v4993_v12, %v4995_v26  ;;  %v5427_v11 = vld [vmem:[#allocation7 + $0x10] sm:$0xff]  ;;  %v1685_v18 = vadd.f32 %v11765_v48, %v11764_v38  ;;  %7601 = vmatprep.mubr.msk.f32.mxu1 %vm438_vm0, %v4994_v55  ;;  %v3000_v60 = vadd.f32 %v10545_v17, %v2482_v53  ;;  %v11771_v52 = vld [vmem:[#allocation40_spill] sm:$0xff] }
 0x2c3   : > { %v4997_v2 = vrot.slane %v4912_v51, 2  ;;  %v4999_v40 = vrot.slane %v4913_v42, 2  ;;  %v10735_v23 = vadd.f32 %v3222_v21, %v2998_v7  ;;  %7566 = vmatprep.mubr.msk.f32.mxu0 %vm438_vm0, %v11766_v47  ;;  %7602 = vmatmul.mubr.msk.f32.gmra.mxu1 %vm438_vm0, %v4996_v44  ;;  %v11768_v24 = vld [vmem:[#allocation73_spill] sm:$0xff]  ;;  %v4840_v8 = vrot.slane %v10659_v9, 6  ;;  %v11770_v21 = vld [vmem:[#allocation103_spill] sm:$0xff]  ;;  %v11773_v47 = vld [vmem:[#allocation26_spill] sm:$0xff] }
 0x2c4   : > { %v4835_v29 = vsel %vm1929_vm3, %v4832_v59, %v4834_v50  ;;  %v4837_v12 = vsel %vm1929_vm3, %v4834_v50, %v4836_v57  ;;  %v7406_v49 = vpop.f32.mrf.mxu1  ;;  %7633 = vmatprep.subr.mxu0 %v5431_v56  ;;  %7689 = vmatprep.subr.mxu1 %v5427_v11  ;;  %v11769_v59 = vld [vmem:[#allocation35_spill] sm:$0xff]  ;;  %v11774_v9 = vld [vmem:[#allocation20_spill] sm:$0xff] }
 0x2c5   : > { %v4914_v7 = vmul.f32 %v4835_v29, %v11767_v63  ;;  %v4915_v51 = vmul.f32 %v4837_v12, %v11768_v24  ;;  %v10749_v35 = vadd.f32 %v7406_v49, %v10538_v58  ;;  %v4764_v42 = vpop.permute.xlu1 %4763  ;;  %v4998_v17 = vsel %vm2097_vm4, %v4995_v26, %v4997_v2  ;;  %v11772_v58 = vld [vmem:[#allocation47_spill] sm:$0xff]  ;;  %7634 = vmatpush3.msra.mxu0 %v5431_v56  ;;  %v11776_v12 = vld [vmem:[#allocation24_spill] sm:$0xff] }
 0x2c6   : > { %v2454_v28 = vadd.f32 %v11769_v59, %v1685_v18  ;;  %v4838_v53 = vrot.slane %v4764_v42, 6  ;;  %v3232_v50 = vpop.f32.mrf.mxu1  ;;  %7604 = vmatprep.mubr.msk.f32.mxu1 %vm438_vm0, %v4998_v17  ;;  %7567 = vmatmul.mubr.msk.f32.gmra.mxu0 %vm438_vm0, %v11770_v21  ;;  %v5000_v55 = vsel %vm2097_vm4, %v4997_v2, %v4999_v40  ;;  %v1695_v44 = vadd.f32 %v11772_v58, %v11771_v52  ;;  %v11775_v18 = vld [vmem:[#allocation53_spill] sm:$0xff]  ;;  %v11778_v42 = vld [vmem:[#allocation76_spill] sm:$0xff] }
 0x2c7   : > { %v5001_v38 = vrot.slane %v4914_v7, 2  ;;  %v5003_v48 = vrot.slane %v4915_v51, 2  ;;  %v10760_v26 = vadd.f32 %v3232_v50, %v3000_v60  ;;  %7569 = vmatprep.mubr.msk.f32.mxu0 %vm438_vm0, %v11773_v47  ;;  %v1705_v29 = vadd.f32 %v11775_v18, %v11774_v9  ;;  %7605 = vmatmul.mubr.msk.f32.gmra.mxu1 %vm438_vm0, %v5000_v55  ;;  %v11777_v7 = vld [vmem:[#allocation74_spill] sm:$0xff]  ;;  %v11779_v50 = vld [vmem:[#allocation31_spill] sm:$0xff]  ;;  %v11781_v52 = vld [vmem:[#allocation16_spill] sm:$0xff]  ;;  %v10785_v47 = vpop.permute.xlu0 %4784 }
 0x2c8   : > { %v2972_v49 = vadd.f32 %v11776_v12, %v2454_v28  ;;  %v4839_v63 = vsel %vm1929_vm3, %v4836_v57, %v4838_v53  ;;  %v4841_v2 = vsel %vm1929_vm3, %v4838_v53, %v4840_v8  ;;  %v10769_v24 = vpop.f32.mrf.mxu1  ;;  %v4844_v60 = vrot.slane %v10707_v41, 6  ;;  %7690 = vmatpush3.msra.mxu1 %v5427_v11  ;;  %v11780_v55 = vld [vmem:[#allocation27_spill] sm:$0xff] }
 0x2c9   : > { %v4916_v51 = vmul.f32 %v4839_v63, %v11777_v7  ;;  %v4917_v17 = vmul.f32 %v4841_v2, %v11778_v42  ;;  %v4770_v56 = vpop.permute.xlu1 %4769  ;;  %v5002_v59 = vsel %vm2097_vm4, %v4999_v40, %v5001_v38  ;;  %v2456_v28 = vadd.f32 %v11779_v50, %v1695_v44  ;;  %v11784_v2 = vld [vmem:[#allocation81_spill] sm:$0xff]  ;;  %v11785_v50 = vld [vmem:[#allocation107_spill] sm:$0xff] }
 0x2ca   : > { %v3243_v57 = vadd.f32 %v10456_v20, %v2972_v49  ;;  %v4842_v21 = vrot.slane %v4770_v56, 6  ;;  %v10778_v53 = vpop.f32.mrf.mxu1  ;;  %7607 = vmatprep.mubr.msk.f32.mxu1 %vm438_vm0, %v5002_v59  ;;  %7570 = vmatmul.mubr.msk.f32.gmra.mxu0 %vm438_vm0, %v11780_v55  ;;  %v5004_v41 = vsel %vm2097_vm4, %v5001_v38, %v5003_v48  ;;  %v2458_v58 = vadd.f32 %v11781_v52, %v1705_v29  ;;  %v11782_v20 = vld [vmem:[#allocation105_spill] sm:$0xff]  ;;  %v3761_v38 = vpop.f32.mrf.mxu0  ;;  %v11783_v29 = vld [vmem:[#allocation80_spill] sm:$0xff]  ;;  %v7920_v55 = vld [vmem:[%s8351_s26] sm:$0xff] }
 0x2cb   : > { %v5005_v40 = vrot.slane %v4916_v51, 2  ;;  %v5007_v11 = vrot.slane %v4917_v17, 2  ;;  %7572 = vmatprep.mubr.msk.f32.mxu0 %vm438_vm0, %v10688_v13  ;;  %v2974_v44 = vadd.f32 %v11782_v20, %v2456_v28  ;;  %7608 = vmatmul.mubr.msk.f32.gmra.mxu1 %vm438_vm0, %v5004_v41 }
 0x2cc   : > { %v3892_v9 = vadd.f32 %v10649_v34, %v3243_v57  ;;  %v4843_v18 = vsel %vm1929_vm3, %v4840_v8, %v4842_v21  ;;  %v4845_v12 = vsel %vm1929_vm3, %v4842_v21, %v4844_v60  ;;  %v7476_v49 = vpop.f32.mrf.mxu1  ;;  %v4848_v8 = vrot.slane %v10744_v33, 6 }
 0x2cd   : > { %v4918_v63 = vmul.f32 %v4843_v18, %v11783_v29  ;;  %v4919_v7 = vmul.f32 %v4845_v12, %v11784_v2  ;;  %v10797_v51 = vadd.f32 %v7476_v49, %v10605_v16  ;;  %v4776_v13 = vpop.permute.xlu1 %4775  ;;  %v5006_v42 = vsel %vm2097_vm4, %v5003_v48, %v5005_v40 }
 0x2ce   : > { %v3245_v34 = vadd.f32 %v10472_v43, %v2974_v44  ;;  %v4846_v17 = vrot.slane %v4776_v13, 6  ;;  %v4259_v56 = vpop.f32.mrf.mxu1  ;;  %7610 = vmatprep.mubr.msk.f32.mxu1 %vm438_vm0, %v5006_v42  ;;  %7573 = vmatmul.mubr.msk.f32.gmra.mxu0 %vm438_vm0, %v11753_v46  ;;  %v5008_v59 = vsel %vm2097_vm4, %v5005_v40, %v5007_v11  ;;  %v2976_v28 = vadd.f32 %v11785_v50, %v2458_v58  ;;  %v4791_v58 = vpop.permute.xlu0 %4790  ;;  %v11786_v40 = vld [vmem:[#allocation82_spill] sm:$0xff]  ;;  %v11787_v44 = vld [vmem:[#allocation88_spill] sm:$0xff] }
 0x2cf   : > { %v5009_v16 = vrot.slane %v4918_v63, 2  ;;  %v5011_v57 = vrot.slane %v4919_v7, 2  ;;  %v10807_v21 = vadd.f32 %v4259_v56, %v3892_v9  ;;  %v7429_v48 = vpop.f32.mrf.mxu0  ;;  %7639 = vmatprep.mubr.msk.f32.mxu0 %vm438_vm0, %v7920_v55  ;;  %7611 = vmatmul.mubr.msk.f32.gmra.mxu1 %vm438_vm0, %v5008_v59  ;;  %v4852_v29 = vrot.slane %v10785_v47, 6  ;;  %v5430_v56 = vld [vmem:[#allocation8 + $0x8] sm:$0xff]  ;;  %v11789_v59 = vld [vmem:[#allocation89_spill] sm:$0xff] }
 0x2d0   : > { %v3894_v43 = vadd.f32 %v10680_v30, %v3245_v34  ;;  %v4847_v33 = vsel %vm1929_vm3, %v4844_v60, %v4846_v17  ;;  %v4849_v41 = vsel %vm1929_vm3, %v4846_v17, %v4848_v8  ;;  %v7479_v52 = vpop.f32.mrf.mxu1  ;;  %v10816_v46 = vadd.f32 %v7429_v48, %v10500_v54  ;;  %v11788_v60 = vld [vmem:[#allocation36_spill] sm:$0xff]  ;;  %7635 = vmatprep.subr.mxu0 %v5430_v56 }
 0x2d1   : > { %v4920_v20 = vmul.f32 %v4847_v33, %v11786_v40  ;;  %v4921_v9 = vmul.f32 %v4849_v41, %v11787_v44  ;;  %v10821_v18 = vadd.f32 %v7479_v52, %v10671_v37  ;;  %v4782_v12 = vpop.permute.xlu1 %4781  ;;  %v5010_v30 = vsel %vm2097_vm4, %v5007_v11, %v5009_v16  ;;  %v5426_v47 = vld [vmem:[#allocation7 + $0x8] sm:$0xff]  ;;  %7636 = vmatpush3.msra.mxu0 %v5430_v56 }
 0x2d2   : > { %v3247_v49 = vadd.f32 %v11788_v60, %v2976_v28  ;;  %v4850_v63 = vrot.slane %v4782_v12, 6  ;;  %v4269_v2 = vpop.f32.mrf.mxu1  ;;  %7613 = vmatprep.mubr.msk.f32.mxu1 %vm438_vm0, %v5010_v30  ;;  %v5012_v54 = vsel %vm2097_vm4, %v5009_v16, %v5011_v57  ;;  %v11790_v28 = vld [vmem:[#allocation94_spill] sm:$0xff]  ;;  %7691 = vmatprep.subr.mxu1 %v5426_v47  ;;  %v4797_v52 = vpop.permute.xlu0 %4796 }
 0x2d3   : > { %v5013_v7 = vrot.slane %v4920_v20, 2  ;;  %v5015_v13 = vrot.slane %v4921_v9, 2  ;;  %v10828_v42 = vadd.f32 %v4269_v2, %v3894_v43  ;;  %7614 = vmatmul.mubr.msk.f32.gmra.mxu1 %vm438_vm0, %v5012_v54  ;;  %v11792_v12 = vld [vmem:[#allocation98_spill] sm:$0xff]  ;;  %v4860_v2 = vrot.slane %v4797_v52, 6 }
 0x2d4   : > { %v3896_v34 = vadd.f32 %v3761_v38, %v3247_v49  ;;  %v4851_v37 = vsel %vm1929_vm3, %v4848_v8, %v4850_v63  ;;  %v4853_v17 = vsel %vm1929_vm3, %v4850_v63, %v4852_v29  ;;  %v7482_v11 = vpop.f32.mrf.mxu1  ;;  %v4856_v38 = vrot.slane %v4791_v58, 6  ;;  %7692 = vmatpush3.msra.mxu1 %v5426_v47  ;;  %v11791_v58 = vld [vmem:[#allocation95_spill] sm:$0xff] }
 0x2d5   : > { %v4922_v50 = vmul.f32 %v4851_v37, %v11789_v59  ;;  %v4923_v48 = vmul.f32 %v4853_v17, %v11790_v28  ;;  %v10836_v16 = vadd.f32 %v7482_v11, %v10712_v15  ;;  %v4788_v55 = vpop.permute.xlu1 %4787  ;;  %v5014_v43 = vsel %vm2097_vm4, %v5011_v57, %v5013_v7  ;;  %v11793_v37 = vld [vmem:[#allocation61_spill] sm:$0xff]  ;;  %v11795_v59 = vld [vmem:[#allocation104_spill] sm:$0xff] }
 0x2d6   : > { %v4854_v8 = vrot.slane %v4788_v55, 6  ;;  %v4279_v33 = vpop.f32.mrf.mxu1  ;;  %7616 = vmatprep.mubr.msk.f32.mxu1 %vm438_vm0, %v5014_v43  ;;  %v5016_v41 = vsel %vm2097_vm4, %v5013_v7, %v5015_v13  ;;  %v3771_v7 = vpop.f32.mrf.mxu0  ;;  %v11794_v17 = vld [vmem:[#allocation45_spill] sm:$0xff] }
 0x2d7   : > { %v5017_v40 = vrot.slane %v4922_v50, 2  ;;  %v5019_v20 = vrot.slane %v4923_v48, 2  ;;  %v10841_v44 = vadd.f32 %v4279_v33, %v3896_v34  ;;  %7617 = vmatmul.mubr.msk.f32.gmra.mxu1 %vm438_vm0, %v5016_v41  ;;  %v1715_v11 = vadd.f32 %v11794_v17, %v11793_v37 }
 0x2d8   : > { %v4855_v15 = vsel %vm1929_vm3, %v4852_v29, %v4854_v8  ;;  %v4857_v57 = vsel %vm1929_vm3, %v4854_v8, %v4856_v38 }
 0x2d9   : > { %v4924_v9 = vmul.f32 %v4855_v15, %v11791_v58  ;;  %v4925_v30 = vmul.f32 %v4857_v57, %v11792_v12  ;;  %v4794_v60 = vpop.permute.xlu1 %4793  ;;  %v5018_v49 = vsel %vm2097_vm4, %v5015_v13, %v5017_v40  ;;  %v5020_v63 = vsel %vm2097_vm4, %v5017_v40, %v5019_v20 }
 0x2da   : > { %v4858_v54 = vrot.slane %v4794_v60, 6  ;;  %7619 = vmatprep.mubr.msk.f32.mxu1 %vm438_vm0, %v5018_v49 }
 0x2db   : > { %v5021_v34 = vrot.slane %v4924_v9, 2  ;;  %v5023_v29 = vrot.slane %v4925_v30, 2  ;;  %7620 = vmatmul.mubr.msk.f32.gmra.mxu1 %vm438_vm0, %v5020_v63 }
 0x2dc   : > { %v4859_v56 = vsel %vm1929_vm3, %v4856_v38, %v4858_v54  ;;  %v4861_v47 = vsel %vm1929_vm3, %v4858_v54, %v4860_v2  ;;  %v11796_v38 = vld [vmem:[#allocation25_spill] sm:$0xff] }
 0x2dd   : > { %v4926_v13 = vmul.f32 %v4859_v56, %v11795_v59  ;;  %v4927_v50 = vmul.f32 %v4861_v47, %v11706_v22  ;;  %v4800_v28 = vpop.permute.xlu1 %4799  ;;  %v5022_v55 = vsel %vm2097_vm4, %v5019_v20, %v5021_v34  ;;  %v5024_v43 = vsel %vm2097_vm4, %v5021_v34, %v5023_v29  ;;  %v11797_v22 = vld [vmem:[#allocation108_spill] sm:$0xff]  ;;  %v11798_v54 = vld [vmem:[#allocation41_spill] sm:$0xff]  ;;  %v5429_v47 = vld [vmem:[#allocation8] sm:$0xff] }
 0x2de   : > { %v7432_v48 = vpop.f32.mrf.mxu0  ;;  %v4862_v8 = vrot.slane %v4800_v28, 6  ;;  %7622 = vmatprep.mubr.msk.f32.mxu1 %vm438_vm0, %v5022_v55  ;;  %v2460_v41 = vadd.f32 %v11796_v38, %v1715_v11  ;;  %v5425_v59 = vld [vmem:[#allocation7] sm:$0xff]  ;;  %7637 = vmatprep.subr.mxu0 %v5429_v47  ;;  %v7922_v28 = vld [vmem:[%s8351_s26 + $0x10] sm:$0xff] }
 0x2df   : > { %v3901_v33 = vadd.f32 %v7432_v48, %v10512_v3  ;;  %v5025_v52 = vrot.slane %v4926_v13, 2  ;;  %v5027_v40 = vrot.slane %v4927_v50, 2  ;;  %7623 = vmatmul.mubr.msk.f32.gmra.mxu1 %vm438_vm0, %v5024_v43  ;;  %7693 = vmatprep.subr.mxu1 %v5425_v59  ;;  %v7921_v50 = vld [vmem:[%s8351_s26 + $0x8] sm:$0xff]  ;;  %v11801_v48 = vld [vmem:[#allocation99_spill] sm:$0xff]  ;;  %v11802_v43 = vld [vmem:[#allocation21_spill] sm:$0xff] }
 0x2e0   : > { %v3781_v15 = vpop.f32.mrf.mxu0  ;;  %v4863_v57 = vsel %vm1929_vm3, %v4860_v2, %v4862_v8  ;;  %v4929_v58 = vmul.f32 0.0, %v4862_v8  ;;  %v2978_v9 = vadd.f32 %v11797_v22, %v2460_v41  ;;  %7638 = vmatpush3.msra.mxu0 %v5429_v47  ;;  %7694 = vmatpush3.msra.mxu1 %v5425_v59  ;;  %v11803_v8 = vld [vmem:[#allocation67_spill] sm:$0xff]  ;;  %v11804_v41 = vld [vmem:[#allocation109_spill] sm:$0xff]  ;;  %v7927_v59 = vld [vmem:[%s8351_s26 + $0x38] sm:$0xff] }
 0x2e1   : > { %v4928_v20 = vmul.f32 0.0, %v4863_v57  ;;  %v5026_v12 = vsel %vm2097_vm4, %v5023_v29, %v5025_v52  ;;  %v5028_v30 = vsel %vm2097_vm4, %v5025_v52, %v5027_v40  ;;  %7640 = vmatmul.mubr.msk.f32.vlgmr.msra.gmra.mxu0 %vm438_vm0, %v7921_v50  ;;  %v1735_v38 = vadd.f32 %v11803_v8, %v11802_v43  ;;  %v7924_v57 = vld [vmem:[%s8351_s26 + $0x20] sm:$0xff]  ;;  %v7931_v43 = vld [vmem:[%s8351_s26 + $0x58] sm:$0xff] }
 0x2e2   : > { %v5031_v3 = vrot.slane %v4929_v58, 2  ;;  %7625 = vmatprep.mubr.msk.f32.mxu1 %vm438_vm0, %v5026_v12  ;;  %v7435_v60 = vpop.f32.mrf.mxu0  ;;  %v3249_v49 = vadd.f32 %v10503_v4, %v2978_v9  ;;  %7642 = vmatprep.mubr.msk.f32.mxu0 %vm438_vm0, %v7922_v28  ;;  %v11805_v58 = vld [vmem:[#allocation39_spill] sm:$0xff]  ;;  %v7929_v28 = vld [vmem:[%s8351_s26 + $0x48] sm:$0xff] }
 0x2e3   : > { %v5029_v63 = vrot.slane %v4928_v20, 2  ;;  %v3903_v34 = vadd.f32 %v7435_v60, %v11798_v54  ;;  %7626 = vmatmul.mubr.msk.f32.gmra.mxu1 %vm438_vm0, %v5028_v30  ;;  %v11806_v20 = vld [vmem:[#allocation22_spill] sm:$0xff]  ;;  %v11809_v8 = vld [vmem:[#allocation71_spill] sm:$0xff] }
 0x2e4   : > { %v7485_v2 = vpop.f32.mrf.mxu1  ;;  %v3898_v37 = vadd.f32 %v3771_v7, %v3249_v49  ;;  %v11800_v7 = vld [vmem:[#allocation59_spill] sm:$0xff]  ;;  %v3791_v9 = vpop.f32.mrf.mxu0  ;;  %v2464_v12 = vadd.f32 %v11806_v20, %v1735_v38  ;;  %v11807_v54 = vld [vmem:[#allocation110_spill] sm:$0xff]  ;;  %v11810_v38 = vld [vmem:[#allocation85_spill] sm:$0xff] }
 0x2e5   : > { %v10873_v17 = vadd.f32 %v7485_v2, %v10816_v46  ;;  %v5030_v29 = vsel %vm2097_vm4, %v5027_v40, %v5029_v63  ;;  %v5032_v11 = vsel %vm2097_vm4, %v5029_v63, %v5031_v3  ;;  %v11799_v46 = vld [vmem:[#allocation64_spill] sm:$0xff]  ;;  %v7923_v40 = vld [vmem:[%s8351_s26 + $0x18] sm:$0xff] }
 0x2e6   : > { %7628 = vmatprep.mubr.msk.f32.mxu1 %vm438_vm0, %v5030_v29  ;;  %v4289_v56 = vpop.f32.mrf.mxu1  ;;  %v1725_v13 = vadd.f32 %v11800_v7, %v11799_v46  ;;  %7643 = vmatmul.mubr.msk.f32.gmra.mxu0 %vm438_vm0, %v7923_v40  ;;  %v7925_v63 = vld [vmem:[%s8351_s26 + $0x28] sm:$0xff]  ;;  %v2982_v2 = vadd.f32 %v11807_v54, %v2464_v12  ;;  %v7934_v12 = vld [vmem:[%s8351_s26 + $0x70] sm:$0xff]  ;;  %v7935_v54 = vld [vmem:[%s8351_s26 + $0x78] sm:$0xff] }
 0x2e7   : > { %v10878_v4 = vadd.f32 %v4289_v56, %v3898_v37  ;;  %7629 = vmatmul.mubr.msk.f32.gmra.mxu1 %vm438_vm0, %v5032_v11  ;;  %7645 = vmatprep.mubr.msk.f32.mxu0 %vm438_vm0, %v7924_v57  ;;  %v7926_v11 = vld [vmem:[%s8351_s26 + $0x30] sm:$0xff]  ;;  %v11811_v57 = vld [vmem:[#allocation106_spill] sm:$0xff] }
 0x2e8   : > { %v2462_v55 = vadd.f32 %v11801_v48, %v1725_v13  ;;  %v7928_v13 = vld [vmem:[%s8351_s26 + $0x40] sm:$0xff]  ;;  %v7930_v48 = vld [vmem:[%s8351_s26 + $0x50] sm:$0xff] }
 0x2ea   : > { %v2980_v52 = vadd.f32 %v11804_v41, %v2462_v55  ;;  %7646 = vmatmul.mubr.msk.f32.gmra.mxu0 %vm438_vm0, %v7925_v63  ;;  %v1745_v41 = vadd.f32 %v11810_v38, %v11809_v8  ;;  %v7944_v8 = vld [vmem:[%s8351_s26 + $0xc0] sm:$0xff] }
 0x2eb   : > { %7648 = vmatprep.mubr.msk.f32.mxu0 %vm438_vm0, %v7926_v11 }
 0x2ec   : > { %v3251_v22 = vadd.f32 %v11805_v58, %v2980_v52  ;;  %v2466_v58 = vadd.f32 %v11811_v57, %v1745_v41  ;;  %v7945_v57 = vld [vmem:[%s8351_s26 + $0xc8] sm:$0xff] }
 0x2ee   : > { %v3900_v3 = vadd.f32 %v3781_v15, %v3251_v22  ;;  %v11808_v15 = vld [vmem:[#allocation44_spill] sm:$0xff]  ;;  %7649 = vmatmul.mubr.msk.f32.gmra.mxu0 %vm438_vm0, %v7927_v59  ;;  %v7938_v59 = vld [vmem:[%s8351_s26 + $0x90] sm:$0xff] }
 0x2ef   : > { %7651 = vmatprep.mubr.msk.f32.mxu0 %vm438_vm0, %v7928_v13  ;;  %v7940_v13 = vld [vmem:[%s8351_s26 + $0xa0] sm:$0xff] }
 0x2f2   : > { %v7488_v30 = vpop.f32.mrf.mxu1  ;;  %7652 = vmatmul.mubr.msk.f32.gmra.mxu0 %vm438_vm0, %v7929_v28 }
 0x2f3   : > { %v10897_v60 = vadd.f32 %v7488_v30, %v3901_v33  ;;  %v7438_v49 = vpop.f32.mrf.mxu0  ;;  %v3253_v33 = vadd.f32 %v11808_v15, %v2982_v2  ;;  %7654 = vmatprep.mubr.msk.f32.mxu0 %vm438_vm0, %v7930_v48  ;;  %v11812_v30 = vld [vmem:[#allocation111_spill] sm:$0xff] }
 0x2f4   : > { %v3905_v37 = vadd.f32 %v7438_v49, %v10552_v36  ;;  %v4299_v29 = vpop.f32.mrf.mxu1 }
 0x2f5   : > { %v10905_v56 = vadd.f32 %v4299_v29, %v3900_v3  ;;  %v3902_v46 = vadd.f32 %v3791_v9, %v3253_v33  ;;  %v3801_v55 = vpop.f32.mrf.mxu0  ;;  %v7933_v9 = vld [vmem:[%s8351_s26 + $0x68] sm:$0xff]  ;;  %v2984_v3 = vadd.f32 %v11812_v30, %v2466_v58  ;;  %v7950_v30 = vld [vmem:[%s8351_s26 + $0xf0] sm:$0xff] }
 0x2f6   : > { %7655 = vmatmul.mubr.msk.f32.gmra.mxu0 %vm438_vm0, %v7931_v43 }
 0x2f7   : > { %v7491_v47 = vpop.f32.mrf.mxu1  ;;  %v3255_v63 = vadd.f32 %v10556_v0, %v2984_v3 }
 0x2f8   : > { %v10910_v7 = vadd.f32 %v7491_v47, %v3903_v34  ;;  %v7932_v34 = vld [vmem:[%s8351_s26 + $0x60] sm:$0xff] }
 0x2f9   : > { %v4309_v36 = vpop.f32.mrf.mxu1  ;;  %7657 = vmatprep.mubr.msk.f32.mxu0 %vm438_vm0, %v7932_v34  ;;  %v3904_v11 = vadd.f32 %v3801_v55, %v3255_v63  ;;  %v7943_v55 = vld [vmem:[%s8351_s26 + $0xb8] sm:$0xff] }
 0x2fa   : > { %v10914_v50 = vadd.f32 %v4309_v36, %v3902_v46  ;;  %7658 = vmatmul.mubr.msk.f32.gmra.mxu0 %vm438_vm0, %v7933_v9  ;;  %v7939_v46 = vld [vmem:[%s8351_s26 + $0x98] sm:$0xff] }
 0x2fb   : > { %7660 = vmatprep.mubr.msk.f32.mxu0 %vm438_vm0, %v7934_v12  ;;  %v7947_v12 = vld [vmem:[%s8351_s26 + $0xd8] sm:$0xff] }
 0x2fe   : > { %7661 = vmatmul.mubr.msk.f32.gmra.mxu0 %vm438_vm0, %v7935_v54 }
 0x301   : > { %v7441_v52 = vpop.f32.mrf.mxu0 }
 0x302   : > { %v3907_v40 = vadd.f32 %v7441_v52, %v10572_v1 }
 0x303   : > { %v3811_v22 = vpop.f32.mrf.mxu0 }
 0x304   : > { %v3906_v20 = vadd.f32 %v3811_v22, %v10580_v45  ;;  %v7936_v45 = vld [vmem:[%s8351_s26 + $0x80] sm:$0xff] }
 0x305   : > { %7663 = vmatprep.mubr.msk.f32.mxu0 %vm438_vm0, %v7936_v45 }
 0x306   : > { %v7444_v49 = vpop.f32.mrf.mxu0 }
 0x307   : > { %v3909_v1 = vadd.f32 %v7444_v49, %v10592_v14  ;;  %v7937_v14 = vld [vmem:[%s8351_s26 + $0x88] sm:$0xff] }
 0x308   : > { %v3821_v2 = vpop.f32.mrf.mxu0  ;;  %v7494_v29 = vpop.f32.mrf.mxu1  ;;  %7664 = vmatmul.mubr.msk.f32.gmra.mxu0 %vm438_vm0, %v7937_v14 }
 0x309   : > { %v3908_v15 = vadd.f32 %v3821_v2, %v10601_v27  ;;  %v10941_v33 = vadd.f32 %v7494_v29, %v3905_v37  ;;  %7666 = vmatprep.mubr.msk.f32.mxu0 %vm438_vm0, %v7938_v59  ;;  %v7941_v27 = vld [vmem:[%s8351_s26 + $0xa8] sm:$0xff]  ;;  %v7942_v37 = vld [vmem:[%s8351_s26 + $0xb0] sm:$0xff] }
 0x30a   : > { %v4319_v0 = vpop.f32.mrf.mxu1 }
 0x30b   : > { %v10943_v47 = vadd.f32 %v4319_v0, %v3904_v11 }
 0x30c   : > { %7667 = vmatmul.mubr.msk.f32.gmra.mxu0 %vm438_vm0, %v7939_v46 }
 0x30d   : > { %7669 = vmatprep.mubr.msk.f32.mxu0 %vm438_vm0, %v7940_v13 }
 0x310   : > { %7670 = vmatmul.mubr.msk.f32.gmra.mxu0 %vm438_vm0, %v7941_v27 }
 0x311   : > { %7672 = vmatprep.mubr.msk.f32.mxu0 %vm438_vm0, %v7942_v37 }
 0x314   : > { %7673 = vmatmul.mubr.msk.f32.gmra.mxu0 %vm438_vm0, %v7943_v55 }
 0x315   : > { %7675 = vmatprep.mubr.msk.f32.mxu0 %vm438_vm0, %v7944_v8 }
 0x316   : > { %v7497_v36 = vpop.f32.mrf.mxu1 }
 0x317   : > { %v10957_v28 = vadd.f32 %v7497_v36, %v3907_v40  ;;  %v7447_v48 = vpop.f32.mrf.mxu0 }
 0x318   : > { %v3911_v43 = vadd.f32 %v7447_v48, %v10618_v61  ;;  %v4329_v34 = vpop.f32.mrf.mxu1  ;;  %7676 = vmatmul.mubr.msk.f32.gmra.mxu0 %vm438_vm0, %v7945_v57  ;;  %v7946_v61 = vld [vmem:[%s8351_s26 + $0xd0] sm:$0xff] }
 0x319   : > { %v10964_v38 = vadd.f32 %v4329_v34, %v3906_v20  ;;  %v3831_v41 = vpop.f32.mrf.mxu0  ;;  %7678 = vmatprep.mubr.msk.f32.mxu0 %vm438_vm0, %v7946_v61  ;;  %v7948_v20 = vld [vmem:[%s8351_s26 + $0xe0] sm:$0xff] }
 0x31a   : > { %v3910_v52 = vadd.f32 %v3831_v41, %v10628_v39  ;;  %v7949_v39 = vld [vmem:[%s8351_s26 + $0xe8] sm:$0xff] }
 0x31b   : > { %v7500_v40 = vpop.f32.mrf.mxu1 }
 0x31c   : > { %v10969_v58 = vadd.f32 %v7500_v40, %v3909_v1  ;;  %7679 = vmatmul.mubr.msk.f32.gmra.mxu0 %vm438_vm0, %v7947_v12  ;;  %v7951_v1 = vld [vmem:[%s8351_s26 + $0xf8] sm:$0xff] }
 0x31d   : > { %v4339_v22 = vpop.f32.mrf.mxu1  ;;  %7681 = vmatprep.mubr.msk.f32.mxu0 %vm438_vm0, %v7948_v20 }
 0x31e   : > { %v10973_v9 = vadd.f32 %v4339_v22, %v3908_v15 }
 0x320   : > { %7682 = vmatmul.mubr.msk.f32.gmra.mxu0 %vm438_vm0, %v7949_v39 }
 0x321   : > { %7684 = vmatprep.mubr.msk.f32.mxu0 %vm438_vm0, %v7950_v30 }
 0x324   : > { %7685 = vmatmul.mubr.msk.f32.gmra.mxu0 %vm438_vm0, %v7951_v1  ;;  %v11814_v1 = vld [vmem:[#allocation18_spill] sm:$0xff] }
 0x325   : > { %v7450_v3 = vpop.f32.mrf.mxu0 }
 0x326   : > { %v3913_v49 = vadd.f32 %v7450_v3, %v10639_v25 }
 0x327   : > { %v3841_v63 = vpop.f32.mrf.mxu0 }
 0x328   : > { %v3912_v54 = vadd.f32 %v3841_v63, %v10651_v19  ;;  %v11813_v63 = vld [vmem:[#allocation29_spill] sm:$0xff] }
 0x32a   : > { %v7453_v2 = vpop.f32.mrf.mxu0 }
 0x32b   : > { %v3915_v29 = vadd.f32 %v7453_v2, %v10666_v62 }
 0x32c   : > { %v3851_v45 = vpop.f32.mrf.mxu0  ;;  %v7503_v11 = vpop.f32.mrf.mxu1 }
 0x32d   : > { %v3914_v15 = vadd.f32 %v3851_v45, %v10677_v10  ;;  %v10989_v0 = vadd.f32 %v7503_v11, %v3911_v43 }
 0x32e   : > { %v4349_v14 = vpop.f32.mrf.mxu1 }
 0x32f   : > { %v10991_v59 = vadd.f32 %v4349_v14, %v3910_v52 }
 0x33a   : > { %v7506_v46 = vpop.f32.mrf.mxu1 }
 0x33b   : > { %v10993_v25 = vadd.f32 %v7506_v46, %v3913_v49  ;;  %v7456_v13 = vpop.f32.mrf.mxu0 }
 0x33c   : > { %v3917_v27 = vadd.f32 %v7456_v13, %v10698_v6  ;;  %v4359_v37 = vpop.f32.mrf.mxu1 }
 0x33d   : > { %v10996_v19 = vadd.f32 %v4359_v37, %v3912_v54  ;;  %v3861_v36 = vpop.f32.mrf.mxu0  ;;  %v1675_v54 = vadd.f32 %v11814_v1, %v11813_v63 }
 0x33e   : > { %v3916_v62 = vadd.f32 %v3861_v36, %v10709_v31 }
 0x33f   : > { %v7509_v48 = vpop.f32.mrf.mxu1 }
 0x340   : > { %v10999_v55 = vadd.f32 %v7509_v48, %v3915_v29  ;;  %v11819_v48 = vld [vmem:[#allocation30_spill] sm:$0xff] }
 0x341   : > { %v4369_v10 = vpop.f32.mrf.mxu1 }
 0x342   : > { %v11001_v43 = vadd.f32 %v4369_v10, %v3914_v15  ;;  %v11816_v15 = vld [vmem:[#allocation38_spill] sm:$0xff] }
 0x349   : > { %v7459_v34 = vpop.f32.mrf.mxu0 }
 0x34a   : > { %v3919_v8 = vadd.f32 %v7459_v34, %v10726_v5 }
 0x34b   : > { %v3871_v41 = vpop.f32.mrf.mxu0 }
 0x34c   : > { %v3918_v52 = vadd.f32 %v3871_v41, %v10735_v23 }
 0x34d   : > { %v7512_v40 = vpop.f32.mrf.mxu1 }
 0x34e   : > { %v11005_v6 = vadd.f32 %v7512_v40, %v3917_v27  ;;  %v7462_v57 = vpop.f32.mrf.mxu0  ;;  %v11818_v27 = vld [vmem:[#allocation17_spill] sm:$0xff] }
 0x34f   : > { %v3921_v61 = vadd.f32 %v7462_v57, %v10749_v35  ;;  %v4379_v22 = vpop.f32.mrf.mxu1  ;;  %v11815_v35 = vld [vmem:[#allocation32_spill] sm:$0xff]  ;;  %v3891_v37 = vadd.f32 %v10565_v32, %v11818_v27  ;;  %v11032_v32 = vld [vmem:[%s11315_s4] ss:$0 sm:$0xff] }
 0x350   : > { %v11008_v31 = vadd.f32 %v4379_v22, %v3916_v62  ;;  %v3881_v12 = vpop.f32.mrf.mxu0  ;;  %v2452_v45 = vadd.f32 %v11815_v35, %v1675_v54 }
 0x351   : > { %v3920_v20 = vadd.f32 %v3881_v12, %v10760_v26  ;;  %v7515_v39 = vpop.f32.mrf.mxu1  ;;  %v11817_v26 = vld [vmem:[#allocation113_spill] sm:$0xff]  ;;  %v4409_v34 = vadd.f32 %v10769_v24, %v3891_v37 }
 0x352   : > { %v11011_v30 = vadd.f32 %v7515_v39, %v3919_v8  ;;  %v7529_v3 = vpop.f32.mrf.mxu0  ;;  %v2970_v14 = vadd.f32 %v11816_v15, %v2452_v45 }
 0x353   : > { %v4389_v5 = vpop.f32.mrf.mxu1  ;;  %v4674_v57 = vadd.f32 %v7529_v3, %v4409_v34 }
 0x354   : > { %v11013_v49 = vadd.f32 %v4389_v5, %v3918_v52  ;;  %v4514_v23 = vpop.f32.mrf.mxu0  ;;  %v3241_v13 = vadd.f32 %v11817_v26, %v2970_v14 }
 0x356   : > { %v7532_v2 = vpop.f32.mrf.mxu0  ;;  %v3890_v10 = vadd.f32 %v11819_v48, %v3241_v13 }
 0x357   : > { %v4676_v14 = vadd.f32 %v7532_v2, %v10797_v51 }
 0x358   : > { %v4524_v29 = vpop.f32.mrf.mxu0  ;;  %v4408_v40 = vadd.f32 %v10778_v53, %v3890_v10 }
 0x359   : > { %v4675_v27 = vadd.f32 %v4524_v29, %v10807_v21 }
 0x35a   : > { %v7535_v11 = vpop.f32.mrf.mxu0  ;;  %v4673_v5 = vadd.f32 %v4514_v23, %v4408_v40 }
 0x35b   : > { %v4678_v34 = vadd.f32 %v7535_v11, %v10821_v18 }
 0x35c   : > { %v4534_v46 = vpop.f32.mrf.mxu0 }
 0x35e   : > { %v7538_v36 = vpop.f32.mrf.mxu0 }
 0x35f   : > { %v7518_v62 = vpop.f32.mrf.mxu1 }
 0x360   : > { %v11024_v8 = vadd.f32 %v7518_v62, %v3921_v61  ;;  %v4544_v41 = vpop.f32.mrf.mxu0 }
 0x361   : > { %v4399_v52 = vpop.f32.mrf.mxu1 }
 0x362   : > { %v11027_v22 = vadd.f32 %v4399_v52, %v3920_v20  ;;  %v7541_v12 = vpop.f32.mrf.mxu0 }
 0x363   : > { %v7585_v39 = vpop.f32.mrf.mxu1 }
 0x364   : > { %v5323_v63 = vadd.f32 %v7585_v39, %v4674_v57  ;;  %v4554_v1 = vpop.f32.mrf.mxu0  ;;  %v4677_v57 = vadd.f32 %v4534_v46, %v10828_v42 }
 0x365   : > { %v5163_v24 = vpop.f32.mrf.mxu1 }
 0x366   : > { %v5322_v61 = vadd.f32 %v5163_v24, %v4673_v5  ;;  %v7544_v54 = vpop.f32.mrf.mxu0  ;;  %v5362_v35 = vadd.f32 %v11032_v32, %v5323_v63  ;;  %v4680_v63 = vadd.f32 %v7538_v36, %v10836_v16  ;;  %v4682_v16 = vadd.f32 %v7541_v12, %v10873_v17 }
 0x367   : > { %v4684_v17 = vadd.f32 %v7544_v54, %v10897_v60 }
 0x368   : > { %v5361_v53 = vadd.f32 %v11032_v32, %v5322_v61  ;;  %v4564_v3 = vpop.f32.mrf.mxu0  ;;  %v5394_v15 = vmax.f32 %v5362_v35, 0.0 }
 0x36a   : > { %v5393_v20 = vmax.f32 %v5361_v53, 0.0  ;;  %v11036_v45 = vpop.f32.mrf.mxu0  ;;  %v4679_v53 = vadd.f32 %v4544_v41, %v10841_v44  ;;  %v4681_v44 = vadd.f32 %v4554_v1, %v10878_v4  ;;  %v4683_v4 = vadd.f32 %v4564_v3, %v10905_v56 }
 0x36c   : > { %v11038_v23 = vpop.f32.mrf.mxu0  ;;  %7695 = vmatprep.mubr.msk.f32.mxu1 %vm438_vm0, %v5393_v20 }
 0x36d   : > { %7696 = vmatmul.mubr.msk.f32.vlgmr.msra.gmra.mxu1 %vm438_vm0, %v5394_v15 }
 0x36e   : > { %v7588_v26 = vpop.f32.mrf.mxu1  ;;  %v11043_v13 = vpop.f32.mrf.mxu0 }
 0x36f   : > { %v5325_v37 = vadd.f32 %v7588_v26, %v4676_v14 }
 0x370   : > { %v5173_v62 = vpop.f32.mrf.mxu1  ;;  %v11046_v48 = vpop.f32.mrf.mxu0 }
 0x371   : > { %v5324_v10 = vadd.f32 %v5173_v62, %v4675_v27  ;;  %v5364_v52 = vadd.f32 %v11032_v32, %v5325_v37 }
 0x372   : > { %v11050_v40 = vpop.f32.mrf.mxu0  ;;  %v7591_v2 = vpop.f32.mrf.mxu1 }
 0x373   : > { %v5363_v51 = vadd.f32 %v11032_v32, %v5324_v10  ;;  %v5327_v39 = vadd.f32 %v7591_v2, %v4678_v34  ;;  %v5396_v24 = vmax.f32 %v5364_v52, 0.0 }
 0x374   : > { %v11054_v5 = vpop.f32.mrf.mxu0  ;;  %v5183_v29 = vpop.f32.mrf.mxu1 }
 0x375   : > { %v5395_v21 = vmax.f32 %v5363_v51, 0.0  ;;  %v5326_v61 = vadd.f32 %v5183_v29, %v4677_v57  ;;  %v5366_v18 = vadd.f32 %v11032_v32, %v5327_v39 }
 0x376   : > { %v11057_v35 = vpop.f32.mrf.mxu0 }
 0x377   : > { %v7594_v11 = vpop.f32.mrf.mxu1  ;;  %7698 = vmatprep.mubr.msk.f32.mxu1 %vm438_vm0, %v5395_v21  ;;  %v5365_v42 = vadd.f32 %v11032_v32, %v5326_v61  ;;  %v5398_v27 = vmax.f32 %v5366_v18, 0.0 }
 0x378   : > { %v5329_v46 = vadd.f32 %v7594_v11, %v4680_v63  ;;  %7699 = vmatmul.mubr.msk.f32.gmra.mxu1 %vm438_vm0, %v5396_v24  ;;  %v11064_v20 = vpop.f32.mrf.mxu0  ;;  %v4686_v24 = vadd.f32 %v11036_v45, %v10910_v7  ;;  %v4685_v11 = vadd.f32 %v11038_v23, %v10914_v50  ;;  %v4688_v7 = vadd.f32 %v11043_v13, %v10941_v33 }
 0x379   : > { %v5193_v15 = vpop.f32.mrf.mxu1  ;;  %v5397_v36 = vmax.f32 %v5365_v42, 0.0  ;;  %v4690_v33 = vadd.f32 %v11050_v40, %v10957_v28  ;;  %v4692_v28 = vadd.f32 %v11057_v35, %v10969_v58 }
 0x37a   : > { %v5328_v14 = vadd.f32 %v5193_v15, %v4679_v53  ;;  %v11067_v26 = vpop.f32.mrf.mxu0  ;;  %v5368_v37 = vadd.f32 %v11032_v32, %v5329_v46 }
 0x37b   : > { %v7597_v62 = vpop.f32.mrf.mxu1  ;;  %7701 = vmatprep.mubr.msk.f32.mxu1 %vm438_vm0, %v5397_v36  ;;  %v4694_v58 = vadd.f32 %v11067_v26, %v10989_v0 }
 0x37c   : > { %v5367_v41 = vadd.f32 %v11032_v32, %v5328_v14  ;;  %v5331_v10 = vadd.f32 %v7597_v62, %v4682_v16  ;;  %7702 = vmatmul.mubr.msk.f32.gmra.mxu1 %vm438_vm0, %v5398_v27  ;;  %v11075_v52 = vpop.f32.mrf.mxu0  ;;  %v5400_v2 = vmax.f32 %v5368_v37, 0.0  ;;  %v4687_v27 = vadd.f32 %v11046_v48, %v10943_v47 }
 0x37d   : > { %v5203_v34 = vpop.f32.mrf.mxu1 }
 0x37e   : > { %v5399_v12 = vmax.f32 %v5367_v41, 0.0  ;;  %v5330_v51 = vadd.f32 %v5203_v34, %v4681_v44  ;;  %v5370_v57 = vadd.f32 %v11032_v32, %v5331_v10  ;;  %v11082_v60 = vpop.f32.mrf.mxu0 }
 0x37f   : > { %v7600_v39 = vpop.f32.mrf.mxu1  ;;  %v4696_v0 = vadd.f32 %v11082_v60, %v10993_v25 }
 0x380   : > { %v5369_v1 = vadd.f32 %v11032_v32, %v5330_v51  ;;  %v5333_v21 = vadd.f32 %v7600_v39, %v4684_v17  ;;  %7704 = vmatprep.mubr.msk.f32.mxu1 %vm438_vm0, %v5399_v12  ;;  %v5402_v61 = vmax.f32 %v5370_v57, 0.0  ;;  %v4624_v42 = vpop.f32.mrf.mxu0  ;;  %v4689_v17 = vadd.f32 %v11054_v5, %v10964_v38 }
 0x381   : > { %v5213_v29 = vpop.f32.mrf.mxu1  ;;  %7705 = vmatmul.mubr.msk.f32.gmra.mxu1 %vm438_vm0, %v5400_v2  ;;  %v4691_v38 = vadd.f32 %v11064_v20, %v10973_v9  ;;  %v4693_v9 = vadd.f32 %v11075_v52, %v10991_v59  ;;  %v4695_v59 = vadd.f32 %v4624_v42, %v10996_v19 }
 0x382   : > { %v5401_v63 = vmax.f32 %v5369_v1, 0.0  ;;  %v5332_v54 = vadd.f32 %v5213_v29, %v4683_v4  ;;  %v5372_v18 = vadd.f32 %v11032_v32, %v5333_v21  ;;  %v7565_v37 = vpop.f32.mrf.mxu0 }
 0x383   : > { %v7603_v3 = vpop.f32.mrf.mxu1 }
 0x384   : > { %v5371_v56 = vadd.f32 %v11032_v32, %v5332_v54  ;;  %7707 = vmatprep.mubr.msk.f32.mxu1 %vm438_vm0, %v5401_v63  ;;  %v5335_v53 = vadd.f32 %v7603_v3, %v4686_v24  ;;  %v5404_v45 = vmax.f32 %v5372_v18, 0.0  ;;  %v4634_v12 = vpop.f32.mrf.mxu0 }
 0x385   : > { %7708 = vmatmul.mubr.msk.f32.gmra.mxu1 %vm438_vm0, %v5402_v61  ;;  %v5223_v15 = vpop.f32.mrf.mxu1 }
 0x386   : > { %v5403_v46 = vmax.f32 %v5371_v56, 0.0  ;;  %v5334_v16 = vadd.f32 %v5223_v15, %v4685_v11  ;;  %v5374_v36 = vadd.f32 %v11032_v32, %v5335_v53  ;;  %v7568_v21 = vpop.f32.mrf.mxu0 }
 0x387   : > { %v7606_v14 = vpop.f32.mrf.mxu1 }
 0x388   : > { %7710 = vmatprep.mubr.msk.f32.mxu1 %vm438_vm0, %v5403_v46  ;;  %v5373_v50 = vadd.f32 %v11032_v32, %v5334_v16  ;;  %v5337_v23 = vadd.f32 %v7606_v14, %v4688_v7  ;;  %v5406_v41 = vmax.f32 %v5374_v36, 0.0  ;;  %v4644_v56 = vpop.f32.mrf.mxu0  ;;  %v4698_v36 = vadd.f32 %v7565_v37, %v10999_v55 }
 0x389   : > { %7711 = vmatmul.mubr.msk.f32.gmra.mxu1 %vm438_vm0, %v5404_v45  ;;  %v5233_v62 = vpop.f32.mrf.mxu1 }
 0x38a   : > { %v5405_v13 = vmax.f32 %v5373_v50, 0.0  ;;  %v5336_v44 = vadd.f32 %v5233_v62, %v4687_v27  ;;  %v5376_v10 = vadd.f32 %v11032_v32, %v5337_v23  ;;  %v7571_v45 = vpop.f32.mrf.mxu0  ;;  %v4697_v23 = vadd.f32 %v4634_v12, %v11001_v43 }
 0x38b   : > { %v7609_v34 = vpop.f32.mrf.mxu1  ;;  %v4702_v12 = vadd.f32 %v7571_v45, %v11011_v30 }
 0x38c   : > { %v5375_v47 = vadd.f32 %v11032_v32, %v5336_v44  ;;  %v5339_v48 = vadd.f32 %v7609_v34, %v4690_v33  ;;  %7713 = vmatprep.mubr.msk.f32.mxu1 %vm438_vm0, %v5405_v13  ;;  %v5408_v57 = vmax.f32 %v5376_v10, 0.0  ;;  %v4654_v62 = vpop.f32.mrf.mxu0  ;;  %v4700_v13 = vadd.f32 %v7568_v21, %v11005_v6 }
 0x38d   : > { %v5243_v51 = vpop.f32.mrf.mxu1  ;;  %7714 = vmatmul.mubr.msk.f32.gmra.mxu1 %vm438_vm0, %v5406_v41  ;;  %v4699_v34 = vadd.f32 %v4644_v56, %v11008_v31 }
 0x38e   : > { %v5407_v40 = vmax.f32 %v5375_v47, 0.0  ;;  %v5338_v2 = vadd.f32 %v5243_v51, %v4689_v17  ;;  %v5378_v39 = vadd.f32 %v11032_v32, %v5339_v48  ;;  %v7574_v47 = vpop.f32.mrf.mxu0 }
 0x38f   : > { %v7612_v4 = vpop.f32.mrf.mxu1 }
 0x390   : > { %v5377_v5 = vadd.f32 %v11032_v32, %v5338_v2  ;;  %v5341_v1 = vadd.f32 %v7612_v4, %v4692_v28  ;;  %7716 = vmatprep.mubr.msk.f32.mxu1 %vm438_vm0, %v5407_v40  ;;  %v5410_v54 = vmax.f32 %v5378_v39, 0.0  ;;  %v4664_v4 = vpop.f32.mrf.mxu0 }
 0x391   : > { %v5253_v29 = vpop.f32.mrf.mxu1  ;;  %7717 = vmatmul.mubr.msk.f32.gmra.mxu1 %vm438_vm0, %v5408_v57  ;;  %v4701_v57 = vadd.f32 %v4654_v62, %v11013_v49 }
 0x392   : > { %v5409_v35 = vmax.f32 %v5377_v5, 0.0  ;;  %v5340_v63 = vadd.f32 %v5253_v29, %v4691_v38  ;;  %v5380_v24 = vadd.f32 %v11032_v32, %v5341_v1  ;;  %v4704_v5 = vadd.f32 %v7574_v47, %v11024_v8 }
 0x393   : > { %v7615_v61 = vpop.f32.mrf.mxu1 }
 0x394   : > { %v5379_v20 = vadd.f32 %v11032_v32, %v5340_v63  ;;  %v5343_v18 = vadd.f32 %v7615_v61, %v4694_v58  ;;  %7719 = vmatprep.mubr.msk.f32.mxu1 %vm438_vm0, %v5409_v35  ;;  %v5412_v53 = vmax.f32 %v5380_v24, 0.0  ;;  %v4703_v35 = vadd.f32 %v4664_v4, %v11027_v22 }
 0x395   : > { %v5263_v3 = vpop.f32.mrf.mxu1  ;;  %7720 = vmatmul.mubr.msk.f32.gmra.mxu1 %vm438_vm0, %v5410_v54 }
 0x396   : > { %v5411_v26 = vmax.f32 %v5379_v20, 0.0  ;;  %v5342_v11 = vadd.f32 %v5263_v3, %v4693_v9  ;;  %v5382_v46 = vadd.f32 %v11032_v32, %v5343_v18 }
 0x397   : > { %v7618_v15 = vpop.f32.mrf.mxu1 }
 0x398   : > { %v5381_v52 = vadd.f32 %v11032_v32, %v5342_v11  ;;  %v5345_v7 = vadd.f32 %v7618_v15, %v4696_v0  ;;  %7722 = vmatprep.mubr.msk.f32.mxu1 %vm438_vm0, %v5411_v26  ;;  %v5414_v14 = vmax.f32 %v5382_v46, 0.0 }
 0x399   : > { %v5273_v16 = vpop.f32.mrf.mxu1  ;;  %7723 = vmatmul.mubr.msk.f32.gmra.mxu1 %vm438_vm0, %v5412_v53 }
 0x39a   : > { %v5413_v25 = vmax.f32 %v5381_v52, 0.0  ;;  %v5344_v60 = vadd.f32 %v5273_v16, %v4695_v59  ;;  %v5384_v27 = vadd.f32 %v11032_v32, %v5345_v7 }
 0x39b   : > { %v7621_v50 = vpop.f32.mrf.mxu1 }
 0x39c   : > { %v5383_v19 = vadd.f32 %v11032_v32, %v5344_v60  ;;  %v5347_v42 = vadd.f32 %v7621_v50, %v4698_v36  ;;  %7725 = vmatprep.mubr.msk.f32.mxu1 %vm438_vm0, %v5413_v25  ;;  %v5416_v44 = vmax.f32 %v5384_v27, 0.0  ;;  %v11170_v25 = vld [vmem:[%s11318_s7] ss:$0 sm:$0xff] }
 0x39d   : > { %v5283_v33 = vpop.f32.mrf.mxu1  ;;  %7726 = vmatmul.mubr.msk.f32.gmra.mxu1 %vm438_vm0, %v5414_v14 }
 0x39e   : > { %v5415_v55 = vmax.f32 %v5383_v19, 0.0  ;;  %v5346_v37 = vadd.f32 %v5283_v33, %v4697_v23  ;;  %v5386_v41 = vadd.f32 %v11032_v32, %v5347_v42 }
 0x39f   : > { %v7624_v10 = vpop.f32.mrf.mxu1 }
 0x3a0   : > { %v5385_v43 = vadd.f32 %v11032_v32, %v5346_v37  ;;  %v5349_v17 = vadd.f32 %v7624_v10, %v4700_v13  ;;  %7728 = vmatprep.mubr.msk.f32.mxu1 %vm438_vm0, %v5415_v55  ;;  %v5418_v28 = vmax.f32 %v5386_v41, 0.0 }
 0x3a1   : > { %v5293_v48 = vpop.f32.mrf.mxu1  ;;  %7729 = vmatmul.mubr.msk.f32.gmra.mxu1 %vm438_vm0, %v5416_v44  ;;  %v7641_v56 = vpop.f32.mrf.mxu0 }
 0x3a2   : > { %v5417_v6 = vmax.f32 %v5385_v43, 0.0  ;;  %v5348_v51 = vadd.f32 %v5293_v48, %v4699_v34  ;;  %v5388_v40 = vadd.f32 %v11032_v32, %v5349_v17 }
 0x3a3   : > { %v7627_v2 = vpop.f32.mrf.mxu1  ;;  %v5499_v3 = vpop.f32.mrf.mxu0 }
 0x3a4   : > { %v5387_v31 = vadd.f32 %v11032_v32, %v5348_v51  ;;  %v5351_v39 = vadd.f32 %v7627_v2, %v4702_v12  ;;  %7731 = vmatprep.mubr.msk.f32.mxu1 %vm438_vm0, %v5417_v6  ;;  %v5420_v21 = vmax.f32 %v5388_v40, 0.0 }
 0x3a5   : > { %v5303_v38 = vpop.f32.mrf.mxu1  ;;  %7732 = vmatmul.mubr.msk.f32.gmra.mxu1 %vm438_vm0, %v5418_v28 }
 0x3a6   : > { %v5419_v30 = vmax.f32 %v5387_v31, 0.0  ;;  %v5350_v1 = vadd.f32 %v5303_v38, %v4701_v57  ;;  %v5390_v29 = vadd.f32 %v11032_v32, %v5351_v39  ;;  %v7644_v0 = vpop.f32.mrf.mxu0 }
 0x3a7   : > { %v7630_v58 = vpop.f32.mrf.mxu1 }
 0x3a8   : > { %v5389_v49 = vadd.f32 %v11032_v32, %v5350_v1  ;;  %v5353_v63 = vadd.f32 %v7630_v58, %v4704_v5  ;;  %7734 = vmatprep.mubr.msk.f32.mxu1 %vm438_vm0, %v5419_v30  ;;  %v5422_v9 = vmax.f32 %v5390_v29, 0.0  ;;  %v5509_v26 = vpop.f32.mrf.mxu0 }
 0x3a9   : > { %v5313_v54 = vpop.f32.mrf.mxu1  ;;  %7735 = vmatmul.mubr.msk.f32.gmra.mxu1 %vm438_vm0, %v5420_v21 }
 0x3aa   : > { %v5421_v24 = vmax.f32 %v5389_v49, 0.0  ;;  %v5352_v61 = vadd.f32 %v5313_v54, %v4703_v35  ;;  %v5392_v8 = vadd.f32 %v11032_v32, %v5353_v63  ;;  %v7647_v11 = vpop.f32.mrf.mxu0 }
 0x3ac   : > { %v5391_v20 = vadd.f32 %v11032_v32, %v5352_v61  ;;  %7737 = vmatprep.mubr.msk.f32.mxu1 %vm438_vm0, %v5421_v24  ;;  %v5424_v18 = vmax.f32 %v5392_v8, 0.0  ;;  %v5519_v53 = vpop.f32.mrf.mxu0 }
 0x3ad   : > { %7738 = vmatmul.mubr.msk.f32.gmra.mxu1 %vm438_vm0, %v5422_v9 }
 0x3ae   : > { %v5423_v22 = vmax.f32 %v5391_v20, 0.0  ;;  %v7650_v46 = vpop.f32.mrf.mxu0 }
 0x3b0   : > { %7740 = vmatprep.mubr.msk.f32.mxu1 %vm438_vm0, %v5423_v22  ;;  %v5529_v15 = vpop.f32.mrf.mxu0 }
 0x3b1   : > { %7741 = vmatmul.mubr.msk.f32.gmra.mxu1 %vm438_vm0, %v5424_v18 }
 0x3b2   : > { %v7653_v32 = vpop.f32.mrf.mxu0 }
 0x3b4   : > { %v5539_v59 = vpop.f32.mrf.mxu0 }
 0x3b6   : > { %v7656_v52 = vpop.f32.mrf.mxu0 }
 0x3b8   : > { %v11161_v7 = vpop.f32.mrf.mxu0 }
 0x3ba   : > { %v11163_v45 = vpop.f32.mrf.mxu0 }
 0x3bc   : > { %v11165_v16 = vpop.f32.mrf.mxu0 }
 0x3be   : > { %v11173_v23 = vpop.f32.mrf.mxu0 }
 0x3c0   : > { %v11181_v33 = vpop.f32.mrf.mxu0 }
 0x3c8   : > { %v11184_v55 = vpop.f32.mrf.mxu0 }
 0x3ca   : > { %v11187_v34 = vpop.f32.mrf.mxu0 }
 0x3cc   : > { %v11192_v40 = vpop.f32.mrf.mxu0 }
 0x3ce   : > { %v11198_v1 = vpop.f32.mrf.mxu0 }
 0x3d0   : > { %v7671_v61 = vpop.f32.mrf.mxu0 }
 0x42d   : > { %v7697_v36 = vpop.f32.mrf.mxu1 }
 0x42e   : > { %v5826_v60 = vadd.f32 %v7697_v36, %v7641_v56 }
 0x42f   : > { %v5820_v14 = vpop.f32.mrf.mxu1 }
 0x430   : > { %v5987_v27 = vadd.f32 %v11170_v25, %v5826_v60  ;;  %v5821_v50 = vadd.f32 %v5820_v14, %v5499_v3 }
 0x432   : > { %v6019_v19 = vmax.f32 %v5987_v27, 0.0  ;;  %v5986_v42 = vadd.f32 %v11170_v25, %v5821_v50 }
 0x434   : > { %6051 = vst [vmem:[%s11178_s23 + $0x8] sm:$0xff] %v6019_v19  ;;  %v6018_v62 = vmax.f32 %v5986_v42, 0.0 }
 0x436   : > { %6050 = vst [vmem:[%s11178_s23] sm:$0xff] %v6018_v62 }
 0x438   : > { %v7700_v13 = vpop.f32.mrf.mxu1 }
 0x439   : > { %v5836_v37 = vadd.f32 %v7700_v13, %v7644_v0 }
 0x43a   : > { %v5830_v44 = vpop.f32.mrf.mxu1 }
 0x43b   : > { %v5989_v41 = vadd.f32 %v11170_v25, %v5836_v37  ;;  %v5831_v10 = vadd.f32 %v5830_v44, %v5509_v26  ;;  %v5599_v26 = vpop.f32.mrf.mxu0 }
 0x43c   : > { %v7703_v47 = vpop.f32.mrf.mxu1 }
 0x43d   : > { %v6021_v43 = vmax.f32 %v5989_v41, 0.0  ;;  %v5988_v17 = vadd.f32 %v11170_v25, %v5831_v10  ;;  %v5846_v48 = vadd.f32 %v7703_v47, %v7647_v11 }
 0x43e   : > { %v5840_v6 = vpop.f32.mrf.mxu1 }
 0x43f   : > { %6053 = vst [vmem:[%s11178_s23 + $0x18] sm:$0xff] %v6021_v43  ;;  %v6020_v12 = vmax.f32 %v5988_v17, 0.0  ;;  %v5991_v51 = vadd.f32 %v11170_v25, %v5846_v48  ;;  %v5841_v28 = vadd.f32 %v5840_v6, %v5519_v53 }
 0x441   : > { %6052 = vst [vmem:[%s11178_s23 + $0x10] sm:$0xff] %v6020_v12  ;;  %v7706_v2 = vpop.f32.mrf.mxu1  ;;  %v6023_v57 = vmax.f32 %v5991_v51, 0.0  ;;  %v5990_v31 = vadd.f32 %v11170_v25, %v5841_v28 }
 0x442   : > { %v5856_v39 = vadd.f32 %v7706_v2, %v7650_v46 }
 0x443   : > { %v5850_v4 = vpop.f32.mrf.mxu1  ;;  %6055 = vst [vmem:[%s11178_s23 + $0x28] sm:$0xff] %v6023_v57  ;;  %v6022_v38 = vmax.f32 %v5990_v31, 0.0 }
 0x444   : > { %v5993_v5 = vadd.f32 %v11170_v25, %v5856_v39  ;;  %v5851_v30 = vadd.f32 %v5850_v4, %v5529_v15 }
 0x445   : > { %v7709_v21 = vpop.f32.mrf.mxu1  ;;  %6054 = vst [vmem:[%s11178_s23 + $0x20] sm:$0xff] %v6022_v38 }
 0x446   : > { %v6025_v29 = vmax.f32 %v5993_v5, 0.0  ;;  %v5992_v58 = vadd.f32 %v11170_v25, %v5851_v30  ;;  %v5866_v35 = vadd.f32 %v7709_v21, %v7653_v32 }
 0x447   : > { %v5860_v49 = vpop.f32.mrf.mxu1 }
 0x448   : > { %6057 = vst [vmem:[%s11178_s23 + $0x38] sm:$0xff] %v6025_v29  ;;  %v6024_v63 = vmax.f32 %v5992_v58, 0.0  ;;  %v5995_v54 = vadd.f32 %v11170_v25, %v5866_v35  ;;  %v5861_v24 = vadd.f32 %v5860_v49, %v5539_v59 }
 0x449   : > { %v7712_v9 = vpop.f32.mrf.mxu1 }
 0x44a   : > { %6056 = vst [vmem:[%s11178_s23 + $0x30] sm:$0xff] %v6024_v63  ;;  %v6027_v8 = vmax.f32 %v5995_v54, 0.0  ;;  %v5994_v20 = vadd.f32 %v11170_v25, %v5861_v24  ;;  %v5876_v22 = vadd.f32 %v7712_v9, %v7656_v52  ;;  %v7674_v52 = vpop.f32.mrf.mxu0 }
 0x44b   : > { %v5870_v18 = vpop.f32.mrf.mxu1 }
 0x44c   : > { %6059 = vst [vmem:[%s11178_s23 + $0x48] sm:$0xff] %v6027_v8  ;;  %v6026_v56 = vmax.f32 %v5994_v20, 0.0  ;;  %v5997_v3 = vadd.f32 %v11170_v25, %v5876_v22  ;;  %v5871_v0 = vadd.f32 %v5870_v18, %v11161_v7  ;;  %v5609_v42 = vpop.f32.mrf.mxu0 }
 0x44d   : > { %v7715_v46 = vpop.f32.mrf.mxu1 }
 0x44e   : > { %6058 = vst [vmem:[%s11178_s23 + $0x40] sm:$0xff] %v6026_v56  ;;  %v6029_v11 = vmax.f32 %v5997_v3, 0.0  ;;  %v5996_v53 = vadd.f32 %v11170_v25, %v5871_v0  ;;  %v5886_v15 = vadd.f32 %v7715_v46, %v11163_v45  ;;  %v7677_v43 = vpop.f32.mrf.mxu0 }
 0x44f   : > { %v5880_v59 = vpop.f32.mrf.mxu1 }
 0x450   : > { %6061 = vst [vmem:[%s11178_s23 + $0x58] sm:$0xff] %v6029_v11  ;;  %v6028_v32 = vmax.f32 %v5996_v53, 0.0  ;;  %v5999_v36 = vadd.f32 %v11170_v25, %v5886_v15  ;;  %v5881_v60 = vadd.f32 %v5880_v59, %v11165_v16  ;;  %v5619_v28 = vpop.f32.mrf.mxu0 }
 0x451   : > { %v7718_v7 = vpop.f32.mrf.mxu1 }
 0x452   : > { %6060 = vst [vmem:[%s11178_s23 + $0x50] sm:$0xff] %v6028_v32  ;;  %v6031_v14 = vmax.f32 %v5999_v36, 0.0  ;;  %v5998_v27 = vadd.f32 %v11170_v25, %v5881_v60  ;;  %v5896_v50 = vadd.f32 %v7718_v7, %v11173_v23  ;;  %v7680_v5 = vpop.f32.mrf.mxu0 }
 0x453   : > { %v5890_v19 = vpop.f32.mrf.mxu1 }
 0x454   : > { %6063 = vst [vmem:[%s11178_s23 + $0x68] sm:$0xff] %v6031_v14  ;;  %v6030_v45 = vmax.f32 %v5998_v27, 0.0  ;;  %v6001_v62 = vadd.f32 %v11170_v25, %v5896_v50  ;;  %v5891_v13 = vadd.f32 %v5890_v19, %v11181_v33  ;;  %v5629_v63 = vpop.f32.mrf.mxu0 }
 0x455   : > { %v7721_v37 = vpop.f32.mrf.mxu1 }
 0x456   : > { %6062 = vst [vmem:[%s11178_s23 + $0x60] sm:$0xff] %v6030_v45  ;;  %v6033_v16 = vmax.f32 %v6001_v62, 0.0  ;;  %v6000_v44 = vadd.f32 %v11170_v25, %v5891_v13  ;;  %v5906_v41 = vadd.f32 %v7721_v37, %v11184_v55  ;;  %v7683_v56 = vpop.f32.mrf.mxu0 }
 0x457   : > { %v5900_v10 = vpop.f32.mrf.mxu1 }
 0x458   : > { %6065 = vst [vmem:[%s11178_s23 + $0x78] sm:$0xff] %v6033_v16  ;;  %v6032_v23 = vmax.f32 %v6000_v44, 0.0  ;;  %v6003_v17 = vadd.f32 %v11170_v25, %v5906_v41  ;;  %v5901_v47 = vadd.f32 %v5900_v10, %v11187_v34  ;;  %v5639_v59 = vpop.f32.mrf.mxu0 }
 0x459   : > { %v7724_v48 = vpop.f32.mrf.mxu1 }
 0x45a   : > { %6064 = vst [vmem:[%s11178_s23 + $0x70] sm:$0xff] %v6032_v23  ;;  %v6035_v33 = vmax.f32 %v6003_v17, 0.0  ;;  %v6002_v12 = vadd.f32 %v11170_v25, %v5901_v47  ;;  %v5916_v6 = vadd.f32 %v7724_v48, %v11192_v40  ;;  %v7686_v19 = vpop.f32.mrf.mxu0 }
 0x45b   : > { %v5910_v51 = vpop.f32.mrf.mxu1 }
 0x45c   : > { %6067 = vst [vmem:[%s11178_s23 + $0x88] sm:$0xff] %v6035_v33  ;;  %v6034_v55 = vmax.f32 %v6002_v12, 0.0  ;;  %v6005_v2 = vadd.f32 %v11170_v25, %v5916_v6  ;;  %v5911_v57 = vadd.f32 %v5910_v51, %v11198_v1  ;;  %v5649_v10 = vpop.f32.mrf.mxu0 }
 0x45d   : > { %v7727_v31 = vpop.f32.mrf.mxu1 }
 0x45e   : > { %6066 = vst [vmem:[%s11178_s23 + $0x80] sm:$0xff] %v6034_v55  ;;  %v6037_v34 = vmax.f32 %v6005_v2, 0.0  ;;  %v6004_v39 = vadd.f32 %v11170_v25, %v5911_v57  ;;  %v5926_v4 = vadd.f32 %v7727_v31, %v7671_v61 }
 0x45f   : > { %v5920_v38 = vpop.f32.mrf.mxu1 }
 0x460   : > { %6069 = vst [vmem:[%s11178_s23 + $0x98] sm:$0xff] %v6037_v34  ;;  %v6036_v40 = vmax.f32 %v6004_v39, 0.0  ;;  %v6007_v30 = vadd.f32 %v11170_v25, %v5926_v4  ;;  %v5921_v21 = vadd.f32 %v5920_v38, %v5599_v26 }
 0x461   : > { %v7730_v29 = vpop.f32.mrf.mxu1 }
 0x462   : > { %6068 = vst [vmem:[%s11178_s23 + $0x90] sm:$0xff] %v6036_v40  ;;  %v6039_v58 = vmax.f32 %v6007_v30, 0.0  ;;  %v6006_v1 = vadd.f32 %v11170_v25, %v5921_v21  ;;  %v5936_v35 = vadd.f32 %v7730_v29, %v7674_v52 }
 0x463   : > { %v5930_v49 = vpop.f32.mrf.mxu1 }
 0x464   : > { %6071 = vst [vmem:[%s11178_s23 + $0xa8] sm:$0xff] %v6039_v58  ;;  %v6038_v54 = vmax.f32 %v6006_v1, 0.0  ;;  %v6009_v24 = vadd.f32 %v11170_v25, %v5936_v35  ;;  %v5931_v61 = vadd.f32 %v5930_v49, %v5609_v42 }
 0x465   : > { %v7733_v9 = vpop.f32.mrf.mxu1 }
 0x466   : > { %6070 = vst [vmem:[%s11178_s23 + $0xa0] sm:$0xff] %v6038_v54  ;;  %v6041_v8 = vmax.f32 %v6009_v24, 0.0  ;;  %v6008_v20 = vadd.f32 %v11170_v25, %v5931_v61  ;;  %v5946_v22 = vadd.f32 %v7733_v9, %v7677_v43 }
 0x467   : > { %v5940_v18 = vpop.f32.mrf.mxu1 }
 0x468   : > { %6073 = vst [vmem:[%s11178_s23 + $0xb8] sm:$0xff] %v6041_v8  ;;  %v6040_v3 = vmax.f32 %v6008_v20, 0.0  ;;  %v6011_v0 = vadd.f32 %v11170_v25, %v5946_v22  ;;  %v5941_v26 = vadd.f32 %v5940_v18, %v5619_v28 }
 0x469   : > { %v7736_v11 = vpop.f32.mrf.mxu1 }
 0x46a   : > { %6072 = vst [vmem:[%s11178_s23 + $0xb0] sm:$0xff] %v6040_v3  ;;  %v6043_v53 = vmax.f32 %v6011_v0, 0.0  ;;  %v6010_v46 = vadd.f32 %v11170_v25, %v5941_v26  ;;  %v5956_v15 = vadd.f32 %v7736_v11, %v7680_v5 }
 0x46b   : > { %v5950_v32 = vpop.f32.mrf.mxu1 }
 0x46c   : > { %6075 = vst [vmem:[%s11178_s23 + $0xc8] sm:$0xff] %v6043_v53  ;;  %v6042_v52 = vmax.f32 %v6010_v46, 0.0  ;;  %v6013_v36 = vadd.f32 %v11170_v25, %v5956_v15  ;;  %v5951_v60 = vadd.f32 %v5950_v32, %v5629_v63 }
 0x46d   : > { %v7739_v7 = vpop.f32.mrf.mxu1 }
 0x46e   : > { %6074 = vst [vmem:[%s11178_s23 + $0xc0] sm:$0xff] %v6042_v52  ;;  %v6045_v14 = vmax.f32 %v6013_v36, 0.0  ;;  %v6012_v27 = vadd.f32 %v11170_v25, %v5951_v60  ;;  %v5966_v50 = vadd.f32 %v7739_v7, %v7683_v56 }
 0x46f   : > { %v5960_v42 = vpop.f32.mrf.mxu1 }
 0x470   : > { %6077 = vst [vmem:[%s11178_s23 + $0xd8] sm:$0xff] %v6045_v14  ;;  %v6044_v45 = vmax.f32 %v6012_v27, 0.0  ;;  %v6015_v62 = vadd.f32 %v11170_v25, %v5966_v50  ;;  %v5961_v13 = vadd.f32 %v5960_v42, %v5639_v59 }
 0x471   : > { %v7742_v37 = vpop.f32.mrf.mxu1 }
 0x472   : > { %6076 = vst [vmem:[%s11178_s23 + $0xd0] sm:$0xff] %v6044_v45  ;;  %v6047_v16 = vmax.f32 %v6015_v62, 0.0  ;;  %v6014_v44 = vadd.f32 %v11170_v25, %v5961_v13  ;;  %v5976_v41 = vadd.f32 %v7742_v37, %v7686_v19 }
 0x473   : > { %v5970_v43 = vpop.f32.mrf.mxu1 }
 0x474   : > { %6079 = vst [vmem:[%s11178_s23 + $0xe8] sm:$0xff] %v6047_v16  ;;  %v6046_v23 = vmax.f32 %v6014_v44, 0.0  ;;  %v6017_v17 = vadd.f32 %v11170_v25, %v5976_v41  ;;  %v5971_v47 = vadd.f32 %v5970_v43, %v5649_v10 }
 0x476   : > { %6078 = vst [vmem:[%s11178_s23 + $0xe0] sm:$0xff] %v6046_v23  ;;  %v6049_v48 = vmax.f32 %v6017_v17, 0.0  ;;  %v6016_v33 = vadd.f32 %v11170_v25, %v5971_v47 }
 0x478   : > { %6081 = vst [vmem:[%s11178_s23 + $0xf8] sm:$0xff] %v6049_v48  ;;  %v6048_v12 = vmax.f32 %v6016_v33, 0.0 }
 0x47a   : > { %6080 = vst [vmem:[%s11178_s23 + $0xf0] sm:$0xff] %v6048_v12 }
 0x47b   : > { %8071 = shalt.err (!%p8068_p10)
}
 0x47c   : > { %s8072_s26 = scalar_lea.hbm %s11264_s1, 4096  ;;  %s8076_s28 = scalar_lea.hbm %s11320_s9, 8192 }
 0x47d   : > { %p8073_p6 = scmp.ne.s32.totalorder %s11264_s1, %s8072_s26  ;;  %p8077_p3 = scmp.lt.s32.totalorder %s11264_s1, %s11320_s9 }
 0x47e   : > { %p8078_p11 = scmp.lt.s32.totalorder %s8076_s28, %s8072_s26 }
 0x47f   : > { %p8074_p4 = pnand %p8073_p6, %p11820_p1 }
 0x480   : > { %p8079_p5 = por %p8078_p11, %p8077_p3 }
 0x481   : > { %p8075_p8 = pneg %p8074_p4 }
 0x483   : > { %p8080_p7 = pnand %p8079_p5, %p8075_p8 }
 0x485   : > { %8083 = shalt.err (!%p8080_p7)
}
 0x486   : > { %s8146_s18 = smov 128   ;;  %s8147_s21 = smov 8  }
 0x487   : > { %7757 = dma.vmem_to_hbm [thread:$0]  (%p11820_p1), %s11266_s20, 4096, %s11264_s1, %s6083_s19, %s8146_s18, %s8146_s18, %s8147_s21  }
 0x488 PF: > { %s6111_s13 = sand.u32 1, %s8118_s30   ;;  %p11821_p12 = scmp.ne.s32.totalorder %s11462_s16, 0 }
 0x489   : > { %p11822_p9 = scmp.ge.s32.totalorder %s8130_s12, 2  ;;  %s6112_s24 = scalar_lea.sflag [#allocation4], %s6111_s13 }
 0x48b   : > { %p7774_p13 = pnand %p11822_p9, %p11821_p12 }
 0x48d   : > { %p7775_p0 = pneg %p7774_p13 }
 0x48f   : > { %8113 = dma.done.wait (%p7775_p0), %s6112_s24, 4096  }
 0x490   : > { %8115 = vsyncadd (%p7775_p0), %s6112_s24, 4294963200  ;;  %p24_p2 = scmp.ge.s32.totalorder %s8287_s22, 4   ;;  %s11823_s30 = smov %s8122_s10 }
 0x491   : > { %s11824_s10 = smov %s8126_s11  ;;  %s11825_s11 = smov %s8297_s29 }
 0x492   : > { %s11826_s12 = smov %s8287_s22  ;;  %26 = sbr.rel (!%p24_p2) target bundleno = 11 (0xb), region = 121 }
 0x497   :  { %6117 = vsyncpa [#allocation3], 1 }
 0x498   :  { %6119 = vsyncpa [#allocation3 + $0x1], 1 }
 0x499   :  { %6120 = vsyncpa [#allocation6], 1 }
 0x49a   :  { %6121 = vsyncpa [#allocation9], 1 }
 0x49b   :  { %6122 = vsyncpa [#allocation4], 1 }
 0x49c   :  { %6124 = vsyncpa [#allocation4 + $0x1], 1 }

</bundles_post_ra>
